<compile_context>
chip_gen: v7x
topology: tpu7x:2x2x1
jax: 0.10.0
libtpu: 0.0.40
codegen_flags: <defaults>
</compile_context>

<pallas_src>
import functools

import jax
import jax.numpy as jnp
from jax import lax
from jax.experimental import pallas as pl
from jax.experimental.pallas import tpu as pltpu


# ----------------------------------------------------------------------------
# Fused encoder kernel
# ----------------------------------------------------------------------------
def _encoder_kernel(*refs, num_layers, hidden_dim, seq_len, batch):
    """Fused multi-layer bidirectional LSTM + key/value projection.

    Ref layout (inputs, gate order [i|f|o|g] per direction):
      x:            (T*B, D_in) bf16     time-major rows (row = t*B + b)
      layer 0:      wih_fb (D_in, 8H) bf16, whh_blk (2H, 8H) bf16, b (1, 8H) f32
      layer l >= 1: wih_top (H, 8H) bf16, wih_bot (H, 8H) bf16,
                    whh_blk (2H, 8H) bf16, b (1, 8H) f32
      kv:           kvw_f (H, 2KV) bf16, kvw_b (H, 2KV) bf16, kv_b (1, 2KV) f32
    Output:
      out:          (T*B, 2KV) f32       [key | value] on the lane axis
    Scratch:
      gates (T*B, 8H) f32, h_fwd (T*B, H) f32, h_bwd (T*B, H) f32
    """
    H = hidden_dim
    T = seq_len
    B = batch  # already padded to a multiple of 8

    it = iter(refs)
    x_ref = next(it)
    layers = []
    layers.append((next(it), None, next(it), next(it)))                # layer 0
    for _ in range(num_layers - 1):
        layers.append((next(it), next(it), next(it), next(it)))
    kvw_f_ref = next(it)
    kvw_b_ref = next(it)
    kv_b_ref = next(it)
    out_ref = next(it)
    gates_ref = next(it)
    hf_ref = next(it)
    hb_ref = next(it)

    # Cap the unroll at 8 (LLO scheduling visibility without the vreg cliff).
    unroll = next(u for u in (8, 4, 2, 1) if T % u == 0)

    for layer_idx, (wa_ref, wb_ref, whh_ref, b_ref) in enumerate(layers):
        # ---- hoisted input projection: one big bf16 MXU matmul over the
        #      whole sequence, both directions at once ([fwd 4H | bwd 4H]) ----
        if layer_idx == 0:
            gin = jnp.dot(x_ref[...], wa_ref[...],
                          preferred_element_type=jnp.float32)
        else:
            # Previous layer's fwd/bwd halves consumed via split weights
            # (avoids any in-kernel concat of the bidirectional output).
            gin = (jnp.dot(hf_ref[...].astype(jnp.bfloat16), wa_ref[...],
                           preferred_element_type=jnp.float32)
                   + jnp.dot(hb_ref[...].astype(jnp.bfloat16), wb_ref[...],
                             preferred_element_type=jnp.float32))
        gates_ref[...] = gin + b_ref[...]

        whh_blk = whh_ref[...]  # (2H, 8H) bf16 block-diag [whh_f 0; 0 whh_b]

        def step(i, carry):
            h_f, c_f, h_b, c_b = carry
            rf = pl.multiple_of(i * B, 8)            # forward  : time i
            rb = pl.multiple_of((T - 1 - i) * B, 8)  # backward : time T-1-i

            # Single fused recurrence matmul for both directions.
            h_cat = jnp.concatenate([h_f, h_b], axis=1).astype(jnp.bfloat16)
            rec = jnp.dot(h_cat, whh_blk, preferred_element_type=jnp.float32)

            g_f = gates_ref[pl.ds(rf, B), :4 * H] + rec[:, :4 * H]
            g_b = gates_ref[pl.ds(rb, B), 4 * H:] + rec[:, 4 * H:]

            # Gate order [i|f|o|g]: sigmoid over one contiguous 3H slice,
            # tanh over one H slice (per direction).
            sg_f = jax.nn.sigmoid(g_f[:, :3 * H])
            gg_f = jnp.tanh(g_f[:, 3 * H:])
            sg_b = jax.nn.sigmoid(g_b[:, :3 * H])
            gg_b = jnp.tanh(g_b[:, 3 * H:])

            c_f = sg_f[:, H:2 * H] * c_f + sg_f[:, :H] * gg_f
            c_b = sg_b[:, H:2 * H] * c_b + sg_b[:, :H] * gg_b
            h_f = sg_f[:, 2 * H:] * jnp.tanh(c_f)
            h_b = sg_b[:, 2 * H:] * jnp.tanh(c_b)

            hf_ref[pl.ds(rf, B), :] = h_f
            hb_ref[pl.ds(rb, B), :] = h_b
            return (h_f, c_f, h_b, c_b)

        z = jnp.zeros((B, H), jnp.float32)
        lax.fori_loop(0, T, step, (z, z, z, z), unroll=unroll)

    # ---- fused key/value projection epilogue ([key | value] lanes) ----
    kv = (jnp.dot(hf_ref[...].astype(jnp.bfloat16), kvw_f_ref[...],
                  preferred_element_type=jnp.float32)
          + jnp.dot(hb_ref[...].astype(jnp.bfloat16), kvw_b_ref[...],
                    preferred_element_type=jnp.float32)
          + kv_b_ref[...])
    out_ref[...] = kv


_VMEM = pl.BlockSpec(memory_space=pltpu.MemorySpace.VMEM)


def _reorder_gates(w, H):
    """PyTorch gate order [i|f|g|o] -> kernel order [i|f|o|g] (last axis)."""
    return jnp.concatenate(
        [w[..., :2 * H], w[..., 3 * H:4 * H], w[..., 2 * H:3 * H]], axis=-1)


def _block_diag(wf, wb, H):
    """(H,4H),(H,4H) -> (2H,8H) block diagonal [[wf,0],[0,wb]]."""
    z = jnp.zeros((H, 4 * H), jnp.float32)
    top = jnp.concatenate([wf, z], axis=1)
    bot = jnp.concatenate([z, wb], axis=1)
    return jnp.concatenate([top, bot], axis=0)


# ----------------------------------------------------------------------------
# Encoder forward (glue in plain JAX, everything else in one Pallas call)
# ----------------------------------------------------------------------------
def encoder_forward(params, zxs, series_ids, *, predict_start):
    B = zxs.shape[0]
    T = predict_start
    H = params["lstm0"]["whh_f"].shape[0]
    KV = params["key_w"].shape[1]
    num_layers = 1 + len(params["lstms"])

    zxs = zxs[:, :T, :].astype(jnp.float32)
    idx_embed = params["embedding"][series_ids]                       # (B, E)
    E = idx_embed.shape[-1]
    embed_rep = jnp.broadcast_to(idx_embed[:, None, :], (B, T, E))
    lstm_input = jnp.concatenate([zxs, embed_rep], axis=2)            # (B, T, D)

    # Pad the batch to a sublane multiple (8) so every per-step tile is
    # sublane-aligned and rf = i*Bp is a provable multiple of 8.
    Bp = max(8, ((B + 7) // 8) * 8)
    x_tbd = jnp.transpose(lstm_input, (1, 0, 2))                      # (T, B, D)
    if Bp != B:
        x_tbd = jnp.pad(x_tbd, ((0, 0), (0, Bp - B), (0, 0)))
    x_rows = x_tbd.reshape(T * Bp, -1).astype(jnp.bfloat16)           # (T*Bp, D)

    # TODO(synk): FrequencyMasking(8) (train-mode spec-augment) and
    # LockedDropout are train-only; this is the eval-mode path.

    reord = functools.partial(_reorder_gates, H=H)

    args = [x_rows]
    lp0 = params["lstm0"]
    args += [
        jnp.concatenate([reord(lp0["wih_f"]), reord(lp0["wih_b"])],
                        axis=1).astype(jnp.bfloat16),                 # (D, 8H)
        _block_diag(reord(lp0["whh_f"]), reord(lp0["whh_b"]),
                    H).astype(jnp.bfloat16),                          # (2H, 8H)
        jnp.concatenate([reord(lp0["b_f"]), reord(lp0["b_b"])], axis=1),  # f32
    ]
    for lp in params["lstms"]:
        wih = jnp.concatenate([reord(lp["wih_f"]), reord(lp["wih_b"])],
                              axis=1)                                 # (2H, 8H)
        args += [
            wih[:H].astype(jnp.bfloat16),        # consumes prev fwd half
            wih[H:].astype(jnp.bfloat16),        # consumes prev bwd half
            _block_diag(reord(lp["whh_f"]), reord(lp["whh_b"]),
                        H).astype(jnp.bfloat16),
            jnp.concatenate([reord(lp["b_f"]), reord(lp["b_b"])], axis=1),
        ]
    kv_w = jnp.concatenate([params["key_w"], params["val_w"]], axis=1)  # (2H, 2KV)
    kv_b = jnp.concatenate([params["key_b"], params["val_b"]], axis=1)  # (1, 2KV)
    args += [kv_w[:H].astype(jnp.bfloat16), kv_w[H:].astype(jnp.bfloat16), kv_b]

    # Generation-aware scoped-VMEM limit (v5e/v6e: 128 MiB physical,
    # v7x: 64 MiB).  Fallback keeps the previous safe behaviour.
    try:
        vmem_cap = int(pltpu.get_tpu_info().vmem_capacity_bytes)
    except Exception:
        vmem_cap = 64 * 1024 * 1024
    est_bytes = sum(int(a.size) * a.dtype.itemsize for a in args)
    est_bytes += 4 * (T * Bp) * (8 * H + 2 * H + 2 * KV)              # scratch+out
    vmem_limit = int(min(max(2 * est_bytes, 16 * 1024 * 1024),
                         (vmem_cap * 3) // 4))

    out = pl.pallas_call(
        functools.partial(_encoder_kernel, num_layers=num_layers,
                          hidden_dim=H, seq_len=T, batch=Bp),
        out_shape=jax.ShapeDtypeStruct((T * Bp, 2 * KV), jnp.float32),
        in_specs=[_VMEM] * len(args),
        out_specs=_VMEM,
        scratch_shapes=[pltpu.VMEM((T * Bp, 8 * H), jnp.float32),   # fused gates
                        pltpu.VMEM((T * Bp, H), jnp.float32),       # fwd hidden
                        pltpu.VMEM((T * Bp, H), jnp.float32)],      # bwd hidden
        compiler_params=pltpu.CompilerParams(vmem_limit_bytes=vmem_limit),
    )(*args)

    out_btk = jnp.transpose(out.reshape(T, Bp, 2 * KV)[:, :B], (1, 0, 2))
    key = out_btk[..., :KV]
    value = out_btk[..., KV:]
    return key, value, idx_embed


# ----------------------------------------------------------------------------
# Pure-JAX reference (for correctness check of the Pallas kernel)
# ----------------------------------------------------------------------------
def _mm(a, b, cast_dtype):
    if cast_dtype is not None:
        a = a.astype(cast_dtype)
        b = b.astype(cast_dtype)
    return jnp.dot(a, b, preferred_element_type=jnp.float32)


def _ref_lstm_dir(x_btd, wih, whh, b, reverse, cast_dtype):
    B, T, _ = x_btd.shape
    H = whh.shape[0]
    xs = jnp.transpose(x_btd, (1, 0, 2))
    if reverse:
        xs = xs[::-1]

    def step(carry, x_t):
        h, c = carry
        g = _mm(x_t, wih, cast_dtype) + _mm(h, whh, cast_dtype) + b
        i = jax.nn.sigmoid(g[:, :H])
        f = jax.nn.sigmoid(g[:, H:2 * H])
        gg = jnp.tanh(g[:, 2 * H:3 * H])
        o = jax.nn.sigmoid(g[:, 3 * H:])
        c = f * c + i * gg
        h = o * jnp.tanh(c)
        return (h, c), h

    init = (jnp.zeros((B, H), jnp.float32), jnp.zeros((B, H), jnp.float32))
    _, hs = lax.scan(step, init, xs)
    if reverse:
        hs = hs[::-1]
    return jnp.transpose(hs, (1, 0, 2))


def _ref_bilstm(x_btd, lp, cast_dtype):
    f = _ref_lstm_dir(x_btd, lp["wih_f"], lp["whh_f"], lp["b_f"], False,
                      cast_dtype)
    b = _ref_lstm_dir(x_btd, lp["wih_b"], lp["whh_b"], lp["b_b"], True,
                      cast_dtype)
    return jnp.concatenate([f, b], axis=-1)


def _ref_encoder(params, zxs, series_ids, *, predict_start, cast_dtype=None):
    B = zxs.shape[0]
    T = predict_start
    zxs = zxs[:, :T, :]
    idx_embed = params["embedding"][series_ids]
    embed_rep = jnp.broadcast_to(idx_embed[:, None, :],
                                 (B, T, idx_embed.shape[-1]))
    x = jnp.concatenate([zxs, embed_rep], axis=2)
    out = _ref_bilstm(x, params["lstm0"], cast_dtype)
    for lp in params["lstms"]:
        out = _ref_bilstm(out, lp, cast_dtype)
    flat = out.reshape(B * T, -1)
    key = (_mm(flat, params["key_w"], cast_dtype)
           + params["key_b"]).reshape(B, T, -1)
    value = (_mm(flat, params["val_w"], cast_dtype)
             + params["val_b"]).reshape(B, T, -1)
    return key, value, idx_embed


# ----------------------------------------------------------------------------
# Deterministic parameter construction
# ----------------------------------------------------------------------------
def _make_lstm_dir(key, input_dim, hidden_dim):
    k = 1.0 / jnp.sqrt(jnp.float32(hidden_dim))
    k1, k2, k3, k4 = jax.random.split(key, 4)
    wih = jax.random.uniform(k1, (input_dim, 4 * hidden_dim), jnp.float32, -k, k)
    whh = jax.random.uniform(k2, (hidden_dim, 4 * hidden_dim), jnp.float32, -k, k)
    b_ih = jax.random.uniform(k3, (4 * hidden_dim,), jnp.float32, -k, k)
    b_hh = jax.random.uniform(k4, (4 * hidden_dim,), jnp.float32, -k, k)
    return wih, whh, (b_ih + b_hh)[None, :]


def _make_bilstm(key, input_dim, hidden_dim):
    kf, kb = jax.random.split(key)
    wih_f, whh_f, b_f = _make_lstm_dir(kf, input_dim, hidden_dim)
    wih_b, whh_b, b_b = _make_lstm_dir(kb, input_dim, hidden_dim)
    return dict(wih_f=wih_f, whh_f=whh_f, b_f=b_f,
                wih_b=wih_b, whh_b=whh_b, b_b=b_b)


def make_params(key, *, num_classes, embed_dim, cov_dim,
                hidden_dim, lstm_layers, key_value_size):
    keys = jax.random.split(key, 6 + lstm_layers)
    d_in = 1 + cov_dim + embed_dim
    linear_dim = 2 * hidden_dim
    kl = 1.0 / jnp.sqrt(jnp.float32(linear_dim))
    params = {
        "embedding": jax.random.normal(keys[0], (num_classes, embed_dim),
                                       jnp.float32),
        "lstm0": _make_bilstm(keys[1], d_in, hidden_dim),
        "lstms": [_make_bilstm(keys[2 + i], linear_dim, hidden_dim)
                  for i in range(lstm_layers - 1)],
        "key_w": jax.random.uniform(keys[-4], (linear_dim, key_value_size),
                                    jnp.float32, -kl, kl),
        "key_b": jax.random.uniform(keys[-3], (1, key_value_size),
                                    jnp.float32, -kl, kl),
        "val_w": jax.random.uniform(keys[-2], (linear_dim, key_value_size),
                                    jnp.float32, -kl, kl),
        "val_b": jax.random.uniform(keys[-1], (1, key_value_size),
                                    jnp.float32, -kl, kl),
    }
    return params


# ----------------------------------------------------------------------------
if __name__ == "__main__":
    # Small, deterministic configuration (mirrors `params` of the module).
    B = 2
    T_TOTAL = 10
    PREDICT_START = 8          # T used by the encoder
    COV_DIM = 3
    EMBED_DIM = 4              # cluster_embedding_dim
    HIDDEN = 32                # lstm_hidden_dim  (4H = 128 -> lane aligned)
    LSTM_LAYERS = 2            # initial_lstm + 1 LSTM_with_dropout
    KV_SIZE = 16               # key_value_size
    NUM_CLASSES = 5

    root = jax.random.PRNGKey(0)
    kp, kz, ki = jax.random.split(root, 3)

    params = make_params(kp, num_classes=NUM_CLASSES, embed_dim=EMBED_DIM,
                         cov_dim=COV_DIM, hidden_dim=HIDDEN,
                         lstm_layers=LSTM_LAYERS, key_value_size=KV_SIZE)

    zxs = jax.random.normal(kz, (B, T_TOTAL, 1 + COV_DIM), jnp.float32)
    series_ids = jax.random.randint(ki, (B,), 0, NUM_CLASSES, jnp.int32)

    fwd = jax.jit(functools.partial(encoder_forward,
                                    predict_start=PREDICT_START))
    key_out, value_out, idx_embed = fwd(params, zxs, series_ids)
    jax.block_until_ready((key_out, value_out, idx_embed))

    assert key_out.shape == (B, PREDICT_START, KV_SIZE)
    assert value_out.shape == (B, PREDICT_START, KV_SIZE)
    assert idx_embed.shape == (B, EMBED_DIM)

    # Strict check against a reference using the SAME matmul precision
    # (bf16 operands, f32 accumulation) -> differences are accumulation order.
    rk, rv, re = _ref_encoder(params, zxs, series_ids,
                              predict_start=PREDICT_START,
                              cast_dtype=jnp.bfloat16)
    assert jnp.allclose(idx_embed, re, rtol=1e-6, atol=1e-6)
    assert jnp.allclose(key_out, rk, rtol=2e-3, atol=2e-3)
    assert jnp.allclose(value_out, rv, rtol=2e-3, atol=2e-3)

    # Loose sanity check against the full-f32 reference (bounds bf16 drift).
    rk32, rv32, _ = _ref_encoder(params, zxs, series_ids,
                                 predict_start=PREDICT_START, cast_dtype=None)
    assert jnp.allclose(key_out, rk32, rtol=6e-2, atol=6e-2)
    assert jnp.allclose(value_out, rv32, rtol=6e-2, atol=6e-2)

    print("KERNEL_OK")
</pallas_src>

<mosaic_0001>
module attributes {stable_mosaic.version = 11 : i64} {
  func.func @_encoder_kernel(%arg0: memref<64x8xbf16, #tpu.memory_space<vmem>>, %arg1: memref<8x256xbf16, #tpu.memory_space<vmem>>, %arg2: memref<64x256xbf16, #tpu.memory_space<vmem>>, %arg3: memref<1x256xf32, #tpu.memory_space<vmem>>, %arg4: memref<32x256xbf16, #tpu.memory_space<vmem>>, %arg5: memref<32x256xbf16, #tpu.memory_space<vmem>>, %arg6: memref<64x256xbf16, #tpu.memory_space<vmem>>, %arg7: memref<1x256xf32, #tpu.memory_space<vmem>>, %arg8: memref<32x32xbf16, #tpu.memory_space<vmem>>, %arg9: memref<32x32xbf16, #tpu.memory_space<vmem>>, %arg10: memref<1x32xf32, #tpu.memory_space<vmem>>, %arg11: memref<64x32xf32, #tpu.memory_space<vmem>>, %arg12: memref<64x256xf32, #tpu.memory_space<vmem>>, %arg13: memref<64x32xf32, #tpu.memory_space<vmem>>, %arg14: memref<64x32xf32, #tpu.memory_space<vmem>>) attributes {dimension_semantics = [], scalar_prefetch = 0 : i64, scratch_operands = 3 : i64, tpu.core_type = #tpu.core_type<tc>} {
    %c0 = arith.constant 0 : index
    %c0_0 = arith.constant 0 : index
    %0 = vector.load %arg0[%c0, %c0_0] : memref<64x8xbf16, #tpu.memory_space<vmem>>, vector<64x8xbf16>
    %c0_1 = arith.constant 0 : index
    %c0_2 = arith.constant 0 : index
    %1 = vector.load %arg1[%c0_1, %c0_2] : memref<8x256xbf16, #tpu.memory_space<vmem>>, vector<8x256xbf16>
    %cst = arith.constant dense<0.000000e+00> : vector<64x256xf32>
    %2 = tpu.matmul %0, %1, %cst {dimension_numbers = #tpu.dot_dimension_numbers<[1], [0], [0], [1], [0, 0, 1, 1], [], []>} : vector<64x8xbf16>, vector<8x256xbf16>, vector<64x256xf32> -> vector<64x256xf32>
    %c0_3 = arith.constant 0 : index
    %c0_4 = arith.constant 0 : index
    %3 = vector.load %arg3[%c0_3, %c0_4] : memref<1x256xf32, #tpu.memory_space<vmem>>, vector<1x256xf32>
    %4 = vector.broadcast %3 : vector<1x256xf32> to vector<64x256xf32>
    %5 = arith.addf %2, %4 : vector<64x256xf32>
    %c0_5 = arith.constant 0 : index
    %c0_6 = arith.constant 0 : index
    %6 = vector.load %arg12[%c0_5, %c0_6] : memref<64x256xf32, #tpu.memory_space<vmem>>, vector<64x256xf32>
    tpu.vector_store %arg12[%c0_5, %c0_6], %5 {strides = array<i32>} : memref<64x256xf32, #tpu.memory_space<vmem>>, vector<64x256xf32>,
    %c0_7 = arith.constant 0 : index
    %c0_8 = arith.constant 0 : index
    %7 = vector.load %arg2[%c0_7, %c0_8] : memref<64x256xbf16, #tpu.memory_space<vmem>>, vector<64x256xbf16>
    %cst_9 = arith.constant 0.000000e+00 : f32
    %8 = vector.broadcast %cst_9 : f32 to vector<8x32xf32>
    %c0_i32 = arith.constant 0 : i32
    %c8_i32 = arith.constant 8 : i32
    %9 = arith.muli %c0_i32, %c8_i32 : i32
    %10 = tpu.assume_multiple %9, 8 : i32
    %c7_i32 = arith.constant 7 : i32
    %11 = arith.subi %c7_i32, %c0_i32 : i32
    %c8_i32_10 = arith.constant 8 : i32
    %12 = arith.muli %11, %c8_i32_10 : i32
    %13 = tpu.assume_multiple %12, 8 : i32
    %14 = tpu.concatenate %8, %8 in 1 : vector<8x32xf32>, vector<8x32xf32> -> vector<8x64xf32>
    %15 = arith.truncf %14 : vector<8x64xf32> to vector<8x64xbf16>
    %cst_11 = arith.constant dense<0.000000e+00> : vector<8x256xf32>
    %16 = tpu.matmul %15, %7, %cst_11 {dimension_numbers = #tpu.dot_dimension_numbers<[1], [0], [0], [1], [0, 0, 1, 1], [], []>} : vector<8x64xbf16>, vector<64x256xbf16>, vector<8x256xf32> -> vector<8x256xf32>
    %17 = arith.index_cast %10 : i32 to index
    %c0_12 = arith.constant 0 : index
    %18 = vector.load %arg12[%17, %c0_12] : memref<64x256xf32, #tpu.memory_space<vmem>>, vector<8x128xf32>
    %19 = vector.extract_strided_slice %16 {offsets = [0, 0], sizes = [8, 128], strides = [1, 1]} : vector<8x256xf32> to vector<8x128xf32>
    %20 = arith.addf %18, %19 : vector<8x128xf32>
    %21 = arith.index_cast %13 : i32 to index
    %c128 = arith.constant 128 : index
    %22 = vector.load %arg12[%21, %c128] : memref<64x256xf32, #tpu.memory_space<vmem>>, vector<8x128xf32>
    %23 = vector.extract_strided_slice %16 {offsets = [0, 128], sizes = [8, 128], strides = [1, 1]} : vector<8x256xf32> to vector<8x128xf32>
    %24 = arith.addf %22, %23 : vector<8x128xf32>
    %25 = vector.extract_strided_slice %20 {offsets = [0, 0], sizes = [8, 96], strides = [1, 1]} : vector<8x128xf32> to vector<8x96xf32>
    %26 = arith.negf %25 : vector<8x96xf32>
    %27 = math.exp %26 : vector<8x96xf32>
    %cst_13 = arith.constant 1.000000e+00 : f32
    %28 = vector.broadcast %cst_13 : f32 to vector<8x96xf32>
    %29 = arith.addf %28, %27 : vector<8x96xf32>
    %30 = arith.divf %28, %29 : vector<8x96xf32>
    %31 = vector.extract_strided_slice %20 {offsets = [0, 96], sizes = [8, 32], strides = [1, 1]} : vector<8x128xf32> to vector<8x32xf32>
    %32 = math.tanh %31 : vector<8x32xf32>
    %33 = vector.extract_strided_slice %24 {offsets = [0, 0], sizes = [8, 96], strides = [1, 1]} : vector<8x128xf32> to vector<8x96xf32>
    %34 = arith.negf %33 : vector<8x96xf32>
    %35 = math.exp %34 : vector<8x96xf32>
    %cst_14 = arith.constant 1.000000e+00 : f32
    %36 = vector.broadcast %cst_14 : f32 to vector<8x96xf32>
    %37 = arith.addf %36, %35 : vector<8x96xf32>
    %38 = arith.divf %36, %37 : vector<8x96xf32>
    %39 = vector.extract_strided_slice %24 {offsets = [0, 96], sizes = [8, 32], strides = [1, 1]} : vector<8x128xf32> to vector<8x32xf32>
    %40 = math.tanh %39 : vector<8x32xf32>
    %41 = vector.extract_strided_slice %30 {offsets = [0, 32], sizes = [8, 32], strides = [1, 1]} : vector<8x96xf32> to vector<8x32xf32>
    %42 = arith.mulf %41, %8 : vector<8x32xf32>
    %43 = vector.extract_strided_slice %30 {offsets = [0, 0], sizes = [8, 32], strides = [1, 1]} : vector<8x96xf32> to vector<8x32xf32>
    %44 = arith.mulf %43, %32 : vector<8x32xf32>
    %45 = arith.addf %42, %44 : vector<8x32xf32>
    %46 = vector.extract_strided_slice %38 {offsets = [0, 32], sizes = [8, 32], strides = [1, 1]} : vector<8x96xf32> to vector<8x32xf32>
    %47 = arith.mulf %46, %8 : vector<8x32xf32>
    %48 = vector.extract_strided_slice %38 {offsets = [0, 0], sizes = [8, 32], strides = [1, 1]} : vector<8x96xf32> to vector<8x32xf32>
    %49 = arith.mulf %48, %40 : vector<8x32xf32>
    %50 = arith.addf %47, %49 : vector<8x32xf32>
    %51 = vector.extract_strided_slice %30 {offsets = [0, 64], sizes = [8, 32], strides = [1, 1]} : vector<8x96xf32> to vector<8x32xf32>
    %52 = math.tanh %45 : vector<8x32xf32>
    %53 = arith.mulf %51, %52 : vector<8x32xf32>
    %54 = vector.extract_strided_slice %38 {offsets = [0, 64], sizes = [8, 32], strides = [1, 1]} : vector<8x96xf32> to vector<8x32xf32>
    %55 = math.tanh %50 : vector<8x32xf32>
    %56 = arith.mulf %54, %55 : vector<8x32xf32>
    %57 = arith.index_cast %10 : i32 to index
    %c0_15 = arith.constant 0 : index
    %58 = vector.load %arg13[%57, %c0_15] : memref<64x32xf32, #tpu.memory_space<vmem>>, vector<8x32xf32>
    tpu.vector_store %arg13[%57, %c0_15], %53 {strides = array<i32>} : memref<64x32xf32, #tpu.memory_space<vmem>>, vector<8x32xf32>,
    %59 = arith.index_cast %13 : i32 to index
    %c0_16 = arith.constant 0 : index
    %60 = vector.load %arg14[%59, %c0_16] : memref<64x32xf32, #tpu.memory_space<vmem>>, vector<8x32xf32>
    tpu.vector_store %arg14[%59, %c0_16], %56 {strides = array<i32>} : memref<64x32xf32, #tpu.memory_space<vmem>>, vector<8x32xf32>,
    %c1_i32 = arith.constant 1 : i32
    %c8_i32_17 = arith.constant 8 : i32
    %61 = arith.muli %c1_i32, %c8_i32_17 : i32
    %62 = tpu.assume_multiple %61, 8 : i32
    %c7_i32_18 = arith.constant 7 : i32
    %63 = arith.subi %c7_i32_18, %c1_i32 : i32
    %c8_i32_19 = arith.constant 8 : i32
    %64 = arith.muli %63, %c8_i32_19 : i32
    %65 = tpu.assume_multiple %64, 8 : i32
    %66 = tpu.concatenate %53, %56 in 1 : vector<8x32xf32>, vector<8x32xf32> -> vector<8x64xf32>
    %67 = arith.truncf %66 : vector<8x64xf32> to vector<8x64xbf16>
    %cst_20 = arith.constant dense<0.000000e+00> : vector<8x256xf32>
    %68 = tpu.matmul %67, %7, %cst_20 {dimension_numbers = #tpu.dot_dimension_numbers<[1], [0], [0], [1], [0, 0, 1, 1], [], []>} : vector<8x64xbf16>, vector<64x256xbf16>, vector<8x256xf32> -> vector<8x256xf32>
    %69 = arith.index_cast %62 : i32 to index
    %c0_21 = arith.constant 0 : index
    %70 = vector.load %arg12[%69, %c0_21] : memref<64x256xf32, #tpu.memory_space<vmem>>, vector<8x128xf32>
    %71 = vector.extract_strided_slice %68 {offsets = [0, 0], sizes = [8, 128], strides = [1, 1]} : vector<8x256xf32> to vector<8x128xf32>
    %72 = arith.addf %70, %71 : vector<8x128xf32>
    %73 = arith.index_cast %65 : i32 to index
    %c128_22 = arith.constant 128 : index
    %74 = vector.load %arg12[%73, %c128_22] : memref<64x256xf32, #tpu.memory_space<vmem>>, vector<8x128xf32>
    %75 = vector.extract_strided_slice %68 {offsets = [0, 128], sizes = [8, 128], strides = [1, 1]} : vector<8x256xf32> to vector<8x128xf32>
    %76 = arith.addf %74, %75 : vector<8x128xf32>
    %77 = vector.extract_strided_slice %72 {offsets = [0, 0], sizes = [8, 96], strides = [1, 1]} : vector<8x128xf32> to vector<8x96xf32>
    %78 = arith.negf %77 : vector<8x96xf32>
    %79 = math.exp %78 : vector<8x96xf32>
    %cst_23 = arith.constant 1.000000e+00 : f32
    %80 = vector.broadcast %cst_23 : f32 to vector<8x96xf32>
    %81 = arith.addf %80, %79 : vector<8x96xf32>
    %82 = arith.divf %80, %81 : vector<8x96xf32>
    %83 = vector.extract_strided_slice %72 {offsets = [0, 96], sizes = [8, 32], strides = [1, 1]} : vector<8x128xf32> to vector<8x32xf32>
    %84 = math.tanh %83 : vector<8x32xf32>
    %85 = vector.extract_strided_slice %76 {offsets = [0, 0], sizes = [8, 96], strides = [1, 1]} : vector<8x128xf32> to vector<8x96xf32>
    %86 = arith.negf %85 : vector<8x96xf32>
    %87 = math.exp %86 : vector<8x96xf32>
    %cst_24 = arith.constant 1.000000e+00 : f32
    %88 = vector.broadcast %cst_24 : f32 to vector<8x96xf32>
    %89 = arith.addf %88, %87 : vector<8x96xf32>
    %90 = arith.divf %88, %89 : vector<8x96xf32>
    %91 = vector.extract_strided_slice %76 {offsets = [0, 96], sizes = [8, 32], strides = [1, 1]} : vector<8x128xf32> to vector<8x32xf32>
    %92 = math.tanh %91 : vector<8x32xf32>
    %93 = vector.extract_strided_slice %82 {offsets = [0, 32], sizes = [8, 32], strides = [1, 1]} : vector<8x96xf32> to vector<8x32xf32>
    %94 = arith.mulf %93, %45 : vector<8x32xf32>
    %95 = vector.extract_strided_slice %82 {offsets = [0, 0], sizes = [8, 32], strides = [1, 1]} : vector<8x96xf32> to vector<8x32xf32>
    %96 = arith.mulf %95, %84 : vector<8x32xf32>
    %97 = arith.addf %94, %96 : vector<8x32xf32>
    %98 = vector.extract_strided_slice %90 {offsets = [0, 32], sizes = [8, 32], strides = [1, 1]} : vector<8x96xf32> to vector<8x32xf32>
    %99 = arith.mulf %98, %50 : vector<8x32xf32>
    %100 = vector.extract_strided_slice %90 {offsets = [0, 0], sizes = [8, 32], strides = [1, 1]} : vector<8x96xf32> to vector<8x32xf32>
    %101 = arith.mulf %100, %92 : vector<8x32xf32>
    %102 = arith.addf %99, %101 : vector<8x32xf32>
    %103 = vector.extract_strided_slice %82 {offsets = [0, 64], sizes = [8, 32], strides = [1, 1]} : vector<8x96xf32> to vector<8x32xf32>
    %104 = math.tanh %97 : vector<8x32xf32>
    %105 = arith.mulf %103, %104 : vector<8x32xf32>
    %106 = vector.extract_strided_slice %90 {offsets = [0, 64], sizes = [8, 32], strides = [1, 1]} : vector<8x96xf32> to vector<8x32xf32>
    %107 = math.tanh %102 : vector<8x32xf32>
    %108 = arith.mulf %106, %107 : vector<8x32xf32>
    %109 = arith.index_cast %62 : i32 to index
    %c0_25 = arith.constant 0 : index
    %110 = vector.load %arg13[%109, %c0_25] : memref<64x32xf32, #tpu.memory_space<vmem>>, vector<8x32xf32>
    tpu.vector_store %arg13[%109, %c0_25], %105 {strides = array<i32>} : memref<64x32xf32, #tpu.memory_space<vmem>>, vector<8x32xf32>,
    %111 = arith.index_cast %65 : i32 to index
    %c0_26 = arith.constant 0 : index
    %112 = vector.load %arg14[%111, %c0_26] : memref<64x32xf32, #tpu.memory_space<vmem>>, vector<8x32xf32>
    tpu.vector_store %arg14[%111, %c0_26], %108 {strides = array<i32>} : memref<64x32xf32, #tpu.memory_space<vmem>>, vector<8x32xf32>,
    %c2_i32 = arith.constant 2 : i32
    %c8_i32_27 = arith.constant 8 : i32
    %113 = arith.muli %c2_i32, %c8_i32_27 : i32
    %114 = tpu.assume_multiple %113, 8 : i32
    %c7_i32_28 = arith.constant 7 : i32
    %115 = arith.subi %c7_i32_28, %c2_i32 : i32
    %c8_i32_29 = arith.constant 8 : i32
    %116 = arith.muli %115, %c8_i32_29 : i32
    %117 = tpu.assume_multiple %116, 8 : i32
    %118 = tpu.concatenate %105, %108 in 1 : vector<8x32xf32>, vector<8x32xf32> -> vector<8x64xf32>
    %119 = arith.truncf %118 : vector<8x64xf32> to vector<8x64xbf16>
    %cst_30 = arith.constant dense<0.000000e+00> : vector<8x256xf32>
    %120 = tpu.matmul %119, %7, %cst_30 {dimension_numbers = #tpu.dot_dimension_numbers<[1], [0], [0], [1], [0, 0, 1, 1], [], []>} : vector<8x64xbf16>, vector<64x256xbf16>, vector<8x256xf32> -> vector<8x256xf32>
    %121 = arith.index_cast %114 : i32 to index
    %c0_31 = arith.constant 0 : index
    %122 = vector.load %arg12[%121, %c0_31] : memref<64x256xf32, #tpu.memory_space<vmem>>, vector<8x128xf32>
    %123 = vector.extract_strided_slice %120 {offsets = [0, 0], sizes = [8, 128], strides = [1, 1]} : vector<8x256xf32> to vector<8x128xf32>
    %124 = arith.addf %122, %123 : vector<8x128xf32>
    %125 = arith.index_cast %117 : i32 to index
    %c128_32 = arith.constant 128 : index
    %126 = vector.load %arg12[%125, %c128_32] : memref<64x256xf32, #tpu.memory_space<vmem>>, vector<8x128xf32>
    %127 = vector.extract_strided_slice %120 {offsets = [0, 128], sizes = [8, 128], strides = [1, 1]} : vector<8x256xf32> to vector<8x128xf32>
    %128 = arith.addf %126, %127 : vector<8x128xf32>
    %129 = vector.extract_strided_slice %124 {offsets = [0, 0], sizes = [8, 96], strides = [1, 1]} : vector<8x128xf32> to vector<8x96xf32>
    %130 = arith.negf %129 : vector<8x96xf32>
    %131 = math.exp %130 : vector<8x96xf32>
    %cst_33 = arith.constant 1.000000e+00 : f32
    %132 = vector.broadcast %cst_33 : f32 to vector<8x96xf32>
    %133 = arith.addf %132, %131 : vector<8x96xf32>
    %134 = arith.divf %132, %133 : vector<8x96xf32>
    %135 = vector.extract_strided_slice %124 {offsets = [0, 96], sizes = [8, 32], strides = [1, 1]} : vector<8x128xf32> to vector<8x32xf32>
    %136 = math.tanh %135 : vector<8x32xf32>
    %137 = vector.extract_strided_slice %128 {offsets = [0, 0], sizes = [8, 96], strides = [1, 1]} : vector<8x128xf32> to vector<8x96xf32>
    %138 = arith.negf %137 : vector<8x96xf32>
    %139 = math.exp %138 : vector<8x96xf32>
    %cst_34 = arith.constant 1.000000e+00 : f32
    %140 = vector.broadcast %cst_34 : f32 to vector<8x96xf32>
    %141 = arith.addf %140, %139 : vector<8x96xf32>
    %142 = arith.divf %140, %141 : vector<8x96xf32>
    %143 = vector.extract_strided_slice %128 {offsets = [0, 96], sizes = [8, 32], strides = [1, 1]} : vector<8x128xf32> to vector<8x32xf32>
    %144 = math.tanh %143 : vector<8x32xf32>
    %145 = vector.extract_strided_slice %134 {offsets = [0, 32], sizes = [8, 32], strides = [1, 1]} : vector<8x96xf32> to vector<8x32xf32>
    %146 = arith.mulf %145, %97 : vector<8x32xf32>
    %147 = vector.extract_strided_slice %134 {offsets = [0, 0], sizes = [8, 32], strides = [1, 1]} : vector<8x96xf32> to vector<8x32xf32>
    %148 = arith.mulf %147, %136 : vector<8x32xf32>
    %149 = arith.addf %146, %148 : vector<8x32xf32>
    %150 = vector.extract_strided_slice %142 {offsets = [0, 32], sizes = [8, 32], strides = [1, 1]} : vector<8x96xf32> to vector<8x32xf32>
    %151 = arith.mulf %150, %102 : vector<8x32xf32>
    %152 = vector.extract_strided_slice %142 {offsets = [0, 0], sizes = [8, 32], strides = [1, 1]} : vector<8x96xf32> to vector<8x32xf32>
    %153 = arith.mulf %152, %144 : vector<8x32xf32>
    %154 = arith.addf %151, %153 : vector<8x32xf32>
    %155 = vector.extract_strided_slice %134 {offsets = [0, 64], sizes = [8, 32], strides = [1, 1]} : vector<8x96xf32> to vector<8x32xf32>
    %156 = math.tanh %149 : vector<8x32xf32>
    %157 = arith.mulf %155, %156 : vector<8x32xf32>
    %158 = vector.extract_strided_slice %142 {offsets = [0, 64], sizes = [8, 32], strides = [1, 1]} : vector<8x96xf32> to vector<8x32xf32>
    %159 = math.tanh %154 : vector<8x32xf32>
    %160 = arith.mulf %158, %159 : vector<8x32xf32>
    %161 = arith.index_cast %114 : i32 to index
    %c0_35 = arith.constant 0 : index
    %162 = vector.load %arg13[%161, %c0_35] : memref<64x32xf32, #tpu.memory_space<vmem>>, vector<8x32xf32>
    tpu.vector_store %arg13[%161, %c0_35], %157 {strides = array<i32>} : memref<64x32xf32, #tpu.memory_space<vmem>>, vector<8x32xf32>,
    %163 = arith.index_cast %117 : i32 to index
    %c0_36 = arith.constant 0 : index
    %164 = vector.load %arg14[%163, %c0_36] : memref<64x32xf32, #tpu.memory_space<vmem>>, vector<8x32xf32>
    tpu.vector_store %arg14[%163, %c0_36], %160 {strides = array<i32>} : memref<64x32xf32, #tpu.memory_space<vmem>>, vector<8x32xf32>,
    %c3_i32 = arith.constant 3 : i32
    %c8_i32_37 = arith.constant 8 : i32
    %165 = arith.muli %c3_i32, %c8_i32_37 : i32
    %166 = tpu.assume_multiple %165, 8 : i32
    %c7_i32_38 = arith.constant 7 : i32
    %167 = arith.subi %c7_i32_38, %c3_i32 : i32
    %c8_i32_39 = arith.constant 8 : i32
    %168 = arith.muli %167, %c8_i32_39 : i32
    %169 = tpu.assume_multiple %168, 8 : i32
    %170 = tpu.concatenate %157, %160 in 1 : vector<8x32xf32>, vector<8x32xf32> -> vector<8x64xf32>
    %171 = arith.truncf %170 : vector<8x64xf32> to vector<8x64xbf16>
    %cst_40 = arith.constant dense<0.000000e+00> : vector<8x256xf32>
    %172 = tpu.matmul %171, %7, %cst_40 {dimension_numbers = #tpu.dot_dimension_numbers<[1], [0], [0], [1], [0, 0, 1, 1], [], []>} : vector<8x64xbf16>, vector<64x256xbf16>, vector<8x256xf32> -> vector<8x256xf32>
    %173 = arith.index_cast %166 : i32 to index
    %c0_41 = arith.constant 0 : index
    %174 = vector.load %arg12[%173, %c0_41] : memref<64x256xf32, #tpu.memory_space<vmem>>, vector<8x128xf32>
    %175 = vector.extract_strided_slice %172 {offsets = [0, 0], sizes = [8, 128], strides = [1, 1]} : vector<8x256xf32> to vector<8x128xf32>
    %176 = arith.addf %174, %175 : vector<8x128xf32>
    %177 = arith.index_cast %169 : i32 to index
    %c128_42 = arith.constant 128 : index
    %178 = vector.load %arg12[%177, %c128_42] : memref<64x256xf32, #tpu.memory_space<vmem>>, vector<8x128xf32>
    %179 = vector.extract_strided_slice %172 {offsets = [0, 128], sizes = [8, 128], strides = [1, 1]} : vector<8x256xf32> to vector<8x128xf32>
    %180 = arith.addf %178, %179 : vector<8x128xf32>
    %181 = vector.extract_strided_slice %176 {offsets = [0, 0], sizes = [8, 96], strides = [1, 1]} : vector<8x128xf32> to vector<8x96xf32>
    %182 = arith.negf %181 : vector<8x96xf32>
    %183 = math.exp %182 : vector<8x96xf32>
    %cst_43 = arith.constant 1.000000e+00 : f32
    %184 = vector.broadcast %cst_43 : f32 to vector<8x96xf32>
    %185 = arith.addf %184, %183 : vector<8x96xf32>
    %186 = arith.divf %184, %185 : vector<8x96xf32>
    %187 = vector.extract_strided_slice %176 {offsets = [0, 96], sizes = [8, 32], strides = [1, 1]} : vector<8x128xf32> to vector<8x32xf32>
    %188 = math.tanh %187 : vector<8x32xf32>
    %189 = vector.extract_strided_slice %180 {offsets = [0, 0], sizes = [8, 96], strides = [1, 1]} : vector<8x128xf32> to vector<8x96xf32>
    %190 = arith.negf %189 : vector<8x96xf32>
    %191 = math.exp %190 : vector<8x96xf32>
    %cst_44 = arith.constant 1.000000e+00 : f32
    %192 = vector.broadcast %cst_44 : f32 to vector<8x96xf32>
    %193 = arith.addf %192, %191 : vector<8x96xf32>
    %194 = arith.divf %192, %193 : vector<8x96xf32>
    %195 = vector.extract_strided_slice %180 {offsets = [0, 96], sizes = [8, 32], strides = [1, 1]} : vector<8x128xf32> to vector<8x32xf32>
    %196 = math.tanh %195 : vector<8x32xf32>
    %197 = vector.extract_strided_slice %186 {offsets = [0, 32], sizes = [8, 32], strides = [1, 1]} : vector<8x96xf32> to vector<8x32xf32>
    %198 = arith.mulf %197, %149 : vector<8x32xf32>
    %199 = vector.extract_strided_slice %186 {offsets = [0, 0], sizes = [8, 32], strides = [1, 1]} : vector<8x96xf32> to vector<8x32xf32>
    %200 = arith.mulf %199, %188 : vector<8x32xf32>
    %201 = arith.addf %198, %200 : vector<8x32xf32>
    %202 = vector.extract_strided_slice %194 {offsets = [0, 32], sizes = [8, 32], strides = [1, 1]} : vector<8x96xf32> to vector<8x32xf32>
    %203 = arith.mulf %202, %154 : vector<8x32xf32>
    %204 = vector.extract_strided_slice %194 {offsets = [0, 0], sizes = [8, 32], strides = [1, 1]} : vector<8x96xf32> to vector<8x32xf32>
    %205 = arith.mulf %204, %196 : vector<8x32xf32>
    %206 = arith.addf %203, %205 : vector<8x32xf32>
    %207 = vector.extract_strided_slice %186 {offsets = [0, 64], sizes = [8, 32], strides = [1, 1]} : vector<8x96xf32> to vector<8x32xf32>
    %208 = math.tanh %201 : vector<8x32xf32>
    %209 = arith.mulf %207, %208 : vector<8x32xf32>
    %210 = vector.extract_strided_slice %194 {offsets = [0, 64], sizes = [8, 32], strides = [1, 1]} : vector<8x96xf32> to vector<8x32xf32>
    %211 = math.tanh %206 : vector<8x32xf32>
    %212 = arith.mulf %210, %211 : vector<8x32xf32>
    %213 = arith.index_cast %166 : i32 to index
    %c0_45 = arith.constant 0 : index
    %214 = vector.load %arg13[%213, %c0_45] : memref<64x32xf32, #tpu.memory_space<vmem>>, vector<8x32xf32>
    tpu.vector_store %arg13[%213, %c0_45], %209 {strides = array<i32>} : memref<64x32xf32, #tpu.memory_space<vmem>>, vector<8x32xf32>,
    %215 = arith.index_cast %169 : i32 to index
    %c0_46 = arith.constant 0 : index
    %216 = vector.load %arg14[%215, %c0_46] : memref<64x32xf32, #tpu.memory_space<vmem>>, vector<8x32xf32>
    tpu.vector_store %arg14[%215, %c0_46], %212 {strides = array<i32>} : memref<64x32xf32, #tpu.memory_space<vmem>>, vector<8x32xf32>,
    %c4_i32 = arith.constant 4 : i32
    %c8_i32_47 = arith.constant 8 : i32
    %217 = arith.muli %c4_i32, %c8_i32_47 : i32
    %218 = tpu.assume_multiple %217, 8 : i32
    %c7_i32_48 = arith.constant 7 : i32
    %219 = arith.subi %c7_i32_48, %c4_i32 : i32
    %c8_i32_49 = arith.constant 8 : i32
    %220 = arith.muli %219, %c8_i32_49 : i32
    %221 = tpu.assume_multiple %220, 8 : i32
    %222 = tpu.concatenate %209, %212 in 1 : vector<8x32xf32>, vector<8x32xf32> -> vector<8x64xf32>
    %223 = arith.truncf %222 : vector<8x64xf32> to vector<8x64xbf16>
    %cst_50 = arith.constant dense<0.000000e+00> : vector<8x256xf32>
    %224 = tpu.matmul %223, %7, %cst_50 {dimension_numbers = #tpu.dot_dimension_numbers<[1], [0], [0], [1], [0, 0, 1, 1], [], []>} : vector<8x64xbf16>, vector<64x256xbf16>, vector<8x256xf32> -> vector<8x256xf32>
    %225 = arith.index_cast %218 : i32 to index
    %c0_51 = arith.constant 0 : index
    %226 = vector.load %arg12[%225, %c0_51] : memref<64x256xf32, #tpu.memory_space<vmem>>, vector<8x128xf32>
    %227 = vector.extract_strided_slice %224 {offsets = [0, 0], sizes = [8, 128], strides = [1, 1]} : vector<8x256xf32> to vector<8x128xf32>
    %228 = arith.addf %226, %227 : vector<8x128xf32>
    %229 = arith.index_cast %221 : i32 to index
    %c128_52 = arith.constant 128 : index
    %230 = vector.load %arg12[%229, %c128_52] : memref<64x256xf32, #tpu.memory_space<vmem>>, vector<8x128xf32>
    %231 = vector.extract_strided_slice %224 {offsets = [0, 128], sizes = [8, 128], strides = [1, 1]} : vector<8x256xf32> to vector<8x128xf32>
    %232 = arith.addf %230, %231 : vector<8x128xf32>
    %233 = vector.extract_strided_slice %228 {offsets = [0, 0], sizes = [8, 96], strides = [1, 1]} : vector<8x128xf32> to vector<8x96xf32>
    %234 = arith.negf %233 : vector<8x96xf32>
    %235 = math.exp %234 : vector<8x96xf32>
    %cst_53 = arith.constant 1.000000e+00 : f32
    %236 = vector.broadcast %cst_53 : f32 to vector<8x96xf32>
    %237 = arith.addf %236, %235 : vector<8x96xf32>
    %238 = arith.divf %236, %237 : vector<8x96xf32>
    %239 = vector.extract_strided_slice %228 {offsets = [0, 96], sizes = [8, 32], strides = [1, 1]} : vector<8x128xf32> to vector<8x32xf32>
    %240 = math.tanh %239 : vector<8x32xf32>
    %241 = vector.extract_strided_slice %232 {offsets = [0, 0], sizes = [8, 96], strides = [1, 1]} : vector<8x128xf32> to vector<8x96xf32>
    %242 = arith.negf %241 : vector<8x96xf32>
    %243 = math.exp %242 : vector<8x96xf32>
    %cst_54 = arith.constant 1.000000e+00 : f32
    %244 = vector.broadcast %cst_54 : f32 to vector<8x96xf32>
    %245 = arith.addf %244, %243 : vector<8x96xf32>
    %246 = arith.divf %244, %245 : vector<8x96xf32>
    %247 = vector.extract_strided_slice %232 {offsets = [0, 96], sizes = [8, 32], strides = [1, 1]} : vector<8x128xf32> to vector<8x32xf32>
    %248 = math.tanh %247 : vector<8x32xf32>
    %249 = vector.extract_strided_slice %238 {offsets = [0, 32], sizes = [8, 32], strides = [1, 1]} : vector<8x96xf32> to vector<8x32xf32>
    %250 = arith.mulf %249, %201 : vector<8x32xf32>
    %251 = vector.extract_strided_slice %238 {offsets = [0, 0], sizes = [8, 32], strides = [1, 1]} : vector<8x96xf32> to vector<8x32xf32>
    %252 = arith.mulf %251, %240 : vector<8x32xf32>
    %253 = arith.addf %250, %252 : vector<8x32xf32>
    %254 = vector.extract_strided_slice %246 {offsets = [0, 32], sizes = [8, 32], strides = [1, 1]} : vector<8x96xf32> to vector<8x32xf32>
    %255 = arith.mulf %254, %206 : vector<8x32xf32>
    %256 = vector.extract_strided_slice %246 {offsets = [0, 0], sizes = [8, 32], strides = [1, 1]} : vector<8x96xf32> to vector<8x32xf32>
    %257 = arith.mulf %256, %248 : vector<8x32xf32>
    %258 = arith.addf %255, %257 : vector<8x32xf32>
    %259 = vector.extract_strided_slice %238 {offsets = [0, 64], sizes = [8, 32], strides = [1, 1]} : vector<8x96xf32> to vector<8x32xf32>
    %260 = math.tanh %253 : vector<8x32xf32>
    %261 = arith.mulf %259, %260 : vector<8x32xf32>
    %262 = vector.extract_strided_slice %246 {offsets = [0, 64], sizes = [8, 32], strides = [1, 1]} : vector<8x96xf32> to vector<8x32xf32>
    %263 = math.tanh %258 : vector<8x32xf32>
    %264 = arith.mulf %262, %263 : vector<8x32xf32>
    %265 = arith.index_cast %218 : i32 to index
    %c0_55 = arith.constant 0 : index
    %266 = vector.load %arg13[%265, %c0_55] : memref<64x32xf32, #tpu.memory_space<vmem>>, vector<8x32xf32>
    tpu.vector_store %arg13[%265, %c0_55], %261 {strides = array<i32>} : memref<64x32xf32, #tpu.memory_space<vmem>>, vector<8x32xf32>,
    %267 = arith.index_cast %221 : i32 to index
    %c0_56 = arith.constant 0 : index
    %268 = vector.load %arg14[%267, %c0_56] : memref<64x32xf32, #tpu.memory_space<vmem>>, vector<8x32xf32>
    tpu.vector_store %arg14[%267, %c0_56], %264 {strides = array<i32>} : memref<64x32xf32, #tpu.memory_space<vmem>>, vector<8x32xf32>,
    %c5_i32 = arith.constant 5 : i32
    %c8_i32_57 = arith.constant 8 : i32
    %269 = arith.muli %c5_i32, %c8_i32_57 : i32
    %270 = tpu.assume_multiple %269, 8 : i32
    %c7_i32_58 = arith.constant 7 : i32
    %271 = arith.subi %c7_i32_58, %c5_i32 : i32
    %c8_i32_59 = arith.constant 8 : i32
    %272 = arith.muli %271, %c8_i32_59 : i32
    %273 = tpu.assume_multiple %272, 8 : i32
    %274 = tpu.concatenate %261, %264 in 1 : vector<8x32xf32>, vector<8x32xf32> -> vector<8x64xf32>
    %275 = arith.truncf %274 : vector<8x64xf32> to vector<8x64xbf16>
    %cst_60 = arith.constant dense<0.000000e+00> : vector<8x256xf32>
    %276 = tpu.matmul %275, %7, %cst_60 {dimension_numbers = #tpu.dot_dimension_numbers<[1], [0], [0], [1], [0, 0, 1, 1], [], []>} : vector<8x64xbf16>, vector<64x256xbf16>, vector<8x256xf32> -> vector<8x256xf32>
    %277 = arith.index_cast %270 : i32 to index
    %c0_61 = arith.constant 0 : index
    %278 = vector.load %arg12[%277, %c0_61] : memref<64x256xf32, #tpu.memory_space<vmem>>, vector<8x128xf32>
    %279 = vector.extract_strided_slice %276 {offsets = [0, 0], sizes = [8, 128], strides = [1, 1]} : vector<8x256xf32> to vector<8x128xf32>
    %280 = arith.addf %278, %279 : vector<8x128xf32>
    %281 = arith.index_cast %273 : i32 to index
    %c128_62 = arith.constant 128 : index
    %282 = vector.load %arg12[%281, %c128_62] : memref<64x256xf32, #tpu.memory_space<vmem>>, vector<8x128xf32>
    %283 = vector.extract_strided_slice %276 {offsets = [0, 128], sizes = [8, 128], strides = [1, 1]} : vector<8x256xf32> to vector<8x128xf32>
    %284 = arith.addf %282, %283 : vector<8x128xf32>
    %285 = vector.extract_strided_slice %280 {offsets = [0, 0], sizes = [8, 96], strides = [1, 1]} : vector<8x128xf32> to vector<8x96xf32>
    %286 = arith.negf %285 : vector<8x96xf32>
    %287 = math.exp %286 : vector<8x96xf32>
    %cst_63 = arith.constant 1.000000e+00 : f32
    %288 = vector.broadcast %cst_63 : f32 to vector<8x96xf32>
    %289 = arith.addf %288, %287 : vector<8x96xf32>
    %290 = arith.divf %288, %289 : vector<8x96xf32>
    %291 = vector.extract_strided_slice %280 {offsets = [0, 96], sizes = [8, 32], strides = [1, 1]} : vector<8x128xf32> to vector<8x32xf32>
    %292 = math.tanh %291 : vector<8x32xf32>
    %293 = vector.extract_strided_slice %284 {offsets = [0, 0], sizes = [8, 96], strides = [1, 1]} : vector<8x128xf32> to vector<8x96xf32>
    %294 = arith.negf %293 : vector<8x96xf32>
    %295 = math.exp %294 : vector<8x96xf32>
    %cst_64 = arith.constant 1.000000e+00 : f32
    %296 = vector.broadcast %cst_64 : f32 to vector<8x96xf32>
    %297 = arith.addf %296, %295 : vector<8x96xf32>
    %298 = arith.divf %296, %297 : vector<8x96xf32>
    %299 = vector.extract_strided_slice %284 {offsets = [0, 96], sizes = [8, 32], strides = [1, 1]} : vector<8x128xf32> to vector<8x32xf32>
    %300 = math.tanh %299 : vector<8x32xf32>
    %301 = vector.extract_strided_slice %290 {offsets = [0, 32], sizes = [8, 32], strides = [1, 1]} : vector<8x96xf32> to vector<8x32xf32>
    %302 = arith.mulf %301, %253 : vector<8x32xf32>
    %303 = vector.extract_strided_slice %290 {offsets = [0, 0], sizes = [8, 32], strides = [1, 1]} : vector<8x96xf32> to vector<8x32xf32>
    %304 = arith.mulf %303, %292 : vector<8x32xf32>
    %305 = arith.addf %302, %304 : vector<8x32xf32>
    %306 = vector.extract_strided_slice %298 {offsets = [0, 32], sizes = [8, 32], strides = [1, 1]} : vector<8x96xf32> to vector<8x32xf32>
    %307 = arith.mulf %306, %258 : vector<8x32xf32>
    %308 = vector.extract_strided_slice %298 {offsets = [0, 0], sizes = [8, 32], strides = [1, 1]} : vector<8x96xf32> to vector<8x32xf32>
    %309 = arith.mulf %308, %300 : vector<8x32xf32>
    %310 = arith.addf %307, %309 : vector<8x32xf32>
    %311 = vector.extract_strided_slice %290 {offsets = [0, 64], sizes = [8, 32], strides = [1, 1]} : vector<8x96xf32> to vector<8x32xf32>
    %312 = math.tanh %305 : vector<8x32xf32>
    %313 = arith.mulf %311, %312 : vector<8x32xf32>
    %314 = vector.extract_strided_slice %298 {offsets = [0, 64], sizes = [8, 32], strides = [1, 1]} : vector<8x96xf32> to vector<8x32xf32>
    %315 = math.tanh %310 : vector<8x32xf32>
    %316 = arith.mulf %314, %315 : vector<8x32xf32>
    %317 = arith.index_cast %270 : i32 to index
    %c0_65 = arith.constant 0 : index
    %318 = vector.load %arg13[%317, %c0_65] : memref<64x32xf32, #tpu.memory_space<vmem>>, vector<8x32xf32>
    tpu.vector_store %arg13[%317, %c0_65], %313 {strides = array<i32>} : memref<64x32xf32, #tpu.memory_space<vmem>>, vector<8x32xf32>,
    %319 = arith.index_cast %273 : i32 to index
    %c0_66 = arith.constant 0 : index
    %320 = vector.load %arg14[%319, %c0_66] : memref<64x32xf32, #tpu.memory_space<vmem>>, vector<8x32xf32>
    tpu.vector_store %arg14[%319, %c0_66], %316 {strides = array<i32>} : memref<64x32xf32, #tpu.memory_space<vmem>>, vector<8x32xf32>,
    %c6_i32 = arith.constant 6 : i32
    %c8_i32_67 = arith.constant 8 : i32
    %321 = arith.muli %c6_i32, %c8_i32_67 : i32
    %322 = tpu.assume_multiple %321, 8 : i32
    %c7_i32_68 = arith.constant 7 : i32
    %323 = arith.subi %c7_i32_68, %c6_i32 : i32
    %c8_i32_69 = arith.constant 8 : i32
    %324 = arith.muli %323, %c8_i32_69 : i32
    %325 = tpu.assume_multiple %324, 8 : i32
    %326 = tpu.concatenate %313, %316 in 1 : vector<8x32xf32>, vector<8x32xf32> -> vector<8x64xf32>
    %327 = arith.truncf %326 : vector<8x64xf32> to vector<8x64xbf16>
    %cst_70 = arith.constant dense<0.000000e+00> : vector<8x256xf32>
    %328 = tpu.matmul %327, %7, %cst_70 {dimension_numbers = #tpu.dot_dimension_numbers<[1], [0], [0], [1], [0, 0, 1, 1], [], []>} : vector<8x64xbf16>, vector<64x256xbf16>, vector<8x256xf32> -> vector<8x256xf32>
    %329 = arith.index_cast %322 : i32 to index
    %c0_71 = arith.constant 0 : index
    %330 = vector.load %arg12[%329, %c0_71] : memref<64x256xf32, #tpu.memory_space<vmem>>, vector<8x128xf32>
    %331 = vector.extract_strided_slice %328 {offsets = [0, 0], sizes = [8, 128], strides = [1, 1]} : vector<8x256xf32> to vector<8x128xf32>
    %332 = arith.addf %330, %331 : vector<8x128xf32>
    %333 = arith.index_cast %325 : i32 to index
    %c128_72 = arith.constant 128 : index
    %334 = vector.load %arg12[%333, %c128_72] : memref<64x256xf32, #tpu.memory_space<vmem>>, vector<8x128xf32>
    %335 = vector.extract_strided_slice %328 {offsets = [0, 128], sizes = [8, 128], strides = [1, 1]} : vector<8x256xf32> to vector<8x128xf32>
    %336 = arith.addf %334, %335 : vector<8x128xf32>
    %337 = vector.extract_strided_slice %332 {offsets = [0, 0], sizes = [8, 96], strides = [1, 1]} : vector<8x128xf32> to vector<8x96xf32>
    %338 = arith.negf %337 : vector<8x96xf32>
    %339 = math.exp %338 : vector<8x96xf32>
    %cst_73 = arith.constant 1.000000e+00 : f32
    %340 = vector.broadcast %cst_73 : f32 to vector<8x96xf32>
    %341 = arith.addf %340, %339 : vector<8x96xf32>
    %342 = arith.divf %340, %341 : vector<8x96xf32>
    %343 = vector.extract_strided_slice %332 {offsets = [0, 96], sizes = [8, 32], strides = [1, 1]} : vector<8x128xf32> to vector<8x32xf32>
    %344 = math.tanh %343 : vector<8x32xf32>
    %345 = vector.extract_strided_slice %336 {offsets = [0, 0], sizes = [8, 96], strides = [1, 1]} : vector<8x128xf32> to vector<8x96xf32>
    %346 = arith.negf %345 : vector<8x96xf32>
    %347 = math.exp %346 : vector<8x96xf32>
    %cst_74 = arith.constant 1.000000e+00 : f32
    %348 = vector.broadcast %cst_74 : f32 to vector<8x96xf32>
    %349 = arith.addf %348, %347 : vector<8x96xf32>
    %350 = arith.divf %348, %349 : vector<8x96xf32>
    %351 = vector.extract_strided_slice %336 {offsets = [0, 96], sizes = [8, 32], strides = [1, 1]} : vector<8x128xf32> to vector<8x32xf32>
    %352 = math.tanh %351 : vector<8x32xf32>
    %353 = vector.extract_strided_slice %342 {offsets = [0, 32], sizes = [8, 32], strides = [1, 1]} : vector<8x96xf32> to vector<8x32xf32>
    %354 = arith.mulf %353, %305 : vector<8x32xf32>
    %355 = vector.extract_strided_slice %342 {offsets = [0, 0], sizes = [8, 32], strides = [1, 1]} : vector<8x96xf32> to vector<8x32xf32>
    %356 = arith.mulf %355, %344 : vector<8x32xf32>
    %357 = arith.addf %354, %356 : vector<8x32xf32>
    %358 = vector.extract_strided_slice %350 {offsets = [0, 32], sizes = [8, 32], strides = [1, 1]} : vector<8x96xf32> to vector<8x32xf32>
    %359 = arith.mulf %358, %310 : vector<8x32xf32>
    %360 = vector.extract_strided_slice %350 {offsets = [0, 0], sizes = [8, 32], strides = [1, 1]} : vector<8x96xf32> to vector<8x32xf32>
    %361 = arith.mulf %360, %352 : vector<8x32xf32>
    %362 = arith.addf %359, %361 : vector<8x32xf32>
    %363 = vector.extract_strided_slice %342 {offsets = [0, 64], sizes = [8, 32], strides = [1, 1]} : vector<8x96xf32> to vector<8x32xf32>
    %364 = math.tanh %357 : vector<8x32xf32>
    %365 = arith.mulf %363, %364 : vector<8x32xf32>
    %366 = vector.extract_strided_slice %350 {offsets = [0, 64], sizes = [8, 32], strides = [1, 1]} : vector<8x96xf32> to vector<8x32xf32>
    %367 = math.tanh %362 : vector<8x32xf32>
    %368 = arith.mulf %366, %367 : vector<8x32xf32>
    %369 = arith.index_cast %322 : i32 to index
    %c0_75 = arith.constant 0 : index
    %370 = vector.load %arg13[%369, %c0_75] : memref<64x32xf32, #tpu.memory_space<vmem>>, vector<8x32xf32>
    tpu.vector_store %arg13[%369, %c0_75], %365 {strides = array<i32>} : memref<64x32xf32, #tpu.memory_space<vmem>>, vector<8x32xf32>,
    %371 = arith.index_cast %325 : i32 to index
    %c0_76 = arith.constant 0 : index
    %372 = vector.load %arg14[%371, %c0_76] : memref<64x32xf32, #tpu.memory_space<vmem>>, vector<8x32xf32>
    tpu.vector_store %arg14[%371, %c0_76], %368 {strides = array<i32>} : memref<64x32xf32, #tpu.memory_space<vmem>>, vector<8x32xf32>,
    %c7_i32_77 = arith.constant 7 : i32
    %c8_i32_78 = arith.constant 8 : i32
    %373 = arith.muli %c7_i32_77, %c8_i32_78 : i32
    %374 = tpu.assume_multiple %373, 8 : i32
    %c7_i32_79 = arith.constant 7 : i32
    %375 = arith.subi %c7_i32_79, %c7_i32_77 : i32
    %c8_i32_80 = arith.constant 8 : i32
    %376 = arith.muli %375, %c8_i32_80 : i32
    %377 = tpu.assume_multiple %376, 8 : i32
    %378 = tpu.concatenate %365, %368 in 1 : vector<8x32xf32>, vector<8x32xf32> -> vector<8x64xf32>
    %379 = arith.truncf %378 : vector<8x64xf32> to vector<8x64xbf16>
    %cst_81 = arith.constant dense<0.000000e+00> : vector<8x256xf32>
    %380 = tpu.matmul %379, %7, %cst_81 {dimension_numbers = #tpu.dot_dimension_numbers<[1], [0], [0], [1], [0, 0, 1, 1], [], []>} : vector<8x64xbf16>, vector<64x256xbf16>, vector<8x256xf32> -> vector<8x256xf32>
    %381 = arith.index_cast %374 : i32 to index
    %c0_82 = arith.constant 0 : index
    %382 = vector.load %arg12[%381, %c0_82] : memref<64x256xf32, #tpu.memory_space<vmem>>, vector<8x128xf32>
    %383 = vector.extract_strided_slice %380 {offsets = [0, 0], sizes = [8, 128], strides = [1, 1]} : vector<8x256xf32> to vector<8x128xf32>
    %384 = arith.addf %382, %383 : vector<8x128xf32>
    %385 = arith.index_cast %377 : i32 to index
    %c128_83 = arith.constant 128 : index
    %386 = vector.load %arg12[%385, %c128_83] : memref<64x256xf32, #tpu.memory_space<vmem>>, vector<8x128xf32>
    %387 = vector.extract_strided_slice %380 {offsets = [0, 128], sizes = [8, 128], strides = [1, 1]} : vector<8x256xf32> to vector<8x128xf32>
    %388 = arith.addf %386, %387 : vector<8x128xf32>
    %389 = vector.extract_strided_slice %384 {offsets = [0, 0], sizes = [8, 96], strides = [1, 1]} : vector<8x128xf32> to vector<8x96xf32>
    %390 = arith.negf %389 : vector<8x96xf32>
    %391 = math.exp %390 : vector<8x96xf32>
    %cst_84 = arith.constant 1.000000e+00 : f32
    %392 = vector.broadcast %cst_84 : f32 to vector<8x96xf32>
    %393 = arith.addf %392, %391 : vector<8x96xf32>
    %394 = arith.divf %392, %393 : vector<8x96xf32>
    %395 = vector.extract_strided_slice %384 {offsets = [0, 96], sizes = [8, 32], strides = [1, 1]} : vector<8x128xf32> to vector<8x32xf32>
    %396 = math.tanh %395 : vector<8x32xf32>
    %397 = vector.extract_strided_slice %388 {offsets = [0, 0], sizes = [8, 96], strides = [1, 1]} : vector<8x128xf32> to vector<8x96xf32>
    %398 = arith.negf %397 : vector<8x96xf32>
    %399 = math.exp %398 : vector<8x96xf32>
    %cst_85 = arith.constant 1.000000e+00 : f32
    %400 = vector.broadcast %cst_85 : f32 to vector<8x96xf32>
    %401 = arith.addf %400, %399 : vector<8x96xf32>
    %402 = arith.divf %400, %401 : vector<8x96xf32>
    %403 = vector.extract_strided_slice %388 {offsets = [0, 96], sizes = [8, 32], strides = [1, 1]} : vector<8x128xf32> to vector<8x32xf32>
    %404 = math.tanh %403 : vector<8x32xf32>
    %405 = vector.extract_strided_slice %394 {offsets = [0, 32], sizes = [8, 32], strides = [1, 1]} : vector<8x96xf32> to vector<8x32xf32>
    %406 = arith.mulf %405, %357 : vector<8x32xf32>
    %407 = vector.extract_strided_slice %394 {offsets = [0, 0], sizes = [8, 32], strides = [1, 1]} : vector<8x96xf32> to vector<8x32xf32>
    %408 = arith.mulf %407, %396 : vector<8x32xf32>
    %409 = arith.addf %406, %408 : vector<8x32xf32>
    %410 = vector.extract_strided_slice %402 {offsets = [0, 32], sizes = [8, 32], strides = [1, 1]} : vector<8x96xf32> to vector<8x32xf32>
    %411 = arith.mulf %410, %362 : vector<8x32xf32>
    %412 = vector.extract_strided_slice %402 {offsets = [0, 0], sizes = [8, 32], strides = [1, 1]} : vector<8x96xf32> to vector<8x32xf32>
    %413 = arith.mulf %412, %404 : vector<8x32xf32>
    %414 = arith.addf %411, %413 : vector<8x32xf32>
    %415 = vector.extract_strided_slice %394 {offsets = [0, 64], sizes = [8, 32], strides = [1, 1]} : vector<8x96xf32> to vector<8x32xf32>
    %416 = math.tanh %409 : vector<8x32xf32>
    %417 = arith.mulf %415, %416 : vector<8x32xf32>
    %418 = vector.extract_strided_slice %402 {offsets = [0, 64], sizes = [8, 32], strides = [1, 1]} : vector<8x96xf32> to vector<8x32xf32>
    %419 = math.tanh %414 : vector<8x32xf32>
    %420 = arith.mulf %418, %419 : vector<8x32xf32>
    %421 = arith.index_cast %374 : i32 to index
    %c0_86 = arith.constant 0 : index
    %422 = vector.load %arg13[%421, %c0_86] : memref<64x32xf32, #tpu.memory_space<vmem>>, vector<8x32xf32>
    tpu.vector_store %arg13[%421, %c0_86], %417 {strides = array<i32>} : memref<64x32xf32, #tpu.memory_space<vmem>>, vector<8x32xf32>,
    %423 = arith.index_cast %377 : i32 to index
    %c0_87 = arith.constant 0 : index
    %424 = vector.load %arg14[%423, %c0_87] : memref<64x32xf32, #tpu.memory_space<vmem>>, vector<8x32xf32>
    tpu.vector_store %arg14[%423, %c0_87], %420 {strides = array<i32>} : memref<64x32xf32, #tpu.memory_space<vmem>>, vector<8x32xf32>,
    %c8_i32_88 = arith.constant 8 : i32
    %c0_89 = arith.constant 0 : index
    %c0_90 = arith.constant 0 : index
    %425 = vector.load %arg13[%c0_89, %c0_90] : memref<64x32xf32, #tpu.memory_space<vmem>>, vector<64x32xf32>
    %426 = arith.truncf %425 : vector<64x32xf32> to vector<64x32xbf16>
    %c0_91 = arith.constant 0 : index
    %c0_92 = arith.constant 0 : index
    %427 = vector.load %arg4[%c0_91, %c0_92] : memref<32x256xbf16, #tpu.memory_space<vmem>>, vector<32x256xbf16>
    %cst_93 = arith.constant dense<0.000000e+00> : vector<64x256xf32>
    %428 = tpu.matmul %426, %427, %cst_93 {dimension_numbers = #tpu.dot_dimension_numbers<[1], [0], [0], [1], [0, 0, 1, 1], [], []>} : vector<64x32xbf16>, vector<32x256xbf16>, vector<64x256xf32> -> vector<64x256xf32>
    %c0_94 = arith.constant 0 : index
    %c0_95 = arith.constant 0 : index
    %429 = vector.load %arg14[%c0_94, %c0_95] : memref<64x32xf32, #tpu.memory_space<vmem>>, vector<64x32xf32>
    %430 = arith.truncf %429 : vector<64x32xf32> to vector<64x32xbf16>
    %c0_96 = arith.constant 0 : index
    %c0_97 = arith.constant 0 : index
    %431 = vector.load %arg5[%c0_96, %c0_97] : memref<32x256xbf16, #tpu.memory_space<vmem>>, vector<32x256xbf16>
    %cst_98 = arith.constant dense<0.000000e+00> : vector<64x256xf32>
    %432 = tpu.matmul %430, %431, %cst_98 {dimension_numbers = #tpu.dot_dimension_numbers<[1], [0], [0], [1], [0, 0, 1, 1], [], []>} : vector<64x32xbf16>, vector<32x256xbf16>, vector<64x256xf32> -> vector<64x256xf32>
    %433 = arith.addf %428, %432 : vector<64x256xf32>
    %c0_99 = arith.constant 0 : index
    %c0_100 = arith.constant 0 : index
    %434 = vector.load %arg7[%c0_99, %c0_100] : memref<1x256xf32, #tpu.memory_space<vmem>>, vector<1x256xf32>
    %435 = vector.broadcast %434 : vector<1x256xf32> to vector<64x256xf32>
    %436 = arith.addf %433, %435 : vector<64x256xf32>
    %c0_101 = arith.constant 0 : index
    %c0_102 = arith.constant 0 : index
    %437 = vector.load %arg12[%c0_101, %c0_102] : memref<64x256xf32, #tpu.memory_space<vmem>>, vector<64x256xf32>
    tpu.vector_store %arg12[%c0_101, %c0_102], %436 {strides = array<i32>} : memref<64x256xf32, #tpu.memory_space<vmem>>, vector<64x256xf32>,
    %c0_103 = arith.constant 0 : index
    %c0_104 = arith.constant 0 : index
    %438 = vector.load %arg6[%c0_103, %c0_104] : memref<64x256xbf16, #tpu.memory_space<vmem>>, vector<64x256xbf16>
    %cst_105 = arith.constant 0.000000e+00 : f32
    %439 = vector.broadcast %cst_105 : f32 to vector<8x32xf32>
    %c0_i32_106 = arith.constant 0 : i32
    %c8_i32_107 = arith.constant 8 : i32
    %440 = arith.muli %c0_i32_106, %c8_i32_107 : i32
    %441 = tpu.assume_multiple %440, 8 : i32
    %c7_i32_108 = arith.constant 7 : i32
    %442 = arith.subi %c7_i32_108, %c0_i32_106 : i32
    %c8_i32_109 = arith.constant 8 : i32
    %443 = arith.muli %442, %c8_i32_109 : i32
    %444 = tpu.assume_multiple %443, 8 : i32
    %445 = tpu.concatenate %439, %439 in 1 : vector<8x32xf32>, vector<8x32xf32> -> vector<8x64xf32>
    %446 = arith.truncf %445 : vector<8x64xf32> to vector<8x64xbf16>
    %cst_110 = arith.constant dense<0.000000e+00> : vector<8x256xf32>
    %447 = tpu.matmul %446, %438, %cst_110 {dimension_numbers = #tpu.dot_dimension_numbers<[1], [0], [0], [1], [0, 0, 1, 1], [], []>} : vector<8x64xbf16>, vector<64x256xbf16>, vector<8x256xf32> -> vector<8x256xf32>
    %448 = arith.index_cast %441 : i32 to index
    %c0_111 = arith.constant 0 : index
    %449 = vector.load %arg12[%448, %c0_111] : memref<64x256xf32, #tpu.memory_space<vmem>>, vector<8x128xf32>
    %450 = vector.extract_strided_slice %447 {offsets = [0, 0], sizes = [8, 128], strides = [1, 1]} : vector<8x256xf32> to vector<8x128xf32>
    %451 = arith.addf %449, %450 : vector<8x128xf32>
    %452 = arith.index_cast %444 : i32 to index
    %c128_112 = arith.constant 128 : index
    %453 = vector.load %arg12[%452, %c128_112] : memref<64x256xf32, #tpu.memory_space<vmem>>, vector<8x128xf32>
    %454 = vector.extract_strided_slice %447 {offsets = [0, 128], sizes = [8, 128], strides = [1, 1]} : vector<8x256xf32> to vector<8x128xf32>
    %455 = arith.addf %453, %454 : vector<8x128xf32>
    %456 = vector.extract_strided_slice %451 {offsets = [0, 0], sizes = [8, 96], strides = [1, 1]} : vector<8x128xf32> to vector<8x96xf32>
    %457 = arith.negf %456 : vector<8x96xf32>
    %458 = math.exp %457 : vector<8x96xf32>
    %cst_113 = arith.constant 1.000000e+00 : f32
    %459 = vector.broadcast %cst_113 : f32 to vector<8x96xf32>
    %460 = arith.addf %459, %458 : vector<8x96xf32>
    %461 = arith.divf %459, %460 : vector<8x96xf32>
    %462 = vector.extract_strided_slice %451 {offsets = [0, 96], sizes = [8, 32], strides = [1, 1]} : vector<8x128xf32> to vector<8x32xf32>
    %463 = math.tanh %462 : vector<8x32xf32>
    %464 = vector.extract_strided_slice %455 {offsets = [0, 0], sizes = [8, 96], strides = [1, 1]} : vector<8x128xf32> to vector<8x96xf32>
    %465 = arith.negf %464 : vector<8x96xf32>
    %466 = math.exp %465 : vector<8x96xf32>
    %cst_114 = arith.constant 1.000000e+00 : f32
    %467 = vector.broadcast %cst_114 : f32 to vector<8x96xf32>
    %468 = arith.addf %467, %466 : vector<8x96xf32>
    %469 = arith.divf %467, %468 : vector<8x96xf32>
    %470 = vector.extract_strided_slice %455 {offsets = [0, 96], sizes = [8, 32], strides = [1, 1]} : vector<8x128xf32> to vector<8x32xf32>
    %471 = math.tanh %470 : vector<8x32xf32>
    %472 = vector.extract_strided_slice %461 {offsets = [0, 32], sizes = [8, 32], strides = [1, 1]} : vector<8x96xf32> to vector<8x32xf32>
    %473 = arith.mulf %472, %439 : vector<8x32xf32>
    %474 = vector.extract_strided_slice %461 {offsets = [0, 0], sizes = [8, 32], strides = [1, 1]} : vector<8x96xf32> to vector<8x32xf32>
    %475 = arith.mulf %474, %463 : vector<8x32xf32>
    %476 = arith.addf %473, %475 : vector<8x32xf32>
    %477 = vector.extract_strided_slice %469 {offsets = [0, 32], sizes = [8, 32], strides = [1, 1]} : vector<8x96xf32> to vector<8x32xf32>
    %478 = arith.mulf %477, %439 : vector<8x32xf32>
    %479 = vector.extract_strided_slice %469 {offsets = [0, 0], sizes = [8, 32], strides = [1, 1]} : vector<8x96xf32> to vector<8x32xf32>
    %480 = arith.mulf %479, %471 : vector<8x32xf32>
    %481 = arith.addf %478, %480 : vector<8x32xf32>
    %482 = vector.extract_strided_slice %461 {offsets = [0, 64], sizes = [8, 32], strides = [1, 1]} : vector<8x96xf32> to vector<8x32xf32>
    %483 = math.tanh %476 : vector<8x32xf32>
    %484 = arith.mulf %482, %483 : vector<8x32xf32>
    %485 = vector.extract_strided_slice %469 {offsets = [0, 64], sizes = [8, 32], strides = [1, 1]} : vector<8x96xf32> to vector<8x32xf32>
    %486 = math.tanh %481 : vector<8x32xf32>
    %487 = arith.mulf %485, %486 : vector<8x32xf32>
    %488 = arith.index_cast %441 : i32 to index
    %c0_115 = arith.constant 0 : index
    %489 = vector.load %arg13[%488, %c0_115] : memref<64x32xf32, #tpu.memory_space<vmem>>, vector<8x32xf32>
    tpu.vector_store %arg13[%488, %c0_115], %484 {strides = array<i32>} : memref<64x32xf32, #tpu.memory_space<vmem>>, vector<8x32xf32>,
    %490 = arith.index_cast %444 : i32 to index
    %c0_116 = arith.constant 0 : index
    %491 = vector.load %arg14[%490, %c0_116] : memref<64x32xf32, #tpu.memory_space<vmem>>, vector<8x32xf32>
    tpu.vector_store %arg14[%490, %c0_116], %487 {strides = array<i32>} : memref<64x32xf32, #tpu.memory_space<vmem>>, vector<8x32xf32>,
    %c1_i32_117 = arith.constant 1 : i32
    %c8_i32_118 = arith.constant 8 : i32
    %492 = arith.muli %c1_i32_117, %c8_i32_118 : i32
    %493 = tpu.assume_multiple %492, 8 : i32
    %c7_i32_119 = arith.constant 7 : i32
    %494 = arith.subi %c7_i32_119, %c1_i32_117 : i32
    %c8_i32_120 = arith.constant 8 : i32
    %495 = arith.muli %494, %c8_i32_120 : i32
    %496 = tpu.assume_multiple %495, 8 : i32
    %497 = tpu.concatenate %484, %487 in 1 : vector<8x32xf32>, vector<8x32xf32> -> vector<8x64xf32>
    %498 = arith.truncf %497 : vector<8x64xf32> to vector<8x64xbf16>
    %cst_121 = arith.constant dense<0.000000e+00> : vector<8x256xf32>
    %499 = tpu.matmul %498, %438, %cst_121 {dimension_numbers = #tpu.dot_dimension_numbers<[1], [0], [0], [1], [0, 0, 1, 1], [], []>} : vector<8x64xbf16>, vector<64x256xbf16>, vector<8x256xf32> -> vector<8x256xf32>
    %500 = arith.index_cast %493 : i32 to index
    %c0_122 = arith.constant 0 : index
    %501 = vector.load %arg12[%500, %c0_122] : memref<64x256xf32, #tpu.memory_space<vmem>>, vector<8x128xf32>
    %502 = vector.extract_strided_slice %499 {offsets = [0, 0], sizes = [8, 128], strides = [1, 1]} : vector<8x256xf32> to vector<8x128xf32>
    %503 = arith.addf %501, %502 : vector<8x128xf32>
    %504 = arith.index_cast %496 : i32 to index
    %c128_123 = arith.constant 128 : index
    %505 = vector.load %arg12[%504, %c128_123] : memref<64x256xf32, #tpu.memory_space<vmem>>, vector<8x128xf32>
    %506 = vector.extract_strided_slice %499 {offsets = [0, 128], sizes = [8, 128], strides = [1, 1]} : vector<8x256xf32> to vector<8x128xf32>
    %507 = arith.addf %505, %506 : vector<8x128xf32>
    %508 = vector.extract_strided_slice %503 {offsets = [0, 0], sizes = [8, 96], strides = [1, 1]} : vector<8x128xf32> to vector<8x96xf32>
    %509 = arith.negf %508 : vector<8x96xf32>
    %510 = math.exp %509 : vector<8x96xf32>
    %cst_124 = arith.constant 1.000000e+00 : f32
    %511 = vector.broadcast %cst_124 : f32 to vector<8x96xf32>
    %512 = arith.addf %511, %510 : vector<8x96xf32>
    %513 = arith.divf %511, %512 : vector<8x96xf32>
    %514 = vector.extract_strided_slice %503 {offsets = [0, 96], sizes = [8, 32], strides = [1, 1]} : vector<8x128xf32> to vector<8x32xf32>
    %515 = math.tanh %514 : vector<8x32xf32>
    %516 = vector.extract_strided_slice %507 {offsets = [0, 0], sizes = [8, 96], strides = [1, 1]} : vector<8x128xf32> to vector<8x96xf32>
    %517 = arith.negf %516 : vector<8x96xf32>
    %518 = math.exp %517 : vector<8x96xf32>
    %cst_125 = arith.constant 1.000000e+00 : f32
    %519 = vector.broadcast %cst_125 : f32 to vector<8x96xf32>
    %520 = arith.addf %519, %518 : vector<8x96xf32>
    %521 = arith.divf %519, %520 : vector<8x96xf32>
    %522 = vector.extract_strided_slice %507 {offsets = [0, 96], sizes = [8, 32], strides = [1, 1]} : vector<8x128xf32> to vector<8x32xf32>
    %523 = math.tanh %522 : vector<8x32xf32>
    %524 = vector.extract_strided_slice %513 {offsets = [0, 32], sizes = [8, 32], strides = [1, 1]} : vector<8x96xf32> to vector<8x32xf32>
    %525 = arith.mulf %524, %476 : vector<8x32xf32>
    %526 = vector.extract_strided_slice %513 {offsets = [0, 0], sizes = [8, 32], strides = [1, 1]} : vector<8x96xf32> to vector<8x32xf32>
    %527 = arith.mulf %526, %515 : vector<8x32xf32>
    %528 = arith.addf %525, %527 : vector<8x32xf32>
    %529 = vector.extract_strided_slice %521 {offsets = [0, 32], sizes = [8, 32], strides = [1, 1]} : vector<8x96xf32> to vector<8x32xf32>
    %530 = arith.mulf %529, %481 : vector<8x32xf32>
    %531 = vector.extract_strided_slice %521 {offsets = [0, 0], sizes = [8, 32], strides = [1, 1]} : vector<8x96xf32> to vector<8x32xf32>
    %532 = arith.mulf %531, %523 : vector<8x32xf32>
    %533 = arith.addf %530, %532 : vector<8x32xf32>
    %534 = vector.extract_strided_slice %513 {offsets = [0, 64], sizes = [8, 32], strides = [1, 1]} : vector<8x96xf32> to vector<8x32xf32>
    %535 = math.tanh %528 : vector<8x32xf32>
    %536 = arith.mulf %534, %535 : vector<8x32xf32>
    %537 = vector.extract_strided_slice %521 {offsets = [0, 64], sizes = [8, 32], strides = [1, 1]} : vector<8x96xf32> to vector<8x32xf32>
    %538 = math.tanh %533 : vector<8x32xf32>
    %539 = arith.mulf %537, %538 : vector<8x32xf32>
    %540 = arith.index_cast %493 : i32 to index
    %c0_126 = arith.constant 0 : index
    %541 = vector.load %arg13[%540, %c0_126] : memref<64x32xf32, #tpu.memory_space<vmem>>, vector<8x32xf32>
    tpu.vector_store %arg13[%540, %c0_126], %536 {strides = array<i32>} : memref<64x32xf32, #tpu.memory_space<vmem>>, vector<8x32xf32>,
    %542 = arith.index_cast %496 : i32 to index
    %c0_127 = arith.constant 0 : index
    %543 = vector.load %arg14[%542, %c0_127] : memref<64x32xf32, #tpu.memory_space<vmem>>, vector<8x32xf32>
    tpu.vector_store %arg14[%542, %c0_127], %539 {strides = array<i32>} : memref<64x32xf32, #tpu.memory_space<vmem>>, vector<8x32xf32>,
    %c2_i32_128 = arith.constant 2 : i32
    %c8_i32_129 = arith.constant 8 : i32
    %544 = arith.muli %c2_i32_128, %c8_i32_129 : i32
    %545 = tpu.assume_multiple %544, 8 : i32
    %c7_i32_130 = arith.constant 7 : i32
    %546 = arith.subi %c7_i32_130, %c2_i32_128 : i32
    %c8_i32_131 = arith.constant 8 : i32
    %547 = arith.muli %546, %c8_i32_131 : i32
    %548 = tpu.assume_multiple %547, 8 : i32
    %549 = tpu.concatenate %536, %539 in 1 : vector<8x32xf32>, vector<8x32xf32> -> vector<8x64xf32>
    %550 = arith.truncf %549 : vector<8x64xf32> to vector<8x64xbf16>
    %cst_132 = arith.constant dense<0.000000e+00> : vector<8x256xf32>
    %551 = tpu.matmul %550, %438, %cst_132 {dimension_numbers = #tpu.dot_dimension_numbers<[1], [0], [0], [1], [0, 0, 1, 1], [], []>} : vector<8x64xbf16>, vector<64x256xbf16>, vector<8x256xf32> -> vector<8x256xf32>
    %552 = arith.index_cast %545 : i32 to index
    %c0_133 = arith.constant 0 : index
    %553 = vector.load %arg12[%552, %c0_133] : memref<64x256xf32, #tpu.memory_space<vmem>>, vector<8x128xf32>
    %554 = vector.extract_strided_slice %551 {offsets = [0, 0], sizes = [8, 128], strides = [1, 1]} : vector<8x256xf32> to vector<8x128xf32>
    %555 = arith.addf %553, %554 : vector<8x128xf32>
    %556 = arith.index_cast %548 : i32 to index
    %c128_134 = arith.constant 128 : index
    %557 = vector.load %arg12[%556, %c128_134] : memref<64x256xf32, #tpu.memory_space<vmem>>, vector<8x128xf32>
    %558 = vector.extract_strided_slice %551 {offsets = [0, 128], sizes = [8, 128], strides = [1, 1]} : vector<8x256xf32> to vector<8x128xf32>
    %559 = arith.addf %557, %558 : vector<8x128xf32>
    %560 = vector.extract_strided_slice %555 {offsets = [0, 0], sizes = [8, 96], strides = [1, 1]} : vector<8x128xf32> to vector<8x96xf32>
    %561 = arith.negf %560 : vector<8x96xf32>
    %562 = math.exp %561 : vector<8x96xf32>
    %cst_135 = arith.constant 1.000000e+00 : f32
    %563 = vector.broadcast %cst_135 : f32 to vector<8x96xf32>
    %564 = arith.addf %563, %562 : vector<8x96xf32>
    %565 = arith.divf %563, %564 : vector<8x96xf32>
    %566 = vector.extract_strided_slice %555 {offsets = [0, 96], sizes = [8, 32], strides = [1, 1]} : vector<8x128xf32> to vector<8x32xf32>
    %567 = math.tanh %566 : vector<8x32xf32>
    %568 = vector.extract_strided_slice %559 {offsets = [0, 0], sizes = [8, 96], strides = [1, 1]} : vector<8x128xf32> to vector<8x96xf32>
    %569 = arith.negf %568 : vector<8x96xf32>
    %570 = math.exp %569 : vector<8x96xf32>
    %cst_136 = arith.constant 1.000000e+00 : f32
    %571 = vector.broadcast %cst_136 : f32 to vector<8x96xf32>
    %572 = arith.addf %571, %570 : vector<8x96xf32>
    %573 = arith.divf %571, %572 : vector<8x96xf32>
    %574 = vector.extract_strided_slice %559 {offsets = [0, 96], sizes = [8, 32], strides = [1, 1]} : vector<8x128xf32> to vector<8x32xf32>
    %575 = math.tanh %574 : vector<8x32xf32>
    %576 = vector.extract_strided_slice %565 {offsets = [0, 32], sizes = [8, 32], strides = [1, 1]} : vector<8x96xf32> to vector<8x32xf32>
    %577 = arith.mulf %576, %528 : vector<8x32xf32>
    %578 = vector.extract_strided_slice %565 {offsets = [0, 0], sizes = [8, 32], strides = [1, 1]} : vector<8x96xf32> to vector<8x32xf32>
    %579 = arith.mulf %578, %567 : vector<8x32xf32>
    %580 = arith.addf %577, %579 : vector<8x32xf32>
    %581 = vector.extract_strided_slice %573 {offsets = [0, 32], sizes = [8, 32], strides = [1, 1]} : vector<8x96xf32> to vector<8x32xf32>
    %582 = arith.mulf %581, %533 : vector<8x32xf32>
    %583 = vector.extract_strided_slice %573 {offsets = [0, 0], sizes = [8, 32], strides = [1, 1]} : vector<8x96xf32> to vector<8x32xf32>
    %584 = arith.mulf %583, %575 : vector<8x32xf32>
    %585 = arith.addf %582, %584 : vector<8x32xf32>
    %586 = vector.extract_strided_slice %565 {offsets = [0, 64], sizes = [8, 32], strides = [1, 1]} : vector<8x96xf32> to vector<8x32xf32>
    %587 = math.tanh %580 : vector<8x32xf32>
    %588 = arith.mulf %586, %587 : vector<8x32xf32>
    %589 = vector.extract_strided_slice %573 {offsets = [0, 64], sizes = [8, 32], strides = [1, 1]} : vector<8x96xf32> to vector<8x32xf32>
    %590 = math.tanh %585 : vector<8x32xf32>
    %591 = arith.mulf %589, %590 : vector<8x32xf32>
    %592 = arith.index_cast %545 : i32 to index
    %c0_137 = arith.constant 0 : index
    %593 = vector.load %arg13[%592, %c0_137] : memref<64x32xf32, #tpu.memory_space<vmem>>, vector<8x32xf32>
    tpu.vector_store %arg13[%592, %c0_137], %588 {strides = array<i32>} : memref<64x32xf32, #tpu.memory_space<vmem>>, vector<8x32xf32>,
    %594 = arith.index_cast %548 : i32 to index
    %c0_138 = arith.constant 0 : index
    %595 = vector.load %arg14[%594, %c0_138] : memref<64x32xf32, #tpu.memory_space<vmem>>, vector<8x32xf32>
    tpu.vector_store %arg14[%594, %c0_138], %591 {strides = array<i32>} : memref<64x32xf32, #tpu.memory_space<vmem>>, vector<8x32xf32>,
    %c3_i32_139 = arith.constant 3 : i32
    %c8_i32_140 = arith.constant 8 : i32
    %596 = arith.muli %c3_i32_139, %c8_i32_140 : i32
    %597 = tpu.assume_multiple %596, 8 : i32
    %c7_i32_141 = arith.constant 7 : i32
    %598 = arith.subi %c7_i32_141, %c3_i32_139 : i32
    %c8_i32_142 = arith.constant 8 : i32
    %599 = arith.muli %598, %c8_i32_142 : i32
    %600 = tpu.assume_multiple %599, 8 : i32
    %601 = tpu.concatenate %588, %591 in 1 : vector<8x32xf32>, vector<8x32xf32> -> vector<8x64xf32>
    %602 = arith.truncf %601 : vector<8x64xf32> to vector<8x64xbf16>
    %cst_143 = arith.constant dense<0.000000e+00> : vector<8x256xf32>
    %603 = tpu.matmul %602, %438, %cst_143 {dimension_numbers = #tpu.dot_dimension_numbers<[1], [0], [0], [1], [0, 0, 1, 1], [], []>} : vector<8x64xbf16>, vector<64x256xbf16>, vector<8x256xf32> -> vector<8x256xf32>
    %604 = arith.index_cast %597 : i32 to index
    %c0_144 = arith.constant 0 : index
    %605 = vector.load %arg12[%604, %c0_144] : memref<64x256xf32, #tpu.memory_space<vmem>>, vector<8x128xf32>
    %606 = vector.extract_strided_slice %603 {offsets = [0, 0], sizes = [8, 128], strides = [1, 1]} : vector<8x256xf32> to vector<8x128xf32>
    %607 = arith.addf %605, %606 : vector<8x128xf32>
    %608 = arith.index_cast %600 : i32 to index
    %c128_145 = arith.constant 128 : index
    %609 = vector.load %arg12[%608, %c128_145] : memref<64x256xf32, #tpu.memory_space<vmem>>, vector<8x128xf32>
    %610 = vector.extract_strided_slice %603 {offsets = [0, 128], sizes = [8, 128], strides = [1, 1]} : vector<8x256xf32> to vector<8x128xf32>
    %611 = arith.addf %609, %610 : vector<8x128xf32>
    %612 = vector.extract_strided_slice %607 {offsets = [0, 0], sizes = [8, 96], strides = [1, 1]} : vector<8x128xf32> to vector<8x96xf32>
    %613 = arith.negf %612 : vector<8x96xf32>
    %614 = math.exp %613 : vector<8x96xf32>
    %cst_146 = arith.constant 1.000000e+00 : f32
    %615 = vector.broadcast %cst_146 : f32 to vector<8x96xf32>
    %616 = arith.addf %615, %614 : vector<8x96xf32>
    %617 = arith.divf %615, %616 : vector<8x96xf32>
    %618 = vector.extract_strided_slice %607 {offsets = [0, 96], sizes = [8, 32], strides = [1, 1]} : vector<8x128xf32> to vector<8x32xf32>
    %619 = math.tanh %618 : vector<8x32xf32>
    %620 = vector.extract_strided_slice %611 {offsets = [0, 0], sizes = [8, 96], strides = [1, 1]} : vector<8x128xf32> to vector<8x96xf32>
    %621 = arith.negf %620 : vector<8x96xf32>
    %622 = math.exp %621 : vector<8x96xf32>
    %cst_147 = arith.constant 1.000000e+00 : f32
    %623 = vector.broadcast %cst_147 : f32 to vector<8x96xf32>
    %624 = arith.addf %623, %622 : vector<8x96xf32>
    %625 = arith.divf %623, %624 : vector<8x96xf32>
    %626 = vector.extract_strided_slice %611 {offsets = [0, 96], sizes = [8, 32], strides = [1, 1]} : vector<8x128xf32> to vector<8x32xf32>
    %627 = math.tanh %626 : vector<8x32xf32>
    %628 = vector.extract_strided_slice %617 {offsets = [0, 32], sizes = [8, 32], strides = [1, 1]} : vector<8x96xf32> to vector<8x32xf32>
    %629 = arith.mulf %628, %580 : vector<8x32xf32>
    %630 = vector.extract_strided_slice %617 {offsets = [0, 0], sizes = [8, 32], strides = [1, 1]} : vector<8x96xf32> to vector<8x32xf32>
    %631 = arith.mulf %630, %619 : vector<8x32xf32>
    %632 = arith.addf %629, %631 : vector<8x32xf32>
    %633 = vector.extract_strided_slice %625 {offsets = [0, 32], sizes = [8, 32], strides = [1, 1]} : vector<8x96xf32> to vector<8x32xf32>
    %634 = arith.mulf %633, %585 : vector<8x32xf32>
    %635 = vector.extract_strided_slice %625 {offsets = [0, 0], sizes = [8, 32], strides = [1, 1]} : vector<8x96xf32> to vector<8x32xf32>
    %636 = arith.mulf %635, %627 : vector<8x32xf32>
    %637 = arith.addf %634, %636 : vector<8x32xf32>
    %638 = vector.extract_strided_slice %617 {offsets = [0, 64], sizes = [8, 32], strides = [1, 1]} : vector<8x96xf32> to vector<8x32xf32>
    %639 = math.tanh %632 : vector<8x32xf32>
    %640 = arith.mulf %638, %639 : vector<8x32xf32>
    %641 = vector.extract_strided_slice %625 {offsets = [0, 64], sizes = [8, 32], strides = [1, 1]} : vector<8x96xf32> to vector<8x32xf32>
    %642 = math.tanh %637 : vector<8x32xf32>
    %643 = arith.mulf %641, %642 : vector<8x32xf32>
    %644 = arith.index_cast %597 : i32 to index
    %c0_148 = arith.constant 0 : index
    %645 = vector.load %arg13[%644, %c0_148] : memref<64x32xf32, #tpu.memory_space<vmem>>, vector<8x32xf32>
    tpu.vector_store %arg13[%644, %c0_148], %640 {strides = array<i32>} : memref<64x32xf32, #tpu.memory_space<vmem>>, vector<8x32xf32>,
    %646 = arith.index_cast %600 : i32 to index
    %c0_149 = arith.constant 0 : index
    %647 = vector.load %arg14[%646, %c0_149] : memref<64x32xf32, #tpu.memory_space<vmem>>, vector<8x32xf32>
    tpu.vector_store %arg14[%646, %c0_149], %643 {strides = array<i32>} : memref<64x32xf32, #tpu.memory_space<vmem>>, vector<8x32xf32>,
    %c4_i32_150 = arith.constant 4 : i32
    %c8_i32_151 = arith.constant 8 : i32
    %648 = arith.muli %c4_i32_150, %c8_i32_151 : i32
    %649 = tpu.assume_multiple %648, 8 : i32
    %c7_i32_152 = arith.constant 7 : i32
    %650 = arith.subi %c7_i32_152, %c4_i32_150 : i32
    %c8_i32_153 = arith.constant 8 : i32
    %651 = arith.muli %650, %c8_i32_153 : i32
    %652 = tpu.assume_multiple %651, 8 : i32
    %653 = tpu.concatenate %640, %643 in 1 : vector<8x32xf32>, vector<8x32xf32> -> vector<8x64xf32>
    %654 = arith.truncf %653 : vector<8x64xf32> to vector<8x64xbf16>
    %cst_154 = arith.constant dense<0.000000e+00> : vector<8x256xf32>
    %655 = tpu.matmul %654, %438, %cst_154 {dimension_numbers = #tpu.dot_dimension_numbers<[1], [0], [0], [1], [0, 0, 1, 1], [], []>} : vector<8x64xbf16>, vector<64x256xbf16>, vector<8x256xf32> -> vector<8x256xf32>
    %656 = arith.index_cast %649 : i32 to index
    %c0_155 = arith.constant 0 : index
    %657 = vector.load %arg12[%656, %c0_155] : memref<64x256xf32, #tpu.memory_space<vmem>>, vector<8x128xf32>
    %658 = vector.extract_strided_slice %655 {offsets = [0, 0], sizes = [8, 128], strides = [1, 1]} : vector<8x256xf32> to vector<8x128xf32>
    %659 = arith.addf %657, %658 : vector<8x128xf32>
    %660 = arith.index_cast %652 : i32 to index
    %c128_156 = arith.constant 128 : index
    %661 = vector.load %arg12[%660, %c128_156] : memref<64x256xf32, #tpu.memory_space<vmem>>, vector<8x128xf32>
    %662 = vector.extract_strided_slice %655 {offsets = [0, 128], sizes = [8, 128], strides = [1, 1]} : vector<8x256xf32> to vector<8x128xf32>
    %663 = arith.addf %661, %662 : vector<8x128xf32>
    %664 = vector.extract_strided_slice %659 {offsets = [0, 0], sizes = [8, 96], strides = [1, 1]} : vector<8x128xf32> to vector<8x96xf32>
    %665 = arith.negf %664 : vector<8x96xf32>
    %666 = math.exp %665 : vector<8x96xf32>
    %cst_157 = arith.constant 1.000000e+00 : f32
    %667 = vector.broadcast %cst_157 : f32 to vector<8x96xf32>
    %668 = arith.addf %667, %666 : vector<8x96xf32>
    %669 = arith.divf %667, %668 : vector<8x96xf32>
    %670 = vector.extract_strided_slice %659 {offsets = [0, 96], sizes = [8, 32], strides = [1, 1]} : vector<8x128xf32> to vector<8x32xf32>
    %671 = math.tanh %670 : vector<8x32xf32>
    %672 = vector.extract_strided_slice %663 {offsets = [0, 0], sizes = [8, 96], strides = [1, 1]} : vector<8x128xf32> to vector<8x96xf32>
    %673 = arith.negf %672 : vector<8x96xf32>
    %674 = math.exp %673 : vector<8x96xf32>
    %cst_158 = arith.constant 1.000000e+00 : f32
    %675 = vector.broadcast %cst_158 : f32 to vector<8x96xf32>
    %676 = arith.addf %675, %674 : vector<8x96xf32>
    %677 = arith.divf %675, %676 : vector<8x96xf32>
    %678 = vector.extract_strided_slice %663 {offsets = [0, 96], sizes = [8, 32], strides = [1, 1]} : vector<8x128xf32> to vector<8x32xf32>
    %679 = math.tanh %678 : vector<8x32xf32>
    %680 = vector.extract_strided_slice %669 {offsets = [0, 32], sizes = [8, 32], strides = [1, 1]} : vector<8x96xf32> to vector<8x32xf32>
    %681 = arith.mulf %680, %632 : vector<8x32xf32>
    %682 = vector.extract_strided_slice %669 {offsets = [0, 0], sizes = [8, 32], strides = [1, 1]} : vector<8x96xf32> to vector<8x32xf32>
    %683 = arith.mulf %682, %671 : vector<8x32xf32>
    %684 = arith.addf %681, %683 : vector<8x32xf32>
    %685 = vector.extract_strided_slice %677 {offsets = [0, 32], sizes = [8, 32], strides = [1, 1]} : vector<8x96xf32> to vector<8x32xf32>
    %686 = arith.mulf %685, %637 : vector<8x32xf32>
    %687 = vector.extract_strided_slice %677 {offsets = [0, 0], sizes = [8, 32], strides = [1, 1]} : vector<8x96xf32> to vector<8x32xf32>
    %688 = arith.mulf %687, %679 : vector<8x32xf32>
    %689 = arith.addf %686, %688 : vector<8x32xf32>
    %690 = vector.extract_strided_slice %669 {offsets = [0, 64], sizes = [8, 32], strides = [1, 1]} : vector<8x96xf32> to vector<8x32xf32>
    %691 = math.tanh %684 : vector<8x32xf32>
    %692 = arith.mulf %690, %691 : vector<8x32xf32>
    %693 = vector.extract_strided_slice %677 {offsets = [0, 64], sizes = [8, 32], strides = [1, 1]} : vector<8x96xf32> to vector<8x32xf32>
    %694 = math.tanh %689 : vector<8x32xf32>
    %695 = arith.mulf %693, %694 : vector<8x32xf32>
    %696 = arith.index_cast %649 : i32 to index
    %c0_159 = arith.constant 0 : index
    %697 = vector.load %arg13[%696, %c0_159] : memref<64x32xf32, #tpu.memory_space<vmem>>, vector<8x32xf32>
    tpu.vector_store %arg13[%696, %c0_159], %692 {strides = array<i32>} : memref<64x32xf32, #tpu.memory_space<vmem>>, vector<8x32xf32>,
    %698 = arith.index_cast %652 : i32 to index
    %c0_160 = arith.constant 0 : index
    %699 = vector.load %arg14[%698, %c0_160] : memref<64x32xf32, #tpu.memory_space<vmem>>, vector<8x32xf32>
    tpu.vector_store %arg14[%698, %c0_160], %695 {strides = array<i32>} : memref<64x32xf32, #tpu.memory_space<vmem>>, vector<8x32xf32>,
    %c5_i32_161 = arith.constant 5 : i32
    %c8_i32_162 = arith.constant 8 : i32
    %700 = arith.muli %c5_i32_161, %c8_i32_162 : i32
    %701 = tpu.assume_multiple %700, 8 : i32
    %c7_i32_163 = arith.constant 7 : i32
    %702 = arith.subi %c7_i32_163, %c5_i32_161 : i32
    %c8_i32_164 = arith.constant 8 : i32
    %703 = arith.muli %702, %c8_i32_164 : i32
    %704 = tpu.assume_multiple %703, 8 : i32
    %705 = tpu.concatenate %692, %695 in 1 : vector<8x32xf32>, vector<8x32xf32> -> vector<8x64xf32>
    %706 = arith.truncf %705 : vector<8x64xf32> to vector<8x64xbf16>
    %cst_165 = arith.constant dense<0.000000e+00> : vector<8x256xf32>
    %707 = tpu.matmul %706, %438, %cst_165 {dimension_numbers = #tpu.dot_dimension_numbers<[1], [0], [0], [1], [0, 0, 1, 1], [], []>} : vector<8x64xbf16>, vector<64x256xbf16>, vector<8x256xf32> -> vector<8x256xf32>
    %708 = arith.index_cast %701 : i32 to index
    %c0_166 = arith.constant 0 : index
    %709 = vector.load %arg12[%708, %c0_166] : memref<64x256xf32, #tpu.memory_space<vmem>>, vector<8x128xf32>
    %710 = vector.extract_strided_slice %707 {offsets = [0, 0], sizes = [8, 128], strides = [1, 1]} : vector<8x256xf32> to vector<8x128xf32>
    %711 = arith.addf %709, %710 : vector<8x128xf32>
    %712 = arith.index_cast %704 : i32 to index
    %c128_167 = arith.constant 128 : index
    %713 = vector.load %arg12[%712, %c128_167] : memref<64x256xf32, #tpu.memory_space<vmem>>, vector<8x128xf32>
    %714 = vector.extract_strided_slice %707 {offsets = [0, 128], sizes = [8, 128], strides = [1, 1]} : vector<8x256xf32> to vector<8x128xf32>
    %715 = arith.addf %713, %714 : vector<8x128xf32>
    %716 = vector.extract_strided_slice %711 {offsets = [0, 0], sizes = [8, 96], strides = [1, 1]} : vector<8x128xf32> to vector<8x96xf32>
    %717 = arith.negf %716 : vector<8x96xf32>
    %718 = math.exp %717 : vector<8x96xf32>
    %cst_168 = arith.constant 1.000000e+00 : f32
    %719 = vector.broadcast %cst_168 : f32 to vector<8x96xf32>
    %720 = arith.addf %719, %718 : vector<8x96xf32>
    %721 = arith.divf %719, %720 : vector<8x96xf32>
    %722 = vector.extract_strided_slice %711 {offsets = [0, 96], sizes = [8, 32], strides = [1, 1]} : vector<8x128xf32> to vector<8x32xf32>
    %723 = math.tanh %722 : vector<8x32xf32>
    %724 = vector.extract_strided_slice %715 {offsets = [0, 0], sizes = [8, 96], strides = [1, 1]} : vector<8x128xf32> to vector<8x96xf32>
    %725 = arith.negf %724 : vector<8x96xf32>
    %726 = math.exp %725 : vector<8x96xf32>
    %cst_169 = arith.constant 1.000000e+00 : f32
    %727 = vector.broadcast %cst_169 : f32 to vector<8x96xf32>
    %728 = arith.addf %727, %726 : vector<8x96xf32>
    %729 = arith.divf %727, %728 : vector<8x96xf32>
    %730 = vector.extract_strided_slice %715 {offsets = [0, 96], sizes = [8, 32], strides = [1, 1]} : vector<8x128xf32> to vector<8x32xf32>
    %731 = math.tanh %730 : vector<8x32xf32>
    %732 = vector.extract_strided_slice %721 {offsets = [0, 32], sizes = [8, 32], strides = [1, 1]} : vector<8x96xf32> to vector<8x32xf32>
    %733 = arith.mulf %732, %684 : vector<8x32xf32>
    %734 = vector.extract_strided_slice %721 {offsets = [0, 0], sizes = [8, 32], strides = [1, 1]} : vector<8x96xf32> to vector<8x32xf32>
    %735 = arith.mulf %734, %723 : vector<8x32xf32>
    %736 = arith.addf %733, %735 : vector<8x32xf32>
    %737 = vector.extract_strided_slice %729 {offsets = [0, 32], sizes = [8, 32], strides = [1, 1]} : vector<8x96xf32> to vector<8x32xf32>
    %738 = arith.mulf %737, %689 : vector<8x32xf32>
    %739 = vector.extract_strided_slice %729 {offsets = [0, 0], sizes = [8, 32], strides = [1, 1]} : vector<8x96xf32> to vector<8x32xf32>
    %740 = arith.mulf %739, %731 : vector<8x32xf32>
    %741 = arith.addf %738, %740 : vector<8x32xf32>
    %742 = vector.extract_strided_slice %721 {offsets = [0, 64], sizes = [8, 32], strides = [1, 1]} : vector<8x96xf32> to vector<8x32xf32>
    %743 = math.tanh %736 : vector<8x32xf32>
    %744 = arith.mulf %742, %743 : vector<8x32xf32>
    %745 = vector.extract_strided_slice %729 {offsets = [0, 64], sizes = [8, 32], strides = [1, 1]} : vector<8x96xf32> to vector<8x32xf32>
    %746 = math.tanh %741 : vector<8x32xf32>
    %747 = arith.mulf %745, %746 : vector<8x32xf32>
    %748 = arith.index_cast %701 : i32 to index
    %c0_170 = arith.constant 0 : index
    %749 = vector.load %arg13[%748, %c0_170] : memref<64x32xf32, #tpu.memory_space<vmem>>, vector<8x32xf32>
    tpu.vector_store %arg13[%748, %c0_170], %744 {strides = array<i32>} : memref<64x32xf32, #tpu.memory_space<vmem>>, vector<8x32xf32>,
    %750 = arith.index_cast %704 : i32 to index
    %c0_171 = arith.constant 0 : index
    %751 = vector.load %arg14[%750, %c0_171] : memref<64x32xf32, #tpu.memory_space<vmem>>, vector<8x32xf32>
    tpu.vector_store %arg14[%750, %c0_171], %747 {strides = array<i32>} : memref<64x32xf32, #tpu.memory_space<vmem>>, vector<8x32xf32>,
    %c6_i32_172 = arith.constant 6 : i32
    %c8_i32_173 = arith.constant 8 : i32
    %752 = arith.muli %c6_i32_172, %c8_i32_173 : i32
    %753 = tpu.assume_multiple %752, 8 : i32
    %c7_i32_174 = arith.constant 7 : i32
    %754 = arith.subi %c7_i32_174, %c6_i32_172 : i32
    %c8_i32_175 = arith.constant 8 : i32
    %755 = arith.muli %754, %c8_i32_175 : i32
    %756 = tpu.assume_multiple %755, 8 : i32
    %757 = tpu.concatenate %744, %747 in 1 : vector<8x32xf32>, vector<8x32xf32> -> vector<8x64xf32>
    %758 = arith.truncf %757 : vector<8x64xf32> to vector<8x64xbf16>
    %cst_176 = arith.constant dense<0.000000e+00> : vector<8x256xf32>
    %759 = tpu.matmul %758, %438, %cst_176 {dimension_numbers = #tpu.dot_dimension_numbers<[1], [0], [0], [1], [0, 0, 1, 1], [], []>} : vector<8x64xbf16>, vector<64x256xbf16>, vector<8x256xf32> -> vector<8x256xf32>
    %760 = arith.index_cast %753 : i32 to index
    %c0_177 = arith.constant 0 : index
    %761 = vector.load %arg12[%760, %c0_177] : memref<64x256xf32, #tpu.memory_space<vmem>>, vector<8x128xf32>
    %762 = vector.extract_strided_slice %759 {offsets = [0, 0], sizes = [8, 128], strides = [1, 1]} : vector<8x256xf32> to vector<8x128xf32>
    %763 = arith.addf %761, %762 : vector<8x128xf32>
    %764 = arith.index_cast %756 : i32 to index
    %c128_178 = arith.constant 128 : index
    %765 = vector.load %arg12[%764, %c128_178] : memref<64x256xf32, #tpu.memory_space<vmem>>, vector<8x128xf32>
    %766 = vector.extract_strided_slice %759 {offsets = [0, 128], sizes = [8, 128], strides = [1, 1]} : vector<8x256xf32> to vector<8x128xf32>
    %767 = arith.addf %765, %766 : vector<8x128xf32>
    %768 = vector.extract_strided_slice %763 {offsets = [0, 0], sizes = [8, 96], strides = [1, 1]} : vector<8x128xf32> to vector<8x96xf32>
    %769 = arith.negf %768 : vector<8x96xf32>
    %770 = math.exp %769 : vector<8x96xf32>
    %cst_179 = arith.constant 1.000000e+00 : f32
    %771 = vector.broadcast %cst_179 : f32 to vector<8x96xf32>
    %772 = arith.addf %771, %770 : vector<8x96xf32>
    %773 = arith.divf %771, %772 : vector<8x96xf32>
    %774 = vector.extract_strided_slice %763 {offsets = [0, 96], sizes = [8, 32], strides = [1, 1]} : vector<8x128xf32> to vector<8x32xf32>
    %775 = math.tanh %774 : vector<8x32xf32>
    %776 = vector.extract_strided_slice %767 {offsets = [0, 0], sizes = [8, 96], strides = [1, 1]} : vector<8x128xf32> to vector<8x96xf32>
    %777 = arith.negf %776 : vector<8x96xf32>
    %778 = math.exp %777 : vector<8x96xf32>
    %cst_180 = arith.constant 1.000000e+00 : f32
    %779 = vector.broadcast %cst_180 : f32 to vector<8x96xf32>
    %780 = arith.addf %779, %778 : vector<8x96xf32>
    %781 = arith.divf %779, %780 : vector<8x96xf32>
    %782 = vector.extract_strided_slice %767 {offsets = [0, 96], sizes = [8, 32], strides = [1, 1]} : vector<8x128xf32> to vector<8x32xf32>
    %783 = math.tanh %782 : vector<8x32xf32>
    %784 = vector.extract_strided_slice %773 {offsets = [0, 32], sizes = [8, 32], strides = [1, 1]} : vector<8x96xf32> to vector<8x32xf32>
    %785 = arith.mulf %784, %736 : vector<8x32xf32>
    %786 = vector.extract_strided_slice %773 {offsets = [0, 0], sizes = [8, 32], strides = [1, 1]} : vector<8x96xf32> to vector<8x32xf32>
    %787 = arith.mulf %786, %775 : vector<8x32xf32>
    %788 = arith.addf %785, %787 : vector<8x32xf32>
    %789 = vector.extract_strided_slice %781 {offsets = [0, 32], sizes = [8, 32], strides = [1, 1]} : vector<8x96xf32> to vector<8x32xf32>
    %790 = arith.mulf %789, %741 : vector<8x32xf32>
    %791 = vector.extract_strided_slice %781 {offsets = [0, 0], sizes = [8, 32], strides = [1, 1]} : vector<8x96xf32> to vector<8x32xf32>
    %792 = arith.mulf %791, %783 : vector<8x32xf32>
    %793 = arith.addf %790, %792 : vector<8x32xf32>
    %794 = vector.extract_strided_slice %773 {offsets = [0, 64], sizes = [8, 32], strides = [1, 1]} : vector<8x96xf32> to vector<8x32xf32>
    %795 = math.tanh %788 : vector<8x32xf32>
    %796 = arith.mulf %794, %795 : vector<8x32xf32>
    %797 = vector.extract_strided_slice %781 {offsets = [0, 64], sizes = [8, 32], strides = [1, 1]} : vector<8x96xf32> to vector<8x32xf32>
    %798 = math.tanh %793 : vector<8x32xf32>
    %799 = arith.mulf %797, %798 : vector<8x32xf32>
    %800 = arith.index_cast %753 : i32 to index
    %c0_181 = arith.constant 0 : index
    %801 = vector.load %arg13[%800, %c0_181] : memref<64x32xf32, #tpu.memory_space<vmem>>, vector<8x32xf32>
    tpu.vector_store %arg13[%800, %c0_181], %796 {strides = array<i32>} : memref<64x32xf32, #tpu.memory_space<vmem>>, vector<8x32xf32>,
    %802 = arith.index_cast %756 : i32 to index
    %c0_182 = arith.constant 0 : index
    %803 = vector.load %arg14[%802, %c0_182] : memref<64x32xf32, #tpu.memory_space<vmem>>, vector<8x32xf32>
    tpu.vector_store %arg14[%802, %c0_182], %799 {strides = array<i32>} : memref<64x32xf32, #tpu.memory_space<vmem>>, vector<8x32xf32>,
    %c7_i32_183 = arith.constant 7 : i32
    %c8_i32_184 = arith.constant 8 : i32
    %804 = arith.muli %c7_i32_183, %c8_i32_184 : i32
    %805 = tpu.assume_multiple %804, 8 : i32
    %c7_i32_185 = arith.constant 7 : i32
    %806 = arith.subi %c7_i32_185, %c7_i32_183 : i32
    %c8_i32_186 = arith.constant 8 : i32
    %807 = arith.muli %806, %c8_i32_186 : i32
    %808 = tpu.assume_multiple %807, 8 : i32
    %809 = tpu.concatenate %796, %799 in 1 : vector<8x32xf32>, vector<8x32xf32> -> vector<8x64xf32>
    %810 = arith.truncf %809 : vector<8x64xf32> to vector<8x64xbf16>
    %cst_187 = arith.constant dense<0.000000e+00> : vector<8x256xf32>
    %811 = tpu.matmul %810, %438, %cst_187 {dimension_numbers = #tpu.dot_dimension_numbers<[1], [0], [0], [1], [0, 0, 1, 1], [], []>} : vector<8x64xbf16>, vector<64x256xbf16>, vector<8x256xf32> -> vector<8x256xf32>
    %812 = arith.index_cast %805 : i32 to index
    %c0_188 = arith.constant 0 : index
    %813 = vector.load %arg12[%812, %c0_188] : memref<64x256xf32, #tpu.memory_space<vmem>>, vector<8x128xf32>
    %814 = vector.extract_strided_slice %811 {offsets = [0, 0], sizes = [8, 128], strides = [1, 1]} : vector<8x256xf32> to vector<8x128xf32>
    %815 = arith.addf %813, %814 : vector<8x128xf32>
    %816 = arith.index_cast %808 : i32 to index
    %c128_189 = arith.constant 128 : index
    %817 = vector.load %arg12[%816, %c128_189] : memref<64x256xf32, #tpu.memory_space<vmem>>, vector<8x128xf32>
    %818 = vector.extract_strided_slice %811 {offsets = [0, 128], sizes = [8, 128], strides = [1, 1]} : vector<8x256xf32> to vector<8x128xf32>
    %819 = arith.addf %817, %818 : vector<8x128xf32>
    %820 = vector.extract_strided_slice %815 {offsets = [0, 0], sizes = [8, 96], strides = [1, 1]} : vector<8x128xf32> to vector<8x96xf32>
    %821 = arith.negf %820 : vector<8x96xf32>
    %822 = math.exp %821 : vector<8x96xf32>
    %cst_190 = arith.constant 1.000000e+00 : f32
    %823 = vector.broadcast %cst_190 : f32 to vector<8x96xf32>
    %824 = arith.addf %823, %822 : vector<8x96xf32>
    %825 = arith.divf %823, %824 : vector<8x96xf32>
    %826 = vector.extract_strided_slice %815 {offsets = [0, 96], sizes = [8, 32], strides = [1, 1]} : vector<8x128xf32> to vector<8x32xf32>
    %827 = math.tanh %826 : vector<8x32xf32>
    %828 = vector.extract_strided_slice %819 {offsets = [0, 0], sizes = [8, 96], strides = [1, 1]} : vector<8x128xf32> to vector<8x96xf32>
    %829 = arith.negf %828 : vector<8x96xf32>
    %830 = math.exp %829 : vector<8x96xf32>
    %cst_191 = arith.constant 1.000000e+00 : f32
    %831 = vector.broadcast %cst_191 : f32 to vector<8x96xf32>
    %832 = arith.addf %831, %830 : vector<8x96xf32>
    %833 = arith.divf %831, %832 : vector<8x96xf32>
    %834 = vector.extract_strided_slice %819 {offsets = [0, 96], sizes = [8, 32], strides = [1, 1]} : vector<8x128xf32> to vector<8x32xf32>
    %835 = math.tanh %834 : vector<8x32xf32>
    %836 = vector.extract_strided_slice %825 {offsets = [0, 32], sizes = [8, 32], strides = [1, 1]} : vector<8x96xf32> to vector<8x32xf32>
    %837 = arith.mulf %836, %788 : vector<8x32xf32>
    %838 = vector.extract_strided_slice %825 {offsets = [0, 0], sizes = [8, 32], strides = [1, 1]} : vector<8x96xf32> to vector<8x32xf32>
    %839 = arith.mulf %838, %827 : vector<8x32xf32>
    %840 = arith.addf %837, %839 : vector<8x32xf32>
    %841 = vector.extract_strided_slice %833 {offsets = [0, 32], sizes = [8, 32], strides = [1, 1]} : vector<8x96xf32> to vector<8x32xf32>
    %842 = arith.mulf %841, %793 : vector<8x32xf32>
    %843 = vector.extract_strided_slice %833 {offsets = [0, 0], sizes = [8, 32], strides = [1, 1]} : vector<8x96xf32> to vector<8x32xf32>
    %844 = arith.mulf %843, %835 : vector<8x32xf32>
    %845 = arith.addf %842, %844 : vector<8x32xf32>
    %846 = vector.extract_strided_slice %825 {offsets = [0, 64], sizes = [8, 32], strides = [1, 1]} : vector<8x96xf32> to vector<8x32xf32>
    %847 = math.tanh %840 : vector<8x32xf32>
    %848 = arith.mulf %846, %847 : vector<8x32xf32>
    %849 = vector.extract_strided_slice %833 {offsets = [0, 64], sizes = [8, 32], strides = [1, 1]} : vector<8x96xf32> to vector<8x32xf32>
    %850 = math.tanh %845 : vector<8x32xf32>
    %851 = arith.mulf %849, %850 : vector<8x32xf32>
    %852 = arith.index_cast %805 : i32 to index
    %c0_192 = arith.constant 0 : index
    %853 = vector.load %arg13[%852, %c0_192] : memref<64x32xf32, #tpu.memory_space<vmem>>, vector<8x32xf32>
    tpu.vector_store %arg13[%852, %c0_192], %848 {strides = array<i32>} : memref<64x32xf32, #tpu.memory_space<vmem>>, vector<8x32xf32>,
    %854 = arith.index_cast %808 : i32 to index
    %c0_193 = arith.constant 0 : index
    %855 = vector.load %arg14[%854, %c0_193] : memref<64x32xf32, #tpu.memory_space<vmem>>, vector<8x32xf32>
    tpu.vector_store %arg14[%854, %c0_193], %851 {strides = array<i32>} : memref<64x32xf32, #tpu.memory_space<vmem>>, vector<8x32xf32>,
    %c8_i32_194 = arith.constant 8 : i32
    %c0_195 = arith.constant 0 : index
    %c0_196 = arith.constant 0 : index
    %856 = vector.load %arg13[%c0_195, %c0_196] : memref<64x32xf32, #tpu.memory_space<vmem>>, vector<64x32xf32>
    %857 = arith.truncf %856 : vector<64x32xf32> to vector<64x32xbf16>
    %c0_197 = arith.constant 0 : index
    %c0_198 = arith.constant 0 : index
    %858 = vector.load %arg8[%c0_197, %c0_198] : memref<32x32xbf16, #tpu.memory_space<vmem>>, vector<32x32xbf16>
    %cst_199 = arith.constant dense<0.000000e+00> : vector<64x32xf32>
    %859 = tpu.matmul %857, %858, %cst_199 {dimension_numbers = #tpu.dot_dimension_numbers<[1], [0], [0], [1], [0, 0, 1, 1], [], []>} : vector<64x32xbf16>, vector<32x32xbf16>, vector<64x32xf32> -> vector<64x32xf32>
    %c0_200 = arith.constant 0 : index
    %c0_201 = arith.constant 0 : index
    %860 = vector.load %arg14[%c0_200, %c0_201] : memref<64x32xf32, #tpu.memory_space<vmem>>, vector<64x32xf32>
    %861 = arith.truncf %860 : vector<64x32xf32> to vector<64x32xbf16>
    %c0_202 = arith.constant 0 : index
    %c0_203 = arith.constant 0 : index
    %862 = vector.load %arg9[%c0_202, %c0_203] : memref<32x32xbf16, #tpu.memory_space<vmem>>, vector<32x32xbf16>
    %cst_204 = arith.constant dense<0.000000e+00> : vector<64x32xf32>
    %863 = tpu.matmul %861, %862, %cst_204 {dimension_numbers = #tpu.dot_dimension_numbers<[1], [0], [0], [1], [0, 0, 1, 1], [], []>} : vector<64x32xbf16>, vector<32x32xbf16>, vector<64x32xf32> -> vector<64x32xf32>
    %864 = arith.addf %859, %863 : vector<64x32xf32>
    %c0_205 = arith.constant 0 : index
    %c0_206 = arith.constant 0 : index
    %865 = vector.load %arg10[%c0_205, %c0_206] : memref<1x32xf32, #tpu.memory_space<vmem>>, vector<1x32xf32>
    %866 = vector.broadcast %865 : vector<1x32xf32> to vector<64x32xf32>
    %867 = arith.addf %864, %866 : vector<64x32xf32>
    %c0_207 = arith.constant 0 : index
    %c0_208 = arith.constant 0 : index
    %868 = vector.load %arg11[%c0_207, %c0_208] : memref<64x32xf32, #tpu.memory_space<vmem>>, vector<64x32xf32>
    tpu.vector_store %arg11[%c0_207, %c0_208], %867 {strides = array<i32>} : memref<64x32xf32, #tpu.memory_space<vmem>>, vector<64x32xf32>,
    return
  }
}

</mosaic_0001>

<bundles_post_ra>
// kernel: encoder_forward.1
= control target key start
LH: loop header
LB: loop body
LE: loop exit
PB: predicated region body
PF: predicated region fallthrough
CT: control target
= control target key end

     0   :  { %vm98_vm0 = vcmask 1043456   ;;  %v3097_v1 = vmov 0   ;;  %vm85_vm1 = vcmask 64512   ;;  %v3098_v15 = vmov 0.0|0.0   ;;  %s3101_s23 = smov 96   ;;  %s3866_s1 = inlined_call_operand.vmem [shape: bf16[8,256], index: 1, kind: input, shape index: {}]   ;;  %s3867_s2 = inlined_call_operand.vmem [shape: bf16[64,256], index: 2, kind: input, shape index: {}]   ;;  %s3868_s0 = inlined_call_operand.vmem [shape: bf16[64,8], index: 0, kind: input, shape index: {}]   ;;  %s3869_s3 = inlined_call_operand.vmem [shape: f32[1,256], index: 3, kind: input, shape index: {}]   ;;  %s3870_s5 = inlined_call_operand.vmem [shape: bf16[32,256], index: 5, kind: input, shape index: {}]   ;;  %s3871_s4 = inlined_call_operand.vmem [shape: bf16[32,256], index: 4, kind: input, shape index: {}]   ;;  %s3872_s6 = inlined_call_operand.vmem [shape: bf16[64,256], index: 6, kind: input, shape index: {}]   ;;  %s3873_s7 = inlined_call_operand.vmem [shape: f32[1,256], index: 7, kind: input, shape index: {}]   ;;  %s3874_s9 = inlined_call_operand.vmem [shape: bf16[32,32], index: 9, kind: input, shape index: {}]   ;;  %s3875_s8 = inlined_call_operand.vmem [shape: bf16[32,32], index: 8, kind: input, shape index: {}]   ;;  %s3876_s10 = inlined_call_operand.vmem [shape: f32[1,32], index: 10, kind: input, shape index: {}]   ;;  %s3877_s11 = inlined_call_operand.vmem [shape: f32[64,32], index: 11, kind: output, shape index: {}]  }
   0x1   :  { %v47_v0 = vld [vmem:[%s3866_s1] sm:$0xff]  ;;  %137 = vmatprep.mubr.bf16.mxu0 %v3097_v1  ;;  %279 = vmatprep.mubr.bf16.mxu1 %v3097_v1  ;;  %v3184_v8 = vld [vmem:[%s3867_s2 + $0x14] ss:$8 sps:$4 sm:$0xff]   ;;  %v3190_v9 = vld [vmem:[%s3867_s2 + $0x10] ss:$8 sps:$4 sm:$0xff]   ;;  %v50_v18 = vlaneseq  ;;  %vm350_vm2 = vcmask 261120  }
   0x2   :  { %v2629_v2 = vcombine.high %v47_v0, %v47_v0  ;;  %v3170_v3 = vld [vmem:[%s3867_s2 + $0x4] ss:$8 sps:$4 sm:$0xff]   ;;  %v2628_v4 = vcombine.low %v47_v0, %v47_v0  ;;  %v3175_v5 = vld [vmem:[%s3867_s2] ss:$8 sps:$4 sm:$0xff]   ;;  %v3211_v12 = vld [vmem:[%s3867_s2 + $0x34] ss:$8 sps:$4 sm:$0xff]  }
   0x3   :  { %247 = vmatprep.subr.bf16.mxu1 %v3170_v3  ;;  %v2800_v7 = vld [vmem:[%s3868_s0] sm:$0xff]   ;;  %v2807_v13 = vld [vmem:[%s3868_s0 + $0x8] sm:$0xff]   ;;  %v3222_v14 = vld [vmem:[%s3867_s2 + $0x30] ss:$8 sps:$4 sm:$0xff]   ;;  %v3255_v19 = vshrl.u32 %v50_v18, 7  ;;  %vm243_vm3 = vcmask 523264  }
   0x4   :  { %2630 = vmatprep.subr.msk.bf16.mxu0 %vm98_vm0, %v2629_v2  ;;  %v100_v6 = vsel %vm98_vm0, %v2628_v4, 0  ;;  %248 = vmatpush1.bf16.msra.mxu1 %v3175_v5  ;;  %v3196_v10 = vld [vmem:[%s3867_s2 + $0x24] ss:$8 sps:$4 sm:$0xff]   ;;  %v3204_v11 = vld [vmem:[%s3867_s2 + $0x20] ss:$8 sps:$4 sm:$0xff]   ;;  %v2811_v16 = vld [vmem:[%s3868_s0 + $0x10] sm:$0xff]  }
   0x5   :  { %106 = vmatpush1.bf16.msra.mxu0 %v100_v6  ;;  %249 = vmatprep.subr.bf16.mxu1 %v3184_v8  ;;  %v2812_v17 = vld [vmem:[%s3868_s0 + $0x18] sm:$0xff]   ;;  %v56_v20 = vsub.s32 1, %v3255_v19  ;;  %v48_v21 = vld [vmem:[%s3869_s3] sm:$0x3]  ;;  %v52_v22 = vsub.s32 0, %v3255_v19  ;;  %s3099_s0 = smov 32  }
   0x6   :  { %485 = vmatprep.subr.bf16.mxu0 %v3170_v3  ;;  %s3100_s3 = smov 64  }
   0x7   :  { %v57_v23 = vrot.slane %v48_v21, %v56_v20  ;;  %v53_v25 = vrot.slane %v48_v21, %v52_v22 }
   0x8   :  { %2631 = vmatmul.mubr.msk.bf16.vlgmr.msra.gmra.mrb[0].mxu0 %vm85_vm1, %v2800_v7  ;;  %250 = vmatpush1.bf16.msra.mxu1 %v3190_v9 }
   0x9   :  { %147 = vmatprep.mubr.bf16.mxu0 %v3097_v1  ;;  %251 = vmatprep.subr.bf16.mxu1 %v3196_v10 }
   0xa   :  { %486 = vmatpush1.bf16.msra.mxu0 %v3175_v5 }
   0xb   :  { %487 = vmatprep.subr.bf16.mxu0 %v3184_v8 }
   0xc   :  { %252 = vmatpush1.bf16.msra.mxu1 %v3204_v11 }
   0xd   :  { %253 = vmatprep.subr.bf16.mxu1 %v3211_v12 }
   0xe   :  { %488 = vmatpush1.bf16.msra.mxu0 %v3190_v9 }
   0xf   :  { %489 = vmatprep.subr.bf16.mxu0 %v3196_v10 }
  0x10   :  { %2632 = vmatmul.mubr.msk.bf16.gmra.mrb[4].mxu0 %vm85_vm1, %v2807_v13  ;;  %254 = vmatpush1.bf16.msra.mxu1 %v3222_v14 }
  0x11   :  { %157 = vmatprep.mubr.bf16.mxu0 %v3097_v1  ;;  %366 = vmatprep.subr.bf16.mxu1 %v3170_v3 }
  0x12   :  { %490 = vmatpush1.bf16.msra.mxu0 %v3204_v11 }
  0x13   :  { %491 = vmatprep.subr.bf16.mxu0 %v3211_v12  ;;  %280 = vmatmul.mubr.bf16.vlgmr.msra.gmra.mrb[0].mxu1 %v3098_v15 }
  0x14   :  { %367 = vmatpush1.bf16.msra.mxu1 %v3175_v5  ;;  %398 = vmatprep.mubr.bf16.mxu1 %v3097_v1 }
  0x15   :  { %368 = vmatprep.subr.bf16.mxu1 %v3184_v8 }
  0x16   :  { %492 = vmatpush1.bf16.msra.mxu0 %v3222_v14 }
  0x17   :  { %723 = vmatprep.subr.bf16.mxu0 %v3170_v3 }
  0x18   :  { %2633 = vmatmul.mubr.msk.bf16.gmra.mrb[8].mxu0 %vm85_vm1, %v2811_v16  ;;  %369 = vmatpush1.bf16.msra.mxu1 %v3190_v9 }
  0x19   :  { %167 = vmatprep.mubr.bf16.mxu0 %v3097_v1  ;;  %370 = vmatprep.subr.bf16.mxu1 %v3196_v10 }
  0x1c   :  { %371 = vmatpush1.bf16.msra.mxu1 %v3204_v11 }
  0x1d   :  { %372 = vmatprep.subr.bf16.mxu1 %v3211_v12 }
  0x20   :  { %2634 = vmatmul.mubr.msk.bf16.gmra.mrb[12].mxu0 %vm85_vm1, %v2812_v17  ;;  %373 = vmatpush1.bf16.msra.mxu1 %v3222_v14 }
  0x21   :  { %517 = vmatprep.mubr.bf16.mxu0 %v3097_v1  ;;  %604 = vmatprep.subr.bf16.mxu1 %v3170_v3 }
  0xdb   :  { %v139_v24 = vpop.f32.mrb[0].mxu0 }
  0xdc   :  { %v141_v26 = vpop.f32.mrb[1].mxu0  ;;  %v140_v37 = vadd.f32 %v139_v24, %v53_v25 }
  0xdd   :  { %v3266_v27 = vadd.f32 %v141_v26, %v57_v23  ;;  %v143_v28 = vpop.f32.mrb[2].mxu0 }
  0xde   :  { %v3268_v29 = vadd.f32 %v143_v28, %v53_v25  ;;  %v145_v30 = vpop.f32.mrb[3].mxu0 }
  0xdf   :  { %v3270_v31 = vadd.f32 %v145_v30, %v57_v23 }
  0xe3   :  { %v149_v32 = vpop.f32.mrb[4].mxu0 }
  0xe4   :  { %v3272_v33 = vadd.f32 %v149_v32, %v53_v25  ;;  %v151_v34 = vpop.f32.mrb[5].mxu0 }
  0xe5   :  { %v3274_v35 = vadd.f32 %v151_v34, %v57_v23  ;;  %v153_v36 = vpop.f32.mrb[6].mxu0 }
  0xe6   :  { %v3276_v38 = vadd.f32 %v153_v36, %v53_v25  ;;  %v155_v39 = vpop.f32.mrb[7].mxu0  ;;  %v281_v41 = vpop.f32.mrb[0].mxu1 }
  0xe7   :  { %v3278_v40 = vadd.f32 %v155_v39, %v57_v23  ;;  %v292_v42 = vadd.f32 %v281_v41, %v140_v37  ;;  %v283_v43 = vpop.f32.mrb[1].mxu1 }
  0xe8   :  { %v285_v44 = vpop.f32.mrb[2].mxu1 }
  0xe9   :  { %2841 = vtanh.f32 %v292_v42  ;;  %v286_v45 = vpop.f32.mrb[3].mxu1  ;;  %v2643_v2 = vmul.f32 -1.442695, %v292_v42 }
  0xeb   :  { %v159_v46 = vpop.f32.mrb[8].mxu0 }
  0xec   :  { %v3280_v47 = vadd.f32 %v159_v46, %v53_v25  ;;  %v161_v48 = vpop.f32.mrb[9].mxu0 }
  0xed   :  { %v3282_v49 = vadd.f32 %v161_v48, %v57_v23  ;;  %v163_v50 = vpop.f32.mrb[10].mxu0 }
  0xee   :  { %v3284_v51 = vadd.f32 %v163_v50, %v53_v25  ;;  %v165_v52 = vpop.f32.mrb[11].mxu0 }
  0xef   :  { %v3286_v53 = vadd.f32 %v165_v52, %v57_v23 }
  0xf3   :  { %v169_v54 = vpop.f32.mrb[12].mxu0  ;;  %v2842_v55 = vpop.eup %2841 }
  0xf4   :  { %v3288_v56 = vadd.f32 %v169_v54, %v53_v25  ;;  %v171_v57 = vpop.f32.mrb[13].mxu0  ;;  %314 = vrot.lane.b32.xlu0 %v2842_v55, %s3099_s0 }
  0xf5   :  { %v3290_v58 = vadd.f32 %v171_v57, %v57_v23  ;;  %v173_v59 = vpop.f32.mrb[14].mxu0 }
  0xf6   :  { %v3293_v60 = vadd.f32 %v173_v59, %v53_v25  ;;  %v175_v61 = vpop.f32.mrb[15].mxu0 }
  0xf7   :  { %v176_v62 = vadd.f32 %v175_v61, %v57_v23 }
  0xf9   :  { %v297_v63 = vadd.f32 %v283_v43, %v176_v62 }
  0xfb   :  { %2843 = vtanh.f32 %v297_v63  ;;  %v2644_v7 = vmul.f32 -1.442695, %v297_v63 }
  0xfc   :  { %2845 = vpow2.f32 %v2643_v2 }
 0x105   :  { %v2844_v0 = vpop.eup %2843 }
 0x106   :  { %325 = vrot.lane.b32.xlu0 %v2844_v0, %s3099_s0  ;;  %v2846_v4 = vpop.eup %2845 }
 0x107   :  { %v301_v6 = vadd.f32 1.0, %v2846_v4 }
 0x109   :  { %2847 = vrcp.f32 %v301_v6 }
 0x10a   :  { %2849 = vpow2.f32 %v2644_v7 }
 0x113   :  { %v2848_v13 = vpop.eup %2847 }
 0x114   :  { %v2850_v16 = vpop.eup %2849  ;;  %v312_v26 = vmul.f32 0.0, %v2848_v13 }
 0x115   :  { %v308_v21 = vadd.f32 1.0, %v2850_v16 }
 0x117   :  { %2851 = vrcp.f32 %v308_v21 }
 0x121   :  { %v2852_v23 = vpop.eup %2851 }
 0x122   :  { %v323_v34 = vmul.f32 0.0, %v2852_v23 }
 0x166   :  { %v315_v17 = vpop.permute.xlu0 %314 }
 0x167   :  { %v317_v18 = vmul.f32 %v2848_v13, %v315_v17 }
 0x169   :  { %319 = vrot.lane.b32.xlu1 %v317_v18, %s3099_s0 }
 0x178   :  { %v326_v24 = vpop.permute.xlu0 %325 }
 0x179   :  { %v328_v25 = vmul.f32 %v2852_v23, %v326_v24 }
 0x17b   :  { %330 = vrot.lane.b32.xlu1 %v328_v25, %s3099_s0 }
 0x1db   :  { %v320_v28 = vpop.permute.xlu1 %319 }
 0x1dc   :  { %v3298_v30 = vadd.f32 %v320_v28, %v312_v26 }
 0x1de   :  { %2853 = vtanh.f32 %v3298_v30 }
 0x1e8   :  { %v2854_v32 = vpop.eup %2853 }
 0x1e9   :  { %336 = vrot.lane.b32.xlu0 %v2854_v32, %s3099_s0 }
 0x1ed   :  { %v331_v36 = vpop.permute.xlu1 %330 }
 0x1ee   :  { %v333_v37 = vadd.f32 %v331_v36, %v323_v34 }
 0x1f0   :  { %2855 = vtanh.f32 %v333_v37 }
 0x1fa   :  { %v2856_v39 = vpop.eup %2855 }
 0x1fb   :  { %342 = vrot.lane.b32.xlu1 %v2856_v39, %s3099_s0 }
 0x25b   :  { %v337_v41 = vpop.permute.xlu0 %336 }
 0x25c   :  { %v339_v42 = vmul.f32 %v2848_v13, %v337_v41 }
 0x25e   :  { %347 = vrot.lane.b32.xlu0 %v339_v42, %s3100_s3 }
 0x26d   :  { %v343_v43 = vpop.permute.xlu1 %342 }
 0x26e   :  { %v3304_v44 = vmul.f32 %v2852_v23, %v343_v43 }
 0x270   :  { %358 = vrot.lane.b32.xlu1 %v3304_v44, %s3101_s23 }
 0x2d0   :  { %v348_v45 = vpop.permute.xlu0 %347 }
 0x2d1   :  { %351 = vst.msk [vmem:[#allocation3] sm:$0xff] %vm350_vm2, %v348_v45 }
 0x2e2   :  { %v359_v46 = vpop.permute.xlu1 %358 }
 0x2e3   :  { %v361_v48 = vsel %vm350_vm2, %v348_v45, %v359_v46 }
 0x2e4   :  { %v362_v50 = vpack.c.bf16 %v361_v48, %v361_v48 }
 0x2e6   :  { %2645 = vmatmul.mubr.msk.bf16.vlgmr.msra.gmra.mrb[4].mxu1 %vm243_vm3, %v362_v50 }
 0x2e7   :  { %605 = vmatpush1.bf16.msra.mxu1 %v3175_v5  ;;  %636 = vmatprep.mubr.bf16.mxu1 %v3097_v1 }
 0x2e8   :  { %606 = vmatprep.subr.bf16.mxu1 %v3184_v8 }
 0x2eb   :  { %607 = vmatpush1.bf16.msra.mxu1 %v3190_v9 }
 0x2ec   :  { %608 = vmatprep.subr.bf16.mxu1 %v3196_v10 }
 0x2ef   :  { %609 = vmatpush1.bf16.msra.mxu1 %v3204_v11 }
 0x2f0   :  { %610 = vmatprep.subr.bf16.mxu1 %v3211_v12 }
 0x2f3   :  { %611 = vmatpush1.bf16.msra.mxu1 %v3222_v14 }
 0x2f4   :  { %836 = vmatprep.subr.bf16.mxu1 %v3170_v3 }
 0x3b9   :  { %v400_v52 = vpop.f32.mrb[4].mxu1 }
 0x3ba   :  { %v411_v54 = vadd.f32 %v400_v52, %v3268_v29  ;;  %v402_v55 = vpop.f32.mrb[5].mxu1 }
 0x3bb   :  { %v416_v57 = vadd.f32 %v402_v55, %v3290_v58  ;;  %v404_v59 = vpop.f32.mrb[6].mxu1 }
 0x3bc   :  { %2857 = vtanh.f32 %v411_v54  ;;  %v405_v61 = vpop.f32.mrb[7].mxu1  ;;  %v2646_v0 = vmul.f32 -1.442695, %v411_v54 }
 0x3bd   :  { %2859 = vtanh.f32 %v416_v57  ;;  %v2647_v2 = vmul.f32 -1.442695, %v416_v57 }
 0x3be   :  { %2861 = vpow2.f32 %v2646_v0 }
 0x3bf   :  { %2863 = vpow2.f32 %v2647_v2 }
 0x3c6   :  { %v2858_v62 = vpop.eup %2857 }
 0x3c7   :  { %v2860_v63 = vpop.eup %2859  ;;  %433 = vrot.lane.b32.xlu0 %v2858_v62, %s3099_s0 }
 0x3c8   :  { %444 = vrot.lane.b32.xlu1 %v2860_v63, %s3099_s0  ;;  %v2862_v4 = vpop.eup %2861 }
 0x3c9   :  { %v2864_v6 = vpop.eup %2863  ;;  %v420_v29 = vadd.f32 1.0, %v2862_v4 }
 0x3ca   :  { %v427_v7 = vadd.f32 1.0, %v2864_v6 }
 0x3cb   :  { %2865 = vrcp.f32 %v420_v29 }
 0x3cc   :  { %2867 = vrcp.f32 %v427_v7 }
 0x3d5   :  { %v2866_v58 = vpop.eup %2865 }
 0x3d6   :  { %v2868_v16 = vpop.eup %2867  ;;  %v431_v23 = vmul.f32 %v2866_v58, %v3298_v30 }
 0x3d7   :  { %v442_v25 = vmul.f32 %v2868_v16, %v333_v37 }
 0x439   :  { %v434_v13 = vpop.permute.xlu0 %433 }
 0x43a   :  { %v436_v17 = vmul.f32 %v2866_v58, %v434_v13  ;;  %v445_v18 = vpop.permute.xlu1 %444 }
 0x43b   :  { %v447_v21 = vmul.f32 %v2868_v16, %v445_v18 }
 0x43c   :  { %438 = vrot.lane.b32.xlu0 %v436_v17, %s3099_s0 }
 0x43d   :  { %449 = vrot.lane.b32.xlu1 %v447_v21, %s3099_s0 }
 0x4ae   :  { %v439_v24 = vpop.permute.xlu0 %438 }
 0x4af   :  { %v441_v26 = vadd.f32 %v439_v24, %v431_v23  ;;  %v450_v28 = vpop.permute.xlu1 %449 }
 0x4b0   :  { %v452_v32 = vadd.f32 %v450_v28, %v442_v25 }
 0x4b1   :  { %2869 = vtanh.f32 %v441_v26 }
 0x4b2   :  { %2871 = vtanh.f32 %v452_v32 }
 0x4bb   :  { %v2870_v34 = vpop.eup %2869 }
 0x4bc   :  { %v2872_v36 = vpop.eup %2871  ;;  %455 = vrot.lane.b32.xlu0 %v2870_v34, %s3099_s0 }
 0x4bd   :  { %461 = vrot.lane.b32.xlu1 %v2872_v36, %s3099_s0 }
 0x52e   :  { %v456_v39 = vpop.permute.xlu0 %455 }
 0x52f   :  { %v458_v41 = vmul.f32 %v2866_v58, %v456_v39  ;;  %v462_v42 = vpop.permute.xlu1 %461 }
 0x530   :  { %v3329_v43 = vmul.f32 %v2868_v16, %v462_v42 }
 0x531   :  { %466 = vrot.lane.b32.xlu0 %v458_v41, %s3100_s3 }
 0x532   :  { %477 = vrot.lane.b32.xlu1 %v3329_v43, %s3101_s23 }
 0x5a3   :  { %v467_v30 = vpop.permute.xlu0 %466 }
 0x5a4   :  { %470 = vst.msk [vmem:[#allocation3 + $0x8] sm:$0xff] %vm350_vm2, %v467_v30  ;;  %v478_v37 = vpop.permute.xlu1 %477 }
 0x5a5   :  { %v480_v45 = vsel %vm350_vm2, %v467_v30, %v478_v37 }
 0x5a6   :  { %v481_v46 = vpack.c.bf16 %v480_v45, %v480_v45 }
 0x5a8   :  { %2648 = vmatmul.mubr.msk.bf16.vlgmr.msra.gmra.mrb[16].mxu0 %vm243_vm3, %v481_v46 }
 0x5a9   :  { %724 = vmatpush1.bf16.msra.mxu0 %v3175_v5  ;;  %755 = vmatprep.mubr.bf16.mxu0 %v3097_v1 }
 0x5aa   :  { %725 = vmatprep.subr.bf16.mxu0 %v3184_v8 }
 0x5ad   :  { %726 = vmatpush1.bf16.msra.mxu0 %v3190_v9 }
 0x5ae   :  { %727 = vmatprep.subr.bf16.mxu0 %v3196_v10 }
 0x5b1   :  { %728 = vmatpush1.bf16.msra.mxu0 %v3204_v11 }
 0x5b2   :  { %729 = vmatprep.subr.bf16.mxu0 %v3211_v12 }
 0x5b5   :  { %730 = vmatpush1.bf16.msra.mxu0 %v3222_v14 }
 0x5b6   :  { %949 = vmatprep.subr.bf16.mxu0 %v3170_v3 }
 0x67b   :  { %v519_v48 = vpop.f32.mrb[16].mxu0 }
 0x67c   :  { %v530_v50 = vadd.f32 %v519_v48, %v3272_v33  ;;  %v521_v52 = vpop.f32.mrb[17].mxu0 }
 0x67d   :  { %v535_v54 = vadd.f32 %v521_v52, %v3286_v53  ;;  %v523_v55 = vpop.f32.mrb[18].mxu0 }
 0x67e   :  { %2873 = vtanh.f32 %v530_v50  ;;  %v524_v57 = vpop.f32.mrb[19].mxu0  ;;  %v2649_v62 = vmul.f32 -1.442695, %v530_v50 }
 0x67f   :  { %2875 = vtanh.f32 %v535_v54  ;;  %v2650_v63 = vmul.f32 -1.442695, %v535_v54 }
 0x680   :  { %2877 = vpow2.f32 %v2649_v62 }
 0x681   :  { %2879 = vpow2.f32 %v2650_v63 }
 0x688   :  { %v2874_v59 = vpop.eup %2873 }
 0x689   :  { %v2876_v61 = vpop.eup %2875  ;;  %552 = vrot.lane.b32.xlu0 %v2874_v59, %s3099_s0 }
 0x68a   :  { %563 = vrot.lane.b32.xlu1 %v2876_v61, %s3099_s0  ;;  %v2878_v0 = vpop.eup %2877 }
 0x68b   :  { %v2880_v2 = vpop.eup %2879  ;;  %v539_v33 = vadd.f32 1.0, %v2878_v0 }
 0x68c   :  { %v546_v4 = vadd.f32 1.0, %v2880_v2 }
 0x68d   :  { %2881 = vrcp.f32 %v539_v33 }
 0x68e   :  { %2883 = vrcp.f32 %v546_v4 }
 0x697   :  { %v2882_v53 = vpop.eup %2881 }
 0x698   :  { %v2884_v29 = vpop.eup %2883  ;;  %v550_v16 = vmul.f32 %v2882_v53, %v441_v26 }
 0x699   :  { %v561_v18 = vmul.f32 %v2884_v29, %v452_v32 }
 0x6fb   :  { %v553_v6 = vpop.permute.xlu0 %552 }
 0x6fc   :  { %v555_v7 = vmul.f32 %v2882_v53, %v553_v6  ;;  %v564_v58 = vpop.permute.xlu1 %563 }
 0x6fd   :  { %v566_v13 = vmul.f32 %v2884_v29, %v564_v58 }
 0x6fe   :  { %557 = vrot.lane.b32.xlu0 %v555_v7, %s3099_s0 }
 0x6ff   :  { %568 = vrot.lane.b32.xlu1 %v566_v13, %s3099_s0 }
 0x770   :  { %v558_v17 = vpop.permute.xlu0 %557 }
 0x771   :  { %v560_v21 = vadd.f32 %v558_v17, %v550_v16  ;;  %v569_v23 = vpop.permute.xlu1 %568 }
 0x772   :  { %v571_v24 = vadd.f32 %v569_v23, %v561_v18 }
 0x773   :  { %2885 = vtanh.f32 %v560_v21 }
 0x774   :  { %2887 = vtanh.f32 %v571_v24 }
 0x77d   :  { %v2886_v25 = vpop.eup %2885 }
 0x77e   :  { %v2888_v28 = vpop.eup %2887  ;;  %574 = vrot.lane.b32.xlu0 %v2886_v25, %s3099_s0 }
 0x77f   :  { %580 = vrot.lane.b32.xlu1 %v2888_v28, %s3099_s0 }
 0x7f0   :  { %v575_v34 = vpop.permute.xlu0 %574 }
 0x7f1   :  { %v577_v36 = vmul.f32 %v2882_v53, %v575_v34  ;;  %v581_v39 = vpop.permute.xlu1 %580 }
 0x7f2   :  { %v3354_v41 = vmul.f32 %v2884_v29, %v581_v39 }
 0x7f3   :  { %585 = vrot.lane.b32.xlu0 %v577_v36, %s3100_s3 }
 0x7f4   :  { %596 = vrot.lane.b32.xlu1 %v3354_v41, %s3101_s23 }
 0x865   :  { %v586_v26 = vpop.permute.xlu0 %585 }
 0x866   :  { %589 = vst.msk [vmem:[#allocation3 + $0x10] sm:$0xff] %vm350_vm2, %v586_v26  ;;  %v597_v32 = vpop.permute.xlu1 %596 }
 0x867   :  { %v599_v42 = vsel %vm350_vm2, %v586_v26, %v597_v32 }
 0x868   :  { %v600_v30 = vpack.c.bf16 %v599_v42, %v599_v42 }
 0x86a   :  { %2651 = vmatmul.mubr.msk.bf16.vlgmr.msra.gmra.mrb[8].mxu1 %vm243_vm3, %v600_v30 }
 0x86b   :  { %837 = vmatpush1.bf16.msra.mxu1 %v3175_v5  ;;  %868 = vmatprep.mubr.bf16.mxu1 %v3097_v1 }
 0x86c   :  { %838 = vmatprep.subr.bf16.mxu1 %v3184_v8 }
 0x86f   :  { %839 = vmatpush1.bf16.msra.mxu1 %v3190_v9 }
 0x870   :  { %840 = vmatprep.subr.bf16.mxu1 %v3196_v10 }
 0x873   :  { %841 = vmatpush1.bf16.msra.mxu1 %v3204_v11 }
 0x874   :  { %842 = vmatprep.subr.bf16.mxu1 %v3211_v12 }
 0x877   :  { %843 = vmatpush1.bf16.msra.mxu1 %v3222_v14 }
 0x878   :  { %1062 = vmatprep.subr.bf16.mxu1 %v3170_v3 }
 0x93d   :  { %v638_v37 = vpop.f32.mrb[8].mxu1 }
 0x93e   :  { %v649_v45 = vadd.f32 %v638_v37, %v3276_v38  ;;  %v640_v46 = vpop.f32.mrb[9].mxu1 }
 0x93f   :  { %v654_v48 = vadd.f32 %v640_v46, %v3282_v49  ;;  %v642_v50 = vpop.f32.mrb[10].mxu1 }
 0x940   :  { %2889 = vtanh.f32 %v649_v45  ;;  %v643_v52 = vpop.f32.mrb[11].mxu1  ;;  %v2652_v57 = vmul.f32 -1.442695, %v649_v45 }
 0x941   :  { %2891 = vtanh.f32 %v654_v48  ;;  %v2653_v59 = vmul.f32 -1.442695, %v654_v48 }
 0x942   :  { %2893 = vpow2.f32 %v2652_v57 }
 0x943   :  { %2895 = vpow2.f32 %v2653_v59 }
 0x94a   :  { %v2890_v54 = vpop.eup %2889 }
 0x94b   :  { %v2892_v55 = vpop.eup %2891  ;;  %671 = vrot.lane.b32.xlu0 %v2890_v54, %s3099_s0 }
 0x94c   :  { %682 = vrot.lane.b32.xlu1 %v2892_v55, %s3099_s0  ;;  %v2894_v3 = vpop.eup %2893 }
 0x94d   :  { %v2896_v61 = vpop.eup %2895  ;;  %v658_v38 = vadd.f32 1.0, %v2894_v3 }
 0x94e   :  { %v665_v62 = vadd.f32 1.0, %v2896_v61 }
 0x94f   :  { %2897 = vrcp.f32 %v658_v38 }
 0x950   :  { %2899 = vrcp.f32 %v665_v62 }
 0x959   :  { %v2898_v49 = vpop.eup %2897 }
 0x95a   :  { %v2900_v0 = vpop.eup %2899  ;;  %v669_v53 = vmul.f32 %v2898_v49, %v560_v21 }
 0x95b   :  { %v680_v29 = vmul.f32 %v2900_v0, %v571_v24 }
 0x9bd   :  { %v672_v63 = vpop.permute.xlu0 %671 }
 0x9be   :  { %v674_v2 = vmul.f32 %v2898_v49, %v672_v63  ;;  %v683_v33 = vpop.permute.xlu1 %682 }
 0x9bf   :  { %v685_v4 = vmul.f32 %v2900_v0, %v683_v33 }
 0x9c0   :  { %676 = vrot.lane.b32.xlu0 %v674_v2, %s3099_s0 }
 0x9c1   :  { %687 = vrot.lane.b32.xlu1 %v685_v4, %s3099_s0 }
 0xa32   :  { %v677_v6 = vpop.permute.xlu0 %676 }
 0xa33   :  { %v679_v7 = vadd.f32 %v677_v6, %v669_v53  ;;  %v688_v58 = vpop.permute.xlu1 %687 }
 0xa34   :  { %v690_v13 = vadd.f32 %v688_v58, %v680_v29 }
 0xa35   :  { %2901 = vtanh.f32 %v679_v7 }
 0xa36   :  { %2903 = vtanh.f32 %v690_v13 }
 0xa3f   :  { %v2902_v16 = vpop.eup %2901 }
 0xa40   :  { %v2904_v17 = vpop.eup %2903  ;;  %693 = vrot.lane.b32.xlu0 %v2902_v16, %s3099_s0 }
 0xa41   :  { %699 = vrot.lane.b32.xlu1 %v2904_v17, %s3099_s0 }
 0xab2   :  { %v694_v18 = vpop.permute.xlu0 %693 }
 0xab3   :  { %v696_v23 = vmul.f32 %v2898_v49, %v694_v18  ;;  %v700_v25 = vpop.permute.xlu1 %699 }
 0xab4   :  { %v3379_v28 = vmul.f32 %v2900_v0, %v700_v25 }
 0xab5   :  { %704 = vrot.lane.b32.xlu0 %v696_v23, %s3100_s3 }
 0xab6   :  { %715 = vrot.lane.b32.xlu1 %v3379_v28, %s3101_s23 }
 0xb27   :  { %v705_v21 = vpop.permute.xlu0 %704 }
 0xb28   :  { %708 = vst.msk [vmem:[#allocation3 + $0x18] sm:$0xff] %vm350_vm2, %v705_v21  ;;  %v716_v24 = vpop.permute.xlu1 %715 }
 0xb29   :  { %v718_v34 = vsel %vm350_vm2, %v705_v21, %v716_v24 }
 0xb2a   :  { %v719_v36 = vpack.c.bf16 %v718_v34, %v718_v34 }
 0xb2c   :  { %2654 = vmatmul.mubr.msk.bf16.vlgmr.msra.gmra.mrb[20].mxu0 %vm243_vm3, %v719_v36 }
 0xb2d   :  { %950 = vmatpush1.bf16.msra.mxu0 %v3175_v5  ;;  %981 = vmatprep.mubr.bf16.mxu0 %v3097_v1 }
 0xb2e   :  { %951 = vmatprep.subr.bf16.mxu0 %v3184_v8 }
 0xb31   :  { %952 = vmatpush1.bf16.msra.mxu0 %v3190_v9 }
 0xb32   :  { %953 = vmatprep.subr.bf16.mxu0 %v3196_v10 }
 0xb35   :  { %954 = vmatpush1.bf16.msra.mxu0 %v3204_v11 }
 0xb36   :  { %955 = vmatprep.subr.bf16.mxu0 %v3211_v12 }
 0xb39   :  { %956 = vmatpush1.bf16.msra.mxu0 %v3222_v14 }
 0xbff   :  { %v757_v39 = vpop.f32.mrb[20].mxu0 }
 0xc00   :  { %v765_v26 = vadd.f32 %v757_v39, %v3280_v47  ;;  %v759_v32 = vpop.f32.mrb[21].mxu0 }
 0xc01   :  { %v767_v42 = vadd.f32 %v759_v32, %v3278_v40  ;;  %v761_v30 = vpop.f32.mrb[22].mxu0 }
 0xc02   :  { %2905 = vtanh.f32 %v765_v26  ;;  %v762_v37 = vpop.f32.mrb[23].mxu0  ;;  %v2655_v48 = vmul.f32 -1.442695, %v765_v26 }
 0xc03   :  { %2907 = vtanh.f32 %v767_v42  ;;  %v2656_v50 = vmul.f32 -1.442695, %v767_v42 }
 0xc04   :  { %2909 = vpow2.f32 %v2655_v48 }
 0xc05   :  { %2911 = vpow2.f32 %v2656_v50 }
 0xc0c   :  { %v2906_v45 = vpop.eup %2905 }
 0xc0d   :  { %v2908_v46 = vpop.eup %2907  ;;  %784 = vrot.lane.b32.xlu0 %v2906_v45, %s3099_s0 }
 0xc0e   :  { %795 = vrot.lane.b32.xlu1 %v2908_v46, %s3099_s0  ;;  %v2910_v52 = vpop.eup %2909 }
 0xc0f   :  { %v2912_v54 = vpop.eup %2911  ;;  %v771_v47 = vadd.f32 1.0, %v2910_v52 }
 0xc10   :  { %v778_v55 = vadd.f32 1.0, %v2912_v54 }
 0xc11   :  { %2913 = vrcp.f32 %v771_v47 }
 0xc12   :  { %2915 = vrcp.f32 %v778_v55 }
 0xc1b   :  { %v2914_v40 = vpop.eup %2913 }
 0xc1c   :  { %v2916_v59 = vpop.eup %2915  ;;  %v782_v62 = vmul.f32 %v2914_v40, %v679_v7 }
 0xc1d   :  { %v793_v63 = vmul.f32 %v2916_v59, %v690_v13 }
 0xc7f   :  { %v785_v57 = vpop.permute.xlu0 %784 }
 0xc80   :  { %v787_v3 = vmul.f32 %v2914_v40, %v785_v57  ;;  %v796_v61 = vpop.permute.xlu1 %795 }
 0xc81   :  { %v798_v38 = vmul.f32 %v2916_v59, %v796_v61 }
 0xc82   :  { %789 = vrot.lane.b32.xlu0 %v787_v3, %s3099_s0 }
 0xc83   :  { %800 = vrot.lane.b32.xlu1 %v798_v38, %s3099_s0 }
 0xcf4   :  { %v790_v49 = vpop.permute.xlu0 %789 }
 0xcf5   :  { %v792_v0 = vadd.f32 %v790_v49, %v782_v62  ;;  %v801_v2 = vpop.permute.xlu1 %800 }
 0xcf6   :  { %v803_v33 = vadd.f32 %v801_v2, %v793_v63 }
 0xcf7   :  { %2917 = vtanh.f32 %v792_v0 }
 0xcf8   :  { %2919 = vtanh.f32 %v803_v33 }
 0xd01   :  { %v2918_v4 = vpop.eup %2917 }
 0xd02   :  { %v2920_v53 = vpop.eup %2919  ;;  %806 = vrot.lane.b32.xlu0 %v2918_v4, %s3099_s0 }
 0xd03   :  { %812 = vrot.lane.b32.xlu1 %v2920_v53, %s3099_s0 }
 0xd74   :  { %v807_v6 = vpop.permute.xlu0 %806 }
 0xd75   :  { %v809_v29 = vmul.f32 %v2914_v40, %v807_v6  ;;  %v813_v58 = vpop.permute.xlu1 %812 }
 0xd76   :  { %v3403_v16 = vmul.f32 %v2916_v59, %v813_v58 }
 0xd77   :  { %817 = vrot.lane.b32.xlu0 %v809_v29, %s3100_s3 }
 0xd78   :  { %828 = vrot.lane.b32.xlu1 %v3403_v16, %s3101_s23 }
 0xde9   :  { %v818_v7 = vpop.permute.xlu0 %817 }
 0xdea   :  { %821 = vst.msk [vmem:[#allocation3 + $0x20] sm:$0xff] %vm350_vm2, %v818_v7  ;;  %v829_v13 = vpop.permute.xlu1 %828 }
 0xdeb   :  { %v831_v17 = vsel %vm350_vm2, %v818_v7, %v829_v13 }
 0xdec   :  { %v832_v18 = vpack.c.bf16 %v831_v17, %v831_v17 }
 0xdee   :  { %2657 = vmatmul.mubr.msk.bf16.vlgmr.msra.gmra.mrb[12].mxu1 %vm243_vm3, %v832_v18 }
 0xdef   :  { %1063 = vmatpush1.bf16.msra.mxu1 %v3175_v5  ;;  %1094 = vmatprep.mubr.bf16.mxu1 %v3097_v1 }
 0xdf0   :  { %1064 = vmatprep.subr.bf16.mxu1 %v3184_v8 }
 0xdf3   :  { %1065 = vmatpush1.bf16.msra.mxu1 %v3190_v9 }
 0xdf4   :  { %1066 = vmatprep.subr.bf16.mxu1 %v3196_v10 }
 0xdf7   :  { %1067 = vmatpush1.bf16.msra.mxu1 %v3204_v11 }
 0xdf8   :  { %1068 = vmatprep.subr.bf16.mxu1 %v3211_v12 }
 0xdfb   :  { %1069 = vmatpush1.bf16.msra.mxu1 %v3222_v14 }
 0xec1   :  { %v870_v23 = vpop.f32.mrb[12].mxu1 }
 0xec2   :  { %v878_v25 = vadd.f32 %v870_v23, %v3284_v51  ;;  %v872_v21 = vpop.f32.mrb[13].mxu1 }
 0xec3   :  { %v880_v5 = vadd.f32 %v872_v21, %v3274_v35  ;;  %v874_v24 = vpop.f32.mrb[14].mxu1 }
 0xec4   :  { %2921 = vtanh.f32 %v878_v25  ;;  %v875_v34 = vpop.f32.mrb[15].mxu1  ;;  %v2658_v10 = vmul.f32 -1.442695, %v878_v25 }
 0xec5   :  { %2923 = vtanh.f32 %v880_v5  ;;  %v2659_v11 = vmul.f32 -1.442695, %v880_v5 }
 0xec6   :  { %2925 = vpow2.f32 %v2658_v10 }
 0xec7   :  { %2927 = vpow2.f32 %v2659_v11 }
 0xece   :  { %v2922_v8 = vpop.eup %2921 }
 0xecf   :  { %v2924_v9 = vpop.eup %2923  ;;  %897 = vrot.lane.b32.xlu0 %v2922_v8, %s3099_s0 }
 0xed0   :  { %908 = vrot.lane.b32.xlu1 %v2924_v9, %s3099_s0  ;;  %v2926_v12 = vpop.eup %2925 }
 0xed1   :  { %v2928_v14 = vpop.eup %2927  ;;  %v884_v51 = vadd.f32 1.0, %v2926_v12 }
 0xed2   :  { %v891_v36 = vadd.f32 1.0, %v2928_v14 }
 0xed3   :  { %2929 = vrcp.f32 %v884_v51 }
 0xed4   :  { %2931 = vrcp.f32 %v891_v36 }
 0xedd   :  { %v2930_v35 = vpop.eup %2929 }
 0xede   :  { %v2932_v26 = vpop.eup %2931  ;;  %v895_v37 = vmul.f32 %v2930_v35, %v792_v0 }
 0xedf   :  { %v906_v46 = vmul.f32 %v2932_v26, %v803_v33 }
 0xf41   :  { %v898_v39 = vpop.permute.xlu0 %897 }
 0xf42   :  { %v900_v32 = vmul.f32 %v2930_v35, %v898_v39  ;;  %v909_v42 = vpop.permute.xlu1 %908 }
 0xf43   :  { %v911_v30 = vmul.f32 %v2932_v26, %v909_v42 }
 0xf44   :  { %902 = vrot.lane.b32.xlu0 %v900_v32, %s3099_s0 }
 0xf45   :  { %913 = vrot.lane.b32.xlu1 %v911_v30, %s3099_s0 }
 0xfb6   :  { %v903_v45 = vpop.permute.xlu0 %902 }
 0xfb7   :  { %v905_v48 = vadd.f32 %v903_v45, %v895_v37  ;;  %v914_v50 = vpop.permute.xlu1 %913 }
 0xfb8   :  { %v916_v52 = vadd.f32 %v914_v50, %v906_v46 }
 0xfb9   :  { %2933 = vtanh.f32 %v905_v48 }
 0xfba   :  { %2935 = vtanh.f32 %v916_v52 }
 0xfc3   :  { %v2934_v54 = vpop.eup %2933 }
 0xfc4   :  { %v2936_v47 = vpop.eup %2935  ;;  %919 = vrot.lane.b32.xlu0 %v2934_v54, %s3099_s0 }
 0xfc5   :  { %925 = vrot.lane.b32.xlu1 %v2936_v47, %s3099_s0 }
0x1036   :  { %v920_v55 = vpop.permute.xlu0 %919 }
0x1037   :  { %v922_v40 = vmul.f32 %v2930_v35, %v920_v55  ;;  %v926_v57 = vpop.permute.xlu1 %925 }
0x1038   :  { %v3427_v59 = vmul.f32 %v2932_v26, %v926_v57 }
0x1039   :  { %930 = vrot.lane.b32.xlu0 %v922_v40, %s3100_s3 }
0x103a   :  { %941 = vrot.lane.b32.xlu1 %v3427_v59, %s3101_s23 }
0x10ab   :  { %v931_v3 = vpop.permute.xlu0 %930 }
0x10ac   :  { %934 = vst.msk [vmem:[#allocation3 + $0x28] sm:$0xff] %vm350_vm2, %v931_v3  ;;  %v942_v61 = vpop.permute.xlu1 %941 }
0x10ad   :  { %v944_v38 = vsel %vm350_vm2, %v931_v3, %v942_v61 }
0x10ae   :  { %v945_v62 = vpack.c.bf16 %v944_v38, %v944_v38 }
0x10b0   :  { %2660 = vmatmul.mubr.msk.bf16.vlgmr.msra.gmra.mrb[24].mxu0 %vm243_vm3, %v945_v62 }
0x10b1   :  { %1262 = vmatprep.mubr.bf16.mxu0 %v3097_v1 }
0x1183   :  { %v983_v49 = vpop.f32.mrb[24].mxu0 }
0x1184   :  { %v991_v63 = vadd.f32 %v983_v49, %v3288_v56  ;;  %v985_v0 = vpop.f32.mrb[25].mxu0 }
0x1185   :  { %v993_v2 = vadd.f32 %v985_v0, %v3270_v31  ;;  %v987_v33 = vpop.f32.mrb[26].mxu0 }
0x1186   :  { %2937 = vtanh.f32 %v991_v63  ;;  %v988_v4 = vpop.f32.mrb[27].mxu0  ;;  %v2661_v29 = vmul.f32 -1.442695, %v991_v63 }
0x1187   :  { %2939 = vtanh.f32 %v993_v2  ;;  %v2662_v58 = vmul.f32 -1.442695, %v993_v2 }
0x1188   :  { %2941 = vpow2.f32 %v2661_v29 }
0x1189   :  { %2943 = vpow2.f32 %v2662_v58 }
0x1190   :  { %v2938_v53 = vpop.eup %2937 }
0x1191   :  { %v2940_v6 = vpop.eup %2939  ;;  %1010 = vrot.lane.b32.xlu0 %v2938_v53, %s3099_s0 }
0x1192   :  { %1021 = vrot.lane.b32.xlu1 %v2940_v6, %s3099_s0  ;;  %v2942_v7 = vpop.eup %2941 }
0x1193   :  { %v2944_v13 = vpop.eup %2943  ;;  %v997_v56 = vadd.f32 1.0, %v2942_v7 }
0x1194   :  { %v1004_v17 = vadd.f32 1.0, %v2944_v13  ;;  %v2813_v13 = vld [vmem:[%s3870_s5] ss:$8 sps:$4 sm:$0xff]  }
0x1195   :  { %2945 = vrcp.f32 %v997_v56  ;;  %v2815_v56 = vld [vmem:[%s3870_s5 + $0x4] ss:$8 sps:$4 sm:$0xff]  }
0x1196   :  { %2947 = vrcp.f32 %v1004_v17  ;;  %1230 = vmatprep.subr.bf16.mxu0 %v2815_v56  ;;  %v2818_v17 = vld [vmem:[%s3870_s5 + $0x14] ss:$8 sps:$4 sm:$0xff]  }
0x1197   :  { %1231 = vmatpush1.bf16.msra.mxu0 %v2813_v13 }
0x1198   :  { %1232 = vmatprep.subr.bf16.mxu0 %v2818_v17 }
0x119f   :  { %v2946_v31 = vpop.eup %2945 }
0x11a0   :  { %v2948_v23 = vpop.eup %2947  ;;  %v1008_v24 = vmul.f32 %v2946_v31, %v905_v48 }
0x11a1   :  { %v1019_v8 = vmul.f32 %v2948_v23, %v916_v52 }
0x1203   :  { %v1011_v18 = vpop.permute.xlu0 %1010 }
0x1204   :  { %v1013_v25 = vmul.f32 %v2946_v31, %v1011_v18  ;;  %v1022_v21 = vpop.permute.xlu1 %1021  ;;  %v2821_v18 = vld [vmem:[%s3871_s4 + $0x4] ss:$8 sps:$4 sm:$0xff]  }
0x1205   :  { %v1024_v5 = vmul.f32 %v2948_v23, %v1022_v21 }
0x1206   :  { %1015 = vrot.lane.b32.xlu0 %v1013_v25, %s3099_s0 }
0x1207   :  { %1026 = vrot.lane.b32.xlu1 %v1024_v5, %s3099_s0 }
0x1278   :  { %v1016_v34 = vpop.permute.xlu0 %1015 }
0x1279   :  { %v1018_v9 = vadd.f32 %v1016_v34, %v1008_v24  ;;  %v1027_v10 = vpop.permute.xlu1 %1026  ;;  %v3495_v34 = vld [vmem:[%s3872_s6 + $0x4] ss:$8 sps:$4 sm:$0xff]  }
0x127a   :  { %v1029_v11 = vadd.f32 %v1027_v10, %v1019_v8  ;;  %1500 = vmatprep.subr.bf16.mxu1 %v3495_v34  ;;  %v3519_v8 = vld [vmem:[%s3872_s6 + $0x24] ss:$8 sps:$4 sm:$0xff]   ;;  %v3529_v10 = vld [vmem:[%s3872_s6 + $0x34] ss:$8 sps:$4 sm:$0xff]  }
0x127b   :  { %2949 = vtanh.f32 %v1018_v9 }
0x127c   :  { %2951 = vtanh.f32 %v1029_v11 }
0x1285   :  { %v2950_v12 = vpop.eup %2949 }
0x1286   :  { %v2952_v14 = vpop.eup %2951  ;;  %1032 = vrot.lane.b32.xlu0 %v2950_v12, %s3099_s0 }
0x1287   :  { %1038 = vrot.lane.b32.xlu1 %v2952_v14, %s3099_s0 }
0x12f8   :  { %v1033_v51 = vpop.permute.xlu0 %1032 }
0x12f9   :  { %v1035_v36 = vmul.f32 %v2946_v31, %v1033_v51  ;;  %v1039_v35 = vpop.permute.xlu1 %1038 }
0x12fa   :  { %v1041_v39 = vmul.f32 %v2948_v23, %v1039_v35 }
0x12fb   :  { %1043 = vrot.lane.b32.xlu0 %v1035_v36, %s3100_s3  ;;  %v2819_v36 = vld [vmem:[%s3871_s4] ss:$8 sps:$4 sm:$0xff]  }
0x12fc   :  { %1054 = vrot.lane.b32.xlu1 %v1041_v39, %s3101_s23 }
0x136d   :  { %v1044_v26 = vpop.permute.xlu0 %1043 }
0x136e   :  { %1047 = vst.msk [vmem:[#allocation3 + $0x30] sm:$0xff] %vm350_vm2, %v1044_v26  ;;  %v1055_v32 = vpop.permute.xlu1 %1054 }
0x136f   :  { %v1057_v42 = vsel %vm350_vm2, %v1044_v26, %v1055_v32  ;;  %v2824_v32 = vld [vmem:[%s3871_s4 + $0x14] ss:$8 sps:$4 sm:$0xff]  }
0x1370   :  { %v1058_v30 = vpack.c.bf16 %v1057_v42, %v1057_v42 }
0x1372   :  { %2663 = vmatmul.mubr.msk.bf16.vlgmr.msra.gmra.mrb[16].mxu1 %vm243_vm3, %v1058_v30  ;;  %v2822_v30 = vld [vmem:[%s3871_s4 + $0x10] ss:$8 sps:$4 sm:$0xff]  }
0x1373   :  { %1532 = vmatprep.mubr.bf16.mxu1 %v3097_v1 }
0x1445   :  { %v1096_v37 = vpop.f32.mrb[16].mxu1 }
0x1446   :  { %v1104_v45 = vadd.f32 %v1096_v37, %v3293_v60  ;;  %v1098_v46 = vpop.f32.mrb[17].mxu1 }
0x1447   :  { %v1106_v48 = vadd.f32 %v1098_v46, %v3266_v27  ;;  %v1100_v50 = vpop.f32.mrb[18].mxu1 }
0x1448   :  { %2953 = vtanh.f32 %v1104_v45  ;;  %v1101_v52 = vpop.f32.mrb[19].mxu1  ;;  %v2664_v55 = vmul.f32 -1.442695, %v1104_v45 }
0x1449   :  { %2955 = vtanh.f32 %v1106_v48  ;;  %v2665_v40 = vmul.f32 -1.442695, %v1106_v48 }
0x144a   :  { %2957 = vpow2.f32 %v2664_v55 }
0x144b   :  { %2959 = vpow2.f32 %v2665_v40  ;;  %v1167_v40 = vld [vmem:[#allocation3 + $0x8] sm:$0xff] }
0x1452   :  { %v2954_v54 = vpop.eup %2953 }
0x1453   :  { %v2956_v47 = vpop.eup %2955  ;;  %1123 = vrot.lane.b32.xlu1 %v2954_v54, %s3099_s0 }
0x1454   :  { %1134 = vrot.lane.b32.xlu0 %v2956_v47, %s3099_s0  ;;  %v2958_v57 = vpop.eup %2957 }
0x1455   :  { %v2960_v3 = vpop.eup %2959  ;;  %v1110_v60 = vadd.f32 1.0, %v2958_v57  ;;  %v1166_v57 = vld [vmem:[#allocation3] sm:$0xff] }
0x1456   :  { %v1117_v61 = vadd.f32 1.0, %v2960_v3  ;;  %v1174_v3 = vpack.c.bf16 %v1167_v40, %v1166_v57 }
0x1457   :  { %2961 = vrcp.f32 %v1110_v60  ;;  %v1169_v60 = vld [vmem:[#allocation3 + $0x18] sm:$0xff] }
0x1458   :  { %2963 = vrcp.f32 %v1117_v61  ;;  %v1168_v61 = vld [vmem:[#allocation3 + $0x10] sm:$0xff] }
0x1461   :  { %v2962_v27 = vpop.eup %2961 }
0x1462   :  { %v2964_v62 = vpop.eup %2963  ;;  %v1121_v2 = vmul.f32 %v2962_v27, %v1018_v9  ;;  %v3524_v9 = vld [vmem:[%s3872_s6 + $0x20] ss:$8 sps:$4 sm:$0xff]  }
0x1463   :  { %v1132_v4 = vmul.f32 %v2964_v62, %v1029_v11  ;;  %v3536_v11 = vld [vmem:[%s3872_s6 + $0x30] ss:$8 sps:$4 sm:$0xff]  }
0x14c5   :  { %v1124_v38 = vpop.permute.xlu1 %1123 }
0x14c6   :  { %v1126_v49 = vmul.f32 %v2962_v27, %v1124_v38  ;;  %v1135_v63 = vpop.permute.xlu0 %1134  ;;  %v1171_v38 = vld [vmem:[#allocation3 + $0x28] sm:$0xff] }
0x14c7   :  { %v1137_v0 = vmul.f32 %v2964_v62, %v1135_v63 }
0x14c8   :  { %1128 = vrot.lane.b32.xlu1 %v1126_v49, %s3099_s0 }
0x14c9   :  { %1139 = vrot.lane.b32.xlu0 %v1137_v0, %s3099_s0  ;;  %v1172_v0 = vld [vmem:[#allocation3 + $0x30] sm:$0xff] }
0x153a   :  { %v1129_v33 = vpop.permute.xlu1 %1128 }
0x153b   :  { %v1131_v53 = vadd.f32 %v1129_v33, %v1121_v2  ;;  %v1140_v6 = vpop.permute.xlu0 %1139 }
0x153c   :  { %v1142_v29 = vadd.f32 %v1140_v6, %v1132_v4 }
0x153d   :  { %2965 = vtanh.f32 %v1131_v53 }
0x153e   :  { %2967 = vtanh.f32 %v1142_v29  ;;  %v1408_v29 = vld [vmem:[%s3873_s7] sm:$0x3] }
0x1547   :  { %v2966_v58 = vpop.eup %2965 }
0x1548   :  { %v2968_v7 = vpop.eup %2967  ;;  %1145 = vrot.lane.b32.xlu1 %v2966_v58, %s3099_s0  ;;  %v1413_v58 = vrot.slane %v1408_v29, %v52_v22 }
0x1549   :  { %1151 = vrot.lane.b32.xlu0 %v2968_v7, %s3099_s0  ;;  %v1417_v7 = vrot.slane %v1408_v29, %v56_v20 }
0x154d   :  { %1049 = vrot.lane.b32.xlu0 %v1041_v39, %s3100_s3 }
0x1551   :  { %823 = vrot.lane.b32.xlu0 %v3403_v16, %s3100_s3 }
0x1555   :  { %591 = vrot.lane.b32.xlu0 %v3354_v41, %s3100_s3  ;;  %v2816_v41 = vld [vmem:[%s3870_s5 + $0x10] ss:$8 sps:$4 sm:$0xff]  }
0x1556   :  { %1233 = vmatpush1.bf16.msra.mxu0 %v2816_v41 }
0x1557   :  { %1335 = vmatprep.subr.bf16.mxu0 %v2821_v18 }
0x1559   :  { %353 = vrot.lane.b32.xlu0 %v3304_v44, %s3100_s3 }
0x15ba   :  { %v1146_v44 = vpop.permute.xlu1 %1145 }
0x15bb   :  { %v1148_v16 = vmul.f32 %v2962_v27, %v1146_v44  ;;  %v1152_v31 = vpop.permute.xlu0 %1151  ;;  %v1175_v27 = vpack.c.bf16 %v1169_v60, %v1168_v61 }
0x15bc   :  { %v1154_v23 = vmul.f32 %v2964_v62, %v1152_v31  ;;  %v1170_v62 = vld [vmem:[#allocation3 + $0x20] sm:$0xff] }
0x15bd   :  { %1156 = vrot.lane.b32.xlu0 %v1148_v16, %s3100_s3  ;;  %v1176_v49 = vpack.c.bf16 %v1171_v38, %v1170_v62 }
0x15be   :  { %1162 = vrot.lane.b32.xlu1 %v1154_v23, %s3100_s3 }
0x15bf   :  { %v1050_v25 = vpop.permute.xlu0 %1049 }
0x15c0   :  { %1053 = vst.msk [vmem:[#allocation4 + $0x8] sm:$0xff] %vm350_vm2, %v1050_v25 }
0x15c2   :  { %936 = vrot.lane.b32.xlu1 %v3427_v59, %s3100_s3  ;;  %v3500_v59 = vld [vmem:[%s3872_s6] ss:$8 sps:$4 sm:$0xff]  }
0x15c3   :  { %v824_v21 = vpop.permute.xlu0 %823  ;;  %1501 = vmatpush1.bf16.msra.mxu1 %v3500_v59 }
0x15c4   :  { %827 = vst.msk [vmem:[#allocation4 + $0x18] sm:$0xff] %vm350_vm2, %v824_v21 }
0x15c6   :  { %710 = vrot.lane.b32.xlu1 %v3379_v28, %s3100_s3  ;;  %v3506_v28 = vld [vmem:[%s3872_s6 + $0x14] ss:$8 sps:$4 sm:$0xff]  }
0x15c7   :  { %v592_v5 = vpop.permute.xlu0 %591  ;;  %1502 = vmatprep.subr.bf16.mxu1 %v3506_v28  ;;  %v1183_v39 = vld [vmem:[#allocation4 + $0x8] sm:$0xff] }
0x15c8   :  { %595 = vst.msk [vmem:[#allocation4 + $0x28] sm:$0xff] %vm350_vm2, %v592_v5 }
0x15ca   :  { %472 = vrot.lane.b32.xlu1 %v3329_v43, %s3100_s3  ;;  %v3512_v43 = vld [vmem:[%s3872_s6 + $0x10] ss:$8 sps:$4 sm:$0xff]  }
0x15cb   :  { %v354_v24 = vpop.permute.xlu0 %353  ;;  %1503 = vmatpush1.bf16.msra.mxu1 %v3512_v43  ;;  %v1185_v45 = vld [vmem:[#allocation4 + $0x18] sm:$0xff] }
0x15cc   :  { %357 = vst.msk [vmem:[#allocation4 + $0x38] sm:$0xff] %vm350_vm2, %v354_v24  ;;  %1504 = vmatprep.subr.bf16.mxu1 %v3519_v8 }
0x15cf   :  { %1505 = vmatpush1.bf16.msra.mxu1 %v3524_v9  ;;  %v1187_v50 = vld [vmem:[#allocation4 + $0x28] sm:$0xff] }
0x15d0   :  { %1506 = vmatprep.subr.bf16.mxu1 %v3529_v10 }
0x15d3   :  { %1507 = vmatpush1.bf16.msra.mxu1 %v3536_v11  ;;  %v1189_v47 = vld [vmem:[#allocation4 + $0x38] sm:$0xff] }
0x15d4   :  { %1611 = vmatprep.subr.bf16.mxu1 %v3495_v34 }
0x15d6   :  { %1533 = vmatmul.mubr.bf16.vlgmr.msra.gmra.mrb[20].mxu1 %v3098_v15 }
0x15d7   :  { %1612 = vmatpush1.bf16.msra.mxu1 %v3500_v59  ;;  %1643 = vmatprep.mubr.bf16.mxu1 %v3097_v1 }
0x15d8   :  { %1613 = vmatprep.subr.bf16.mxu1 %v3506_v28 }
0x15db   :  { %1614 = vmatpush1.bf16.msra.mxu1 %v3512_v43 }
0x15dc   :  { %1615 = vmatprep.subr.bf16.mxu1 %v3519_v8 }
0x15df   :  { %1616 = vmatpush1.bf16.msra.mxu1 %v3524_v9 }
0x15e0   :  { %1617 = vmatprep.subr.bf16.mxu1 %v3529_v10 }
0x15e3   :  { %1618 = vmatpush1.bf16.msra.mxu1 %v3536_v11 }
0x15e4   :  { %1722 = vmatprep.subr.bf16.mxu1 %v3495_v34 }
0x162f   :  { %v1157_v12 = vpop.permute.xlu0 %1156 }
0x1630   :  { %1160 = vst.msk [vmem:[#allocation3 + $0x38] sm:$0xff] %vm350_vm2, %v1157_v12  ;;  %v1163_v15 = vpop.permute.xlu1 %1162 }
0x1631   :  { %1165 = vst.msk [vmem:[#allocation4] sm:$0xff] %vm350_vm2, %v1163_v15 }
0x1634   :  { %v937_v14 = vpop.permute.xlu1 %936 }
0x1635   :  { %940 = vst.msk [vmem:[#allocation4 + $0x10] sm:$0xff] %vm350_vm2, %v937_v14 }
0x1637   :  { %v1173_v63 = vld [vmem:[#allocation3 + $0x38] sm:$0xff] }
0x1638   :  { %v711_v51 = vpop.permute.xlu1 %710  ;;  %v1182_v35 = vld [vmem:[#allocation4] sm:$0xff]  ;;  %v1177_v2 = vpack.c.bf16 %v1173_v63, %v1172_v0 }
0x1639   :  { %714 = vst.msk [vmem:[#allocation4 + $0x20] sm:$0xff] %vm350_vm2, %v711_v51  ;;  %v1190_v26 = vpack.c.bf16 %v1183_v39, %v1182_v35 }
0x163b   :  { %2670 = vmatmul.mubr.msk.bf16.vlgmr.msra.gmra.mrb[28].mxu0 %vm350_vm2, %v1190_v26 }
0x163c   :  { %1336 = vmatpush1.bf16.msra.mxu0 %v2819_v36  ;;  %v473_v42 = vpop.permute.xlu1 %472  ;;  %1272 = vmatprep.mubr.bf16.mxu0 %v3097_v1  ;;  %v1184_v37 = vld [vmem:[#allocation4 + $0x10] sm:$0xff] }
0x163d   :  { %476 = vst.msk [vmem:[#allocation4 + $0x30] sm:$0xff] %vm350_vm2, %v473_v42  ;;  %1337 = vmatprep.subr.bf16.mxu0 %v2824_v32  ;;  %v1191_v46 = vpack.c.bf16 %v1185_v45, %v1184_v37 }
0x1640   :  { %1338 = vmatpush1.bf16.msra.mxu0 %v2822_v30  ;;  %v1186_v48 = vld [vmem:[#allocation4 + $0x20] sm:$0xff] }
0x1641   :  { %1833 = vmatprep.subr.bf16.mxu0 %v3495_v34  ;;  %v1192_v52 = vpack.c.bf16 %v1187_v50, %v1186_v48 }
0x1643   :  { %2671 = vmatmul.mubr.msk.bf16.gmra.mrb[32].mxu0 %vm350_vm2, %v1191_v46 }
0x1644   :  { %1282 = vmatprep.mubr.bf16.mxu0 %v3097_v1  ;;  %v1188_v54 = vld [vmem:[#allocation4 + $0x30] sm:$0xff] }
0x1645   :  { %v1193_v55 = vpack.c.bf16 %v1189_v47, %v1188_v54 }
0x164b   :  { %2672 = vmatmul.mubr.msk.bf16.gmra.mrb[36].mxu0 %vm350_vm2, %v1192_v52 }
0x164c   :  { %1292 = vmatprep.mubr.bf16.mxu0 %v3097_v1 }
0x1653   :  { %2673 = vmatmul.mubr.msk.bf16.gmra.mrb[40].mxu0 %vm350_vm2, %v1193_v55 }
0x1654   :  { %1367 = vmatprep.mubr.bf16.mxu0 %v3097_v1 }
0x165b   :  { %2678 = vmatmul.mubr.msk.bf16.vlgmr.msra.gmra.mrb[28].mxu0 %vm350_vm2, %v1174_v3 }
0x165c   :  { %1377 = vmatprep.mubr.bf16.mxu0 %v3097_v1  ;;  %1834 = vmatpush1.bf16.msra.mxu0 %v3500_v59 }
0x165d   :  { %1835 = vmatprep.subr.bf16.mxu0 %v3506_v28 }
0x1660   :  { %1836 = vmatpush1.bf16.msra.mxu0 %v3512_v43 }
0x1661   :  { %1837 = vmatprep.subr.bf16.mxu0 %v3519_v8 }
0x1663   :  { %2679 = vmatmul.mubr.msk.bf16.gmra.mrb[32].mxu0 %vm350_vm2, %v1175_v27 }
0x1664   :  { %1387 = vmatprep.mubr.bf16.mxu0 %v3097_v1  ;;  %1838 = vmatpush1.bf16.msra.mxu0 %v3524_v9 }
0x1665   :  { %1839 = vmatprep.subr.bf16.mxu0 %v3529_v10 }
0x1668   :  { %1840 = vmatpush1.bf16.msra.mxu0 %v3536_v11 }
0x1669   :  { %2055 = vmatprep.subr.bf16.mxu0 %v3495_v34 }
0x166b   :  { %2680 = vmatmul.mubr.msk.bf16.gmra.mrb[36].mxu0 %vm350_vm2, %v1176_v49 }
0x166c   :  { %1397 = vmatprep.mubr.bf16.mxu0 %v3097_v1 }
0x1673   :  { %2681 = vmatmul.mubr.msk.bf16.gmra.mrb[40].mxu0 %vm350_vm2, %v1177_v2 }
0x1674   :  { %1865 = vmatprep.mubr.bf16.mxu0 %v3097_v1 }
0x16a9   :  { %v1534_v33 = vpop.f32.mrb[20].mxu1 }
0x16aa   :  { %v1536_v4 = vpop.f32.mrb[21].mxu1 }
0x16ab   :  { %v1538_v53 = vpop.f32.mrb[22].mxu1 }
0x16ac   :  { %v1539_v6 = vpop.f32.mrb[23].mxu1 }
0x172e   :  { %v1369_v13 = vpop.f32.mrb[28].mxu0 }
0x172f   :  { %v1420_v56 = vadd.f32 %v1413_v58, %v1369_v13  ;;  %v1371_v17 = vpop.f32.mrb[29].mxu0 }
0x1730   :  { %v3597_v41 = vadd.f32 %v1417_v7, %v1371_v17  ;;  %v1373_v44 = vpop.f32.mrb[30].mxu0 }
0x1731   :  { %v3599_v16 = vadd.f32 %v1413_v58, %v1373_v44  ;;  %v1542_v31 = vadd.f32 %v1534_v33, %v1420_v56  ;;  %v1375_v18 = vpop.f32.mrb[31].mxu0 }
0x1732   :  { %v3601_v23 = vadd.f32 %v1417_v7, %v1375_v18 }
0x1733   :  { %2969 = vtanh.f32 %v1542_v31  ;;  %v2690_v40 = vmul.f32 -1.442695, %v1542_v31 }
0x1736   :  { %v1379_v25 = vpop.f32.mrb[32].mxu0 }
0x1737   :  { %v3603_v21 = vadd.f32 %v1413_v58, %v1379_v25  ;;  %v1381_v22 = vpop.f32.mrb[33].mxu0 }
0x1738   :  { %v3605_v5 = vadd.f32 %v1417_v7, %v1381_v22  ;;  %v1383_v19 = vpop.f32.mrb[34].mxu0 }
0x1739   :  { %v3607_v20 = vadd.f32 %v1413_v58, %v1383_v19  ;;  %v1385_v24 = vpop.f32.mrb[35].mxu0 }
0x173a   :  { %v3609_v12 = vadd.f32 %v1417_v7, %v1385_v24 }
0x173d   :  { %v2970_v15 = vpop.eup %2969 }
0x173e   :  { %1561 = vrot.lane.b32.xlu1 %v2970_v15, %s3099_s0  ;;  %v1389_v14 = vpop.f32.mrb[36].mxu0 }
0x173f   :  { %v3612_v51 = vadd.f32 %v1413_v58, %v1389_v14  ;;  %v1391_v36 = vpop.f32.mrb[37].mxu0 }
0x1740   :  { %v3614_v35 = vadd.f32 %v1417_v7, %v1391_v36  ;;  %v1393_v39 = vpop.f32.mrb[38].mxu0 }
0x1741   :  { %v3616_v26 = vadd.f32 %v1413_v58, %v1393_v39  ;;  %v1395_v32 = vpop.f32.mrb[39].mxu0 }
0x1742   :  { %v3618_v42 = vadd.f32 %v1417_v7, %v1395_v32 }
0x1746   :  { %v1399_v30 = vpop.f32.mrb[40].mxu0 }
0x1747   :  { %v3620_v37 = vadd.f32 %v1413_v58, %v1399_v30  ;;  %v1401_v45 = vpop.f32.mrb[41].mxu0 }
0x1748   :  { %v3622_v46 = vadd.f32 %v1417_v7, %v1401_v45  ;;  %v1403_v48 = vpop.f32.mrb[42].mxu0 }
0x1749   :  { %v3624_v50 = vadd.f32 %v1413_v58, %v1403_v48  ;;  %v1405_v52 = vpop.f32.mrb[43].mxu0 }
0x174a   :  { %v1435_v54 = vadd.f32 %v1417_v7, %v1405_v52 }
0x174c   :  { %v1544_v47 = vadd.f32 %v1536_v4, %v1435_v54 }
0x174e   :  { %2971 = vtanh.f32 %v1544_v47  ;;  %v2691_v60 = vmul.f32 -1.442695, %v1544_v47 }
0x174f   :  { %2973 = vpow2.f32 %v2690_v40 }
0x1758   :  { %v2972_v55 = vpop.eup %2971 }
0x1759   :  { %1572 = vrot.lane.b32.xlu0 %v2972_v55, %s3099_s0  ;;  %v2974_v57 = vpop.eup %2973 }
0x175a   :  { %v1548_v3 = vadd.f32 1.0, %v2974_v57 }
0x175c   :  { %2975 = vrcp.f32 %v1548_v3 }
0x175d   :  { %2977 = vpow2.f32 %v2691_v60 }
0x1766   :  { %v2976_v61 = vpop.eup %2975 }
0x1767   :  { %v2978_v62 = vpop.eup %2977  ;;  %v1559_v33 = vmul.f32 0.0, %v2976_v61 }
0x1768   :  { %v1555_v49 = vadd.f32 1.0, %v2978_v62 }
0x176a   :  { %2979 = vrcp.f32 %v1555_v49 }
0x1774   :  { %v2980_v63 = vpop.eup %2979 }
0x1775   :  { %v1570_v29 = vmul.f32 0.0, %v2980_v63 }
0x17b0   :  { %v1562_v27 = vpop.permute.xlu1 %1561 }
0x17b1   :  { %v1564_v38 = vmul.f32 %v2976_v61, %v1562_v27 }
0x17b3   :  { %1566 = vrot.lane.b32.xlu1 %v1564_v38, %s3099_s0 }
0x17cb   :  { %v1573_v0 = vpop.permute.xlu0 %1572 }
0x17cc   :  { %v1575_v2 = vmul.f32 %v2980_v63, %v1573_v0 }
0x17ce   :  { %1577 = vrot.lane.b32.xlu0 %v1575_v2, %s3099_s0 }
0x1825   :  { %v1567_v4 = vpop.permute.xlu1 %1566 }
0x1826   :  { %v1569_v53 = vadd.f32 %v1567_v4, %v1559_v33 }
0x1828   :  { %2981 = vtanh.f32 %v1569_v53 }
0x1832   :  { %v2982_v6 = vpop.eup %2981 }
0x1833   :  { %1583 = vrot.lane.b32.xlu1 %v2982_v6, %s3099_s0 }
0x1840   :  { %v1578_v58 = vpop.permute.xlu0 %1577 }
0x1841   :  { %v1580_v7 = vadd.f32 %v1578_v58, %v1570_v29 }
0x1843   :  { %2983 = vtanh.f32 %v1580_v7 }
0x184d   :  { %v2984_v13 = vpop.eup %2983 }
0x184e   :  { %1589 = vrot.lane.b32.xlu0 %v2984_v13, %s3099_s0 }
0x18a5   :  { %v1584_v56 = vpop.permute.xlu1 %1583 }
0x18a6   :  { %v1586_v17 = vmul.f32 %v2976_v61, %v1584_v56 }
0x18a8   :  { %1594 = vrot.lane.b32.xlu1 %v1586_v17, %s3100_s3 }
0x18c0   :  { %v1590_v44 = vpop.permute.xlu0 %1589 }
0x18c1   :  { %v3632_v31 = vmul.f32 %v2980_v63, %v1590_v44 }
0x18c3   :  { %1603 = vrot.lane.b32.xlu0 %v3632_v31, %s3101_s23 }
0x191a   :  { %v1595_v18 = vpop.permute.xlu1 %1594 }
0x191b   :  { %1597 = vst.msk [vmem:[#allocation3] sm:$0xff] %vm350_vm2, %v1595_v18 }
0x1935   :  { %v1604_v25 = vpop.permute.xlu0 %1603 }
0x1936   :  { %v1606_v22 = vsel %vm350_vm2, %v1595_v18, %v1604_v25 }
0x1937   :  { %v1607_v19 = vpack.c.bf16 %v1606_v22, %v1606_v22 }
0x1939   :  { %2692 = vmatmul.mubr.msk.bf16.vlgmr.msra.gmra.mrb[24].mxu1 %vm243_vm3, %v1607_v19 }
0x193a   :  { %1723 = vmatpush1.bf16.msra.mxu1 %v3500_v59  ;;  %1754 = vmatprep.mubr.bf16.mxu1 %v3097_v1 }
0x193b   :  { %1724 = vmatprep.subr.bf16.mxu1 %v3506_v28 }
0x193e   :  { %1725 = vmatpush1.bf16.msra.mxu1 %v3512_v43 }
0x193f   :  { %1726 = vmatprep.subr.bf16.mxu1 %v3519_v8 }
0x1942   :  { %1727 = vmatpush1.bf16.msra.mxu1 %v3524_v9 }
0x1943   :  { %1728 = vmatprep.subr.bf16.mxu1 %v3529_v10 }
0x1946   :  { %1729 = vmatpush1.bf16.msra.mxu1 %v3536_v11 }
0x1947   :  { %1944 = vmatprep.subr.bf16.mxu1 %v3495_v34 }
0x1a0c   :  { %v1645_v24 = vpop.f32.mrb[24].mxu1 }
0x1a0d   :  { %v1653_v15 = vadd.f32 %v1645_v24, %v3599_v16  ;;  %v1647_v14 = vpop.f32.mrb[25].mxu1 }
0x1a0e   :  { %v1655_v36 = vadd.f32 %v1647_v14, %v3622_v46  ;;  %v1649_v39 = vpop.f32.mrb[26].mxu1 }
0x1a0f   :  { %2985 = vtanh.f32 %v1653_v15  ;;  %v1650_v32 = vpop.f32.mrb[27].mxu1  ;;  %v2693_v48 = vmul.f32 -1.442695, %v1653_v15 }
0x1a10   :  { %2987 = vtanh.f32 %v1655_v36  ;;  %v2694_v52 = vmul.f32 -1.442695, %v1655_v36 }
0x1a11   :  { %2989 = vpow2.f32 %v2693_v48 }
0x1a12   :  { %2991 = vpow2.f32 %v2694_v52 }
0x1a19   :  { %v2986_v30 = vpop.eup %2985 }
0x1a1a   :  { %v2988_v45 = vpop.eup %2987  ;;  %1672 = vrot.lane.b32.xlu1 %v2986_v30, %s3099_s0 }
0x1a1b   :  { %1683 = vrot.lane.b32.xlu0 %v2988_v45, %s3099_s0  ;;  %v2990_v54 = vpop.eup %2989 }
0x1a1c   :  { %v2992_v47 = vpop.eup %2991  ;;  %v1659_v16 = vadd.f32 1.0, %v2990_v54 }
0x1a1d   :  { %v1666_v55 = vadd.f32 1.0, %v2992_v47 }
0x1a1e   :  { %2993 = vrcp.f32 %v1659_v16 }
0x1a1f   :  { %2995 = vrcp.f32 %v1666_v55 }
0x1a28   :  { %v2994_v46 = vpop.eup %2993 }
0x1a29   :  { %v2996_v57 = vpop.eup %2995  ;;  %v1670_v27 = vmul.f32 %v2994_v46, %v1569_v53 }
0x1a2a   :  { %v1681_v62 = vmul.f32 %v2996_v57, %v1580_v7 }
0x1a8c   :  { %v1673_v40 = vpop.permute.xlu1 %1672 }
0x1a8d   :  { %v1675_v3 = vmul.f32 %v2994_v46, %v1673_v40  ;;  %v1684_v60 = vpop.permute.xlu0 %1683 }
0x1a8e   :  { %v1686_v61 = vmul.f32 %v2996_v57, %v1684_v60 }
0x1a8f   :  { %1677 = vrot.lane.b32.xlu1 %v1675_v3, %s3099_s0 }
0x1a90   :  { %1688 = vrot.lane.b32.xlu0 %v1686_v61, %s3099_s0 }
0x1b01   :  { %v1678_v38 = vpop.permute.xlu1 %1677 }
0x1b02   :  { %v1680_v49 = vadd.f32 %v1678_v38, %v1670_v27  ;;  %v1689_v63 = vpop.permute.xlu0 %1688 }
0x1b03   :  { %v1691_v0 = vadd.f32 %v1689_v63, %v1681_v62 }
0x1b04   :  { %2997 = vtanh.f32 %v1680_v49 }
0x1b05   :  { %2999 = vtanh.f32 %v1691_v0 }
0x1b0e   :  { %v2998_v2 = vpop.eup %2997 }
0x1b0f   :  { %v3000_v33 = vpop.eup %2999  ;;  %1694 = vrot.lane.b32.xlu1 %v2998_v2, %s3099_s0 }
0x1b10   :  { %1700 = vrot.lane.b32.xlu0 %v3000_v33, %s3099_s0 }
0x1b81   :  { %v1695_v4 = vpop.permute.xlu1 %1694 }
0x1b82   :  { %v1697_v6 = vmul.f32 %v2994_v46, %v1695_v4  ;;  %v1701_v29 = vpop.permute.xlu0 %1700 }
0x1b83   :  { %v3656_v58 = vmul.f32 %v2996_v57, %v1701_v29 }
0x1b84   :  { %1705 = vrot.lane.b32.xlu1 %v1697_v6, %s3100_s3 }
0x1b85   :  { %1714 = vrot.lane.b32.xlu0 %v3656_v58, %s3101_s23 }
0x1bf6   :  { %v1706_v53 = vpop.permute.xlu1 %1705 }
0x1bf7   :  { %1708 = vst.msk [vmem:[#allocation3 + $0x8] sm:$0xff] %vm350_vm2, %v1706_v53  ;;  %v1715_v7 = vpop.permute.xlu0 %1714 }
0x1bf8   :  { %v1717_v13 = vsel %vm350_vm2, %v1706_v53, %v1715_v7 }
0x1bf9   :  { %v1718_v56 = vpack.c.bf16 %v1717_v13, %v1717_v13 }
0x1bfb   :  { %2695 = vmatmul.mubr.msk.bf16.vlgmr.msra.gmra.mrb[28].mxu1 %vm243_vm3, %v1718_v56 }
0x1bfc   :  { %1945 = vmatpush1.bf16.msra.mxu1 %v3500_v59  ;;  %1976 = vmatprep.mubr.bf16.mxu1 %v3097_v1 }
0x1bfd   :  { %1946 = vmatprep.subr.bf16.mxu1 %v3506_v28 }
0x1c00   :  { %1947 = vmatpush1.bf16.msra.mxu1 %v3512_v43 }
0x1c01   :  { %1948 = vmatprep.subr.bf16.mxu1 %v3519_v8 }
0x1c04   :  { %1949 = vmatpush1.bf16.msra.mxu1 %v3524_v9 }
0x1c05   :  { %1950 = vmatprep.subr.bf16.mxu1 %v3529_v10 }
0x1c08   :  { %1951 = vmatpush1.bf16.msra.mxu1 %v3536_v11 }
0x1c09   :  { %2166 = vmatprep.subr.bf16.mxu1 %v3495_v34 }
0x1cce   :  { %v1756_v17 = vpop.f32.mrb[28].mxu1 }
0x1ccf   :  { %v1764_v44 = vadd.f32 %v1756_v17, %v3603_v21  ;;  %v1758_v18 = vpop.f32.mrb[29].mxu1 }
0x1cd0   :  { %v1766_v25 = vadd.f32 %v1758_v18, %v3618_v42  ;;  %v1760_v22 = vpop.f32.mrb[30].mxu1 }
0x1cd1   :  { %3001 = vtanh.f32 %v1764_v44  ;;  %v1761_v19 = vpop.f32.mrb[31].mxu1  ;;  %v2696_v14 = vmul.f32 -1.442695, %v1764_v44 }
0x1cd2   :  { %3003 = vtanh.f32 %v1766_v25  ;;  %v2697_v36 = vmul.f32 -1.442695, %v1766_v25 }
0x1cd3   :  { %3005 = vpow2.f32 %v2696_v14 }
0x1cd4   :  { %3007 = vpow2.f32 %v2697_v36 }
0x1cdb   :  { %v3002_v24 = vpop.eup %3001 }
0x1cdc   :  { %v3004_v15 = vpop.eup %3003  ;;  %1783 = vrot.lane.b32.xlu1 %v3002_v24, %s3099_s0 }
0x1cdd   :  { %1794 = vrot.lane.b32.xlu0 %v3004_v15, %s3099_s0  ;;  %v3006_v39 = vpop.eup %3005 }
0x1cde   :  { %v3008_v32 = vpop.eup %3007  ;;  %v1770_v21 = vadd.f32 1.0, %v3006_v39 }
0x1cdf   :  { %v1777_v30 = vadd.f32 1.0, %v3008_v32 }
0x1ce0   :  { %3009 = vrcp.f32 %v1770_v21 }
0x1ce1   :  { %3011 = vrcp.f32 %v1777_v30 }
0x1cea   :  { %v3010_v42 = vpop.eup %3009 }
0x1ceb   :  { %v3012_v48 = vpop.eup %3011  ;;  %v1781_v16 = vmul.f32 %v3010_v42, %v1680_v49 }
0x1cec   :  { %v1792_v46 = vmul.f32 %v3012_v48, %v1691_v0 }
0x1d4e   :  { %v1784_v45 = vpop.permute.xlu1 %1783 }
0x1d4f   :  { %v1786_v52 = vmul.f32 %v3010_v42, %v1784_v45  ;;  %v1795_v54 = vpop.permute.xlu0 %1794 }
0x1d50   :  { %v1797_v47 = vmul.f32 %v3012_v48, %v1795_v54 }
0x1d51   :  { %1788 = vrot.lane.b32.xlu1 %v1786_v52, %s3099_s0 }
0x1d52   :  { %1799 = vrot.lane.b32.xlu0 %v1797_v47, %s3099_s0 }
0x1dc3   :  { %v1789_v55 = vpop.permute.xlu1 %1788 }
0x1dc4   :  { %v1791_v40 = vadd.f32 %v1789_v55, %v1781_v16  ;;  %v1800_v57 = vpop.permute.xlu0 %1799 }
0x1dc5   :  { %v1802_v3 = vadd.f32 %v1800_v57, %v1792_v46 }
0x1dc6   :  { %3013 = vtanh.f32 %v1791_v40 }
0x1dc7   :  { %3015 = vtanh.f32 %v1802_v3 }
0x1dd0   :  { %v3014_v60 = vpop.eup %3013 }
0x1dd1   :  { %v3016_v61 = vpop.eup %3015  ;;  %1805 = vrot.lane.b32.xlu1 %v3014_v60, %s3099_s0 }
0x1dd2   :  { %1811 = vrot.lane.b32.xlu0 %v3016_v61, %s3099_s0 }
0x1e43   :  { %v1806_v27 = vpop.permute.xlu1 %1805 }
0x1e44   :  { %v1808_v38 = vmul.f32 %v3010_v42, %v1806_v27  ;;  %v1812_v62 = vpop.permute.xlu0 %1811 }
0x1e45   :  { %v3681_v63 = vmul.f32 %v3012_v48, %v1812_v62 }
0x1e46   :  { %1816 = vrot.lane.b32.xlu1 %v1808_v38, %s3100_s3 }
0x1e47   :  { %1825 = vrot.lane.b32.xlu0 %v3681_v63, %s3101_s23 }
0x1eb8   :  { %v1817_v49 = vpop.permute.xlu1 %1816 }
0x1eb9   :  { %1819 = vst.msk [vmem:[#allocation3 + $0x10] sm:$0xff] %vm350_vm2, %v1817_v49  ;;  %v1826_v0 = vpop.permute.xlu0 %1825 }
0x1eba   :  { %v1828_v2 = vsel %vm350_vm2, %v1817_v49, %v1826_v0 }
0x1ebb   :  { %v1829_v33 = vpack.c.bf16 %v1828_v2, %v1828_v2 }
0x1ebd   :  { %2698 = vmatmul.mubr.msk.bf16.vlgmr.msra.gmra.mrb[44].mxu0 %vm243_vm3, %v1829_v33 }
0x1ebe   :  { %2056 = vmatpush1.bf16.msra.mxu0 %v3500_v59  ;;  %2087 = vmatprep.mubr.bf16.mxu0 %v3097_v1 }
0x1ebf   :  { %2057 = vmatprep.subr.bf16.mxu0 %v3506_v28 }
0x1ec2   :  { %2058 = vmatpush1.bf16.msra.mxu0 %v3512_v43 }
0x1ec3   :  { %2059 = vmatprep.subr.bf16.mxu0 %v3519_v8 }
0x1ec6   :  { %2060 = vmatpush1.bf16.msra.mxu0 %v3524_v9 }
0x1ec7   :  { %2061 = vmatprep.subr.bf16.mxu0 %v3529_v10 }
0x1eca   :  { %2062 = vmatpush1.bf16.msra.mxu0 %v3536_v11 }
0x1ecb   :  { %2277 = vmatprep.subr.bf16.mxu0 %v3495_v34 }
0x1f90   :  { %v1867_v4 = vpop.f32.mrb[44].mxu0 }
0x1f91   :  { %v1875_v6 = vadd.f32 %v1867_v4, %v3607_v20  ;;  %v1869_v29 = vpop.f32.mrb[45].mxu0 }
0x1f92   :  { %v1877_v53 = vadd.f32 %v1869_v29, %v3614_v35  ;;  %v1871_v7 = vpop.f32.mrb[46].mxu0 }
0x1f93   :  { %3017 = vtanh.f32 %v1875_v6  ;;  %v1872_v13 = vpop.f32.mrb[47].mxu0  ;;  %v2699_v44 = vmul.f32 -1.442695, %v1875_v6 }
0x1f94   :  { %3019 = vtanh.f32 %v1877_v53  ;;  %v2700_v18 = vmul.f32 -1.442695, %v1877_v53 }
0x1f95   :  { %3021 = vpow2.f32 %v2699_v44 }
0x1f96   :  { %3023 = vpow2.f32 %v2700_v18 }
0x1f9d   :  { %v3018_v56 = vpop.eup %3017 }
0x1f9e   :  { %v3020_v17 = vpop.eup %3019  ;;  %1894 = vrot.lane.b32.xlu1 %v3018_v56, %s3099_s0 }
0x1f9f   :  { %1905 = vrot.lane.b32.xlu0 %v3020_v17, %s3099_s0  ;;  %v3022_v34 = vpop.eup %3021 }
0x1fa0   :  { %v3024_v25 = vpop.eup %3023  ;;  %v1881_v20 = vadd.f32 1.0, %v3022_v34 }
0x1fa1   :  { %v1888_v22 = vadd.f32 1.0, %v3024_v25 }
0x1fa2   :  { %3025 = vrcp.f32 %v1881_v20 }
0x1fa3   :  { %3027 = vrcp.f32 %v1888_v22 }
0x1fac   :  { %v3026_v35 = vpop.eup %3025 }
0x1fad   :  { %v3028_v24 = vpop.eup %3027  ;;  %v1892_v39 = vmul.f32 %v3026_v35, %v1791_v40 }
0x1fae   :  { %v1903_v21 = vmul.f32 %v3028_v24, %v1802_v3 }
0x2010   :  { %v1895_v19 = vpop.permute.xlu1 %1894 }
0x2011   :  { %v1897_v15 = vmul.f32 %v3026_v35, %v1895_v19  ;;  %v1906_v14 = vpop.permute.xlu0 %1905 }
0x2012   :  { %v1908_v36 = vmul.f32 %v3028_v24, %v1906_v14 }
0x2013   :  { %1899 = vrot.lane.b32.xlu1 %v1897_v15, %s3099_s0 }
0x2014   :  { %1910 = vrot.lane.b32.xlu0 %v1908_v36, %s3099_s0 }
0x2085   :  { %v1900_v32 = vpop.permute.xlu1 %1899 }
0x2086   :  { %v1902_v30 = vadd.f32 %v1900_v32, %v1892_v39  ;;  %v1911_v42 = vpop.permute.xlu0 %1910 }
0x2087   :  { %v1913_v45 = vadd.f32 %v1911_v42, %v1903_v21 }
0x2088   :  { %3029 = vtanh.f32 %v1902_v30 }
0x2089   :  { %3031 = vtanh.f32 %v1913_v45 }
0x2092   :  { %v3030_v48 = vpop.eup %3029 }
0x2093   :  { %v3032_v52 = vpop.eup %3031  ;;  %1916 = vrot.lane.b32.xlu1 %v3030_v48, %s3099_s0 }
0x2094   :  { %1922 = vrot.lane.b32.xlu0 %v3032_v52, %s3099_s0 }
0x2105   :  { %v1917_v54 = vpop.permute.xlu1 %1916 }
0x2106   :  { %v1919_v47 = vmul.f32 %v3026_v35, %v1917_v54  ;;  %v1923_v16 = vpop.permute.xlu0 %1922 }
0x2107   :  { %v3706_v55 = vmul.f32 %v3028_v24, %v1923_v16 }
0x2108   :  { %1927 = vrot.lane.b32.xlu1 %v1919_v47, %s3100_s3 }
0x2109   :  { %1936 = vrot.lane.b32.xlu0 %v3706_v55, %s3101_s23 }
0x217a   :  { %v1928_v46 = vpop.permute.xlu1 %1927 }
0x217b   :  { %1930 = vst.msk [vmem:[#allocation3 + $0x18] sm:$0xff] %vm350_vm2, %v1928_v46  ;;  %v1937_v40 = vpop.permute.xlu0 %1936 }
0x217c   :  { %v1939_v57 = vsel %vm350_vm2, %v1928_v46, %v1937_v40 }
0x217d   :  { %v1940_v3 = vpack.c.bf16 %v1939_v57, %v1939_v57 }
0x217f   :  { %2701 = vmatmul.mubr.msk.bf16.vlgmr.msra.gmra.mrb[32].mxu1 %vm243_vm3, %v1940_v3 }
0x2180   :  { %2167 = vmatpush1.bf16.msra.mxu1 %v3500_v59  ;;  %2198 = vmatprep.mubr.bf16.mxu1 %v3097_v1 }
0x2181   :  { %2168 = vmatprep.subr.bf16.mxu1 %v3506_v28 }
0x2184   :  { %2169 = vmatpush1.bf16.msra.mxu1 %v3512_v43 }
0x2185   :  { %2170 = vmatprep.subr.bf16.mxu1 %v3519_v8 }
0x2188   :  { %2171 = vmatpush1.bf16.msra.mxu1 %v3524_v9 }
0x2189   :  { %2172 = vmatprep.subr.bf16.mxu1 %v3529_v10 }
0x218c   :  { %2173 = vmatpush1.bf16.msra.mxu1 %v3536_v11 }
0x2252   :  { %v1978_v60 = vpop.f32.mrb[32].mxu1 }
0x2253   :  { %v1986_v61 = vadd.f32 %v1978_v60, %v3612_v51  ;;  %v1980_v27 = vpop.f32.mrb[33].mxu1 }
0x2254   :  { %v1988_v38 = vadd.f32 %v1980_v27, %v3609_v12  ;;  %v1982_v62 = vpop.f32.mrb[34].mxu1 }
0x2255   :  { %3033 = vtanh.f32 %v1986_v61  ;;  %v1983_v49 = vpop.f32.mrb[35].mxu1  ;;  %v2702_v33 = vmul.f32 -1.442695, %v1986_v61 }
0x2256   :  { %3035 = vtanh.f32 %v1988_v38  ;;  %v2703_v4 = vmul.f32 -1.442695, %v1988_v38 }
0x2257   :  { %3037 = vpow2.f32 %v2702_v33 }
0x2258   :  { %3039 = vpow2.f32 %v2703_v4 }
0x225f   :  { %v3034_v0 = vpop.eup %3033 }
0x2260   :  { %v3036_v2 = vpop.eup %3035  ;;  %2005 = vrot.lane.b32.xlu1 %v3034_v0, %s3099_s0 }
0x2261   :  { %2016 = vrot.lane.b32.xlu0 %v3036_v2, %s3099_s0  ;;  %v3038_v6 = vpop.eup %3037 }
0x2262   :  { %v3040_v29 = vpop.eup %3039  ;;  %v1992_v51 = vadd.f32 1.0, %v3038_v6 }
0x2263   :  { %v1999_v53 = vadd.f32 1.0, %v3040_v29 }
0x2264   :  { %3041 = vrcp.f32 %v1992_v51 }
0x2265   :  { %3043 = vrcp.f32 %v1999_v53 }
0x226e   :  { %v3042_v12 = vpop.eup %3041 }
0x226f   :  { %v3044_v13 = vpop.eup %3043  ;;  %v2003_v18 = vmul.f32 %v3042_v12, %v1902_v30 }
0x2270   :  { %v2014_v25 = vmul.f32 %v3044_v13, %v1913_v45 }
0x22d2   :  { %v2006_v7 = vpop.permute.xlu1 %2005 }
0x22d3   :  { %v2008_v56 = vmul.f32 %v3042_v12, %v2006_v7  ;;  %v2017_v17 = vpop.permute.xlu0 %2016 }
0x22d4   :  { %v2019_v44 = vmul.f32 %v3044_v13, %v2017_v17 }
0x22d5   :  { %2010 = vrot.lane.b32.xlu1 %v2008_v56, %s3099_s0 }
0x22d6   :  { %2021 = vrot.lane.b32.xlu0 %v2019_v44, %s3099_s0 }
0x2347   :  { %v2011_v34 = vpop.permute.xlu1 %2010 }
0x2348   :  { %v2013_v20 = vadd.f32 %v2011_v34, %v2003_v18  ;;  %v2022_v22 = vpop.permute.xlu0 %2021 }
0x2349   :  { %v2024_v35 = vadd.f32 %v2022_v22, %v2014_v25 }
0x234a   :  { %3045 = vtanh.f32 %v2013_v20 }
0x234b   :  { %3047 = vtanh.f32 %v2024_v35 }
0x2354   :  { %v3046_v19 = vpop.eup %3045 }
0x2355   :  { %v3048_v24 = vpop.eup %3047  ;;  %2027 = vrot.lane.b32.xlu1 %v3046_v19, %s3099_s0 }
0x2356   :  { %2033 = vrot.lane.b32.xlu0 %v3048_v24, %s3099_s0 }
0x23c7   :  { %v2028_v15 = vpop.permute.xlu1 %2027 }
0x23c8   :  { %v2030_v14 = vmul.f32 %v3042_v12, %v2028_v15  ;;  %v2034_v36 = vpop.permute.xlu0 %2033 }
0x23c9   :  { %v3730_v39 = vmul.f32 %v3044_v13, %v2034_v36 }
0x23ca   :  { %2038 = vrot.lane.b32.xlu1 %v2030_v14, %s3100_s3 }
0x23cb   :  { %2047 = vrot.lane.b32.xlu0 %v3730_v39, %s3101_s23 }
0x243c   :  { %v2039_v32 = vpop.permute.xlu1 %2038 }
0x243d   :  { %2041 = vst.msk [vmem:[#allocation3 + $0x20] sm:$0xff] %vm350_vm2, %v2039_v32  ;;  %v2048_v21 = vpop.permute.xlu0 %2047 }
0x243e   :  { %v2050_v30 = vsel %vm350_vm2, %v2039_v32, %v2048_v21 }
0x243f   :  { %v2051_v42 = vpack.c.bf16 %v2050_v30, %v2050_v30 }
0x2441   :  { %2704 = vmatmul.mubr.msk.bf16.vlgmr.msra.gmra.mrb[48].mxu0 %vm243_vm3, %v2051_v42 }
0x2442   :  { %2278 = vmatpush1.bf16.msra.mxu0 %v3500_v59  ;;  %2309 = vmatprep.mubr.bf16.mxu0 %v3097_v1 }
0x2443   :  { %2279 = vmatprep.subr.bf16.mxu0 %v3506_v28 }
0x2446   :  { %2280 = vmatpush1.bf16.msra.mxu0 %v3512_v43 }
0x2447   :  { %2281 = vmatprep.subr.bf16.mxu0 %v3519_v8 }
0x244a   :  { %2282 = vmatpush1.bf16.msra.mxu0 %v3524_v9 }
0x244b   :  { %2283 = vmatprep.subr.bf16.mxu0 %v3529_v10 }
0x244e   :  { %2284 = vmatpush1.bf16.msra.mxu0 %v3536_v11 }
0x2514   :  { %v2089_v45 = vpop.f32.mrb[48].mxu0 }
0x2515   :  { %v2097_v48 = vadd.f32 %v2089_v45, %v3616_v26  ;;  %v2091_v52 = vpop.f32.mrb[49].mxu0 }
0x2516   :  { %v2099_v59 = vadd.f32 %v2091_v52, %v3605_v5  ;;  %v2093_v54 = vpop.f32.mrb[50].mxu0 }
0x2517   :  { %3049 = vtanh.f32 %v2097_v48  ;;  %v2094_v1 = vpop.f32.mrb[51].mxu0  ;;  %v2705_v8 = vmul.f32 -1.442695, %v2097_v48 }
0x2518   :  { %3051 = vtanh.f32 %v2099_v59  ;;  %v2706_v9 = vmul.f32 -1.442695, %v2099_v59 }
0x2519   :  { %3053 = vpow2.f32 %v2705_v8 }
0x251a   :  { %3055 = vpow2.f32 %v2706_v9 }
0x2521   :  { %v3050_v28 = vpop.eup %3049 }
0x2522   :  { %v3052_v43 = vpop.eup %3051  ;;  %2116 = vrot.lane.b32.xlu1 %v3050_v28, %s3099_s0 }
0x2523   :  { %2127 = vrot.lane.b32.xlu0 %v3052_v43, %s3099_s0  ;;  %v3054_v10 = vpop.eup %3053 }
0x2524   :  { %v3056_v11 = vpop.eup %3055  ;;  %v2103_v26 = vadd.f32 1.0, %v3054_v10 }
0x2525   :  { %v2110_v47 = vadd.f32 1.0, %v3056_v11 }
0x2526   :  { %3057 = vrcp.f32 %v2103_v26 }
0x2527   :  { %3059 = vrcp.f32 %v2110_v47 }
0x2530   :  { %v3058_v5 = vpop.eup %3057 }
0x2531   :  { %v3060_v46 = vpop.eup %3059  ;;  %v2114_v60 = vmul.f32 %v3058_v5, %v2013_v20 }
0x2532   :  { %v2125_v27 = vmul.f32 %v3060_v46, %v2024_v35 }
0x2594   :  { %v2117_v16 = vpop.permute.xlu1 %2116 }
0x2595   :  { %v2119_v40 = vmul.f32 %v3058_v5, %v2117_v16  ;;  %v2128_v57 = vpop.permute.xlu0 %2127 }
0x2596   :  { %v2130_v3 = vmul.f32 %v3060_v46, %v2128_v57 }
0x2597   :  { %2121 = vrot.lane.b32.xlu1 %v2119_v40, %s3099_s0 }
0x2598   :  { %2132 = vrot.lane.b32.xlu0 %v2130_v3, %s3099_s0 }
0x2609   :  { %v2122_v61 = vpop.permute.xlu1 %2121 }
0x260a   :  { %v2124_v38 = vadd.f32 %v2122_v61, %v2114_v60  ;;  %v2133_v62 = vpop.permute.xlu0 %2132 }
0x260b   :  { %v2135_v49 = vadd.f32 %v2133_v62, %v2125_v27 }
0x260c   :  { %3061 = vtanh.f32 %v2124_v38 }
0x260d   :  { %3063 = vtanh.f32 %v2135_v49 }
0x2616   :  { %v3062_v0 = vpop.eup %3061 }
0x2617   :  { %v3064_v2 = vpop.eup %3063  ;;  %2138 = vrot.lane.b32.xlu1 %v3062_v0, %s3099_s0 }
0x2618   :  { %2144 = vrot.lane.b32.xlu0 %v3064_v2, %s3099_s0 }
0x2689   :  { %v2139_v33 = vpop.permute.xlu1 %2138 }
0x268a   :  { %v2141_v4 = vmul.f32 %v3058_v5, %v2139_v33  ;;  %v2145_v6 = vpop.permute.xlu0 %2144 }
0x268b   :  { %v3754_v29 = vmul.f32 %v3060_v46, %v2145_v6 }
0x268c   :  { %2149 = vrot.lane.b32.xlu1 %v2141_v4, %s3100_s3 }
0x268d   :  { %2158 = vrot.lane.b32.xlu0 %v3754_v29, %s3101_s23 }
0x26fe   :  { %v2150_v51 = vpop.permute.xlu1 %2149 }
0x26ff   :  { %2152 = vst.msk [vmem:[#allocation3 + $0x28] sm:$0xff] %vm350_vm2, %v2150_v51  ;;  %v2159_v53 = vpop.permute.xlu0 %2158 }
0x2700   :  { %v2161_v12 = vsel %vm350_vm2, %v2150_v51, %v2159_v53 }
0x2701   :  { %v2162_v7 = vpack.c.bf16 %v2161_v12, %v2161_v12 }
0x2703   :  { %2707 = vmatmul.mubr.msk.bf16.vlgmr.msra.gmra.mrb[36].mxu1 %vm243_vm3, %v2162_v7 }
0x27d6   :  { %v2200_v13 = vpop.f32.mrb[36].mxu1 }
0x27d7   :  { %v2208_v56 = vadd.f32 %v2200_v13, %v3620_v37  ;;  %v2202_v17 = vpop.f32.mrb[37].mxu1 }
0x27d8   :  { %v2210_v44 = vadd.f32 %v2202_v17, %v3601_v23  ;;  %v2204_v18 = vpop.f32.mrb[38].mxu1 }
0x27d9   :  { %3065 = vtanh.f32 %v2208_v56  ;;  %v2205_v34 = vpop.f32.mrb[39].mxu1  ;;  %v2708_v22 = vmul.f32 -1.442695, %v2208_v56  ;;  %v2837_v18 = vld [vmem:[%s3874_s9] sm:$0xff]  }
0x27da   :  { %3067 = vtanh.f32 %v2210_v44  ;;  %v2709_v35 = vmul.f32 -1.442695, %v2210_v44  ;;  %2762 = vmatprep.subr.bf16.mxu1 %v2837_v18  ;;  %2738 = vmatprep.subr.bf16.mxu0 %v2837_v18 }
0x27db   :  { %3069 = vpow2.f32 %v2708_v22  ;;  %2764 = vmatpush3.bf16.msra.mxu1 %v2837_v18  ;;  %v2839_v22 = vld [vmem:[%s3875_s8] sm:$0xff]  }
0x27dc   :  { %3071 = vpow2.f32 %v2709_v35 }
0x27e3   :  { %v3066_v25 = vpop.eup %3065 }
0x27e4   :  { %v3068_v20 = vpop.eup %3067  ;;  %2227 = vrot.lane.b32.xlu1 %v3066_v25, %s3099_s0 }
0x27e5   :  { %2238 = vrot.lane.b32.xlu0 %v3068_v20, %s3099_s0  ;;  %v3070_v19 = vpop.eup %3069  ;;  %v2838_v20 = vld [vmem:[%s3874_s9 + $0x8] sm:$0xff]  }
0x27e6   :  { %v3072_v24 = vpop.eup %3071  ;;  %v2214_v37 = vadd.f32 1.0, %v3070_v19  ;;  %2763 = vmatprep.subr.bf16.mxu1 %v2838_v20 }
0x27e7   :  { %v2221_v15 = vadd.f32 1.0, %v3072_v24  ;;  %2765 = vmatpush3.bf16.msra.mxu1 %v2838_v20 }
0x27e8   :  { %3073 = vrcp.f32 %v2214_v37  ;;  %2750 = vmatprep.subr.bf16.mxu1 %v2839_v22 }
0x27e9   :  { %3075 = vrcp.f32 %v2221_v15 }
0x27f2   :  { %v3074_v23 = vpop.eup %3073 }
0x27f3   :  { %v3076_v36 = vpop.eup %3075  ;;  %v2225_v42 = vmul.f32 %v3074_v23, %v2124_v38 }
0x27f4   :  { %v2236_v48 = vmul.f32 %v3076_v36, %v2135_v49 }
0x2856   :  { %v2228_v14 = vpop.permute.xlu1 %2227 }
0x2857   :  { %v2230_v32 = vmul.f32 %v3074_v23, %v2228_v14  ;;  %v2239_v21 = vpop.permute.xlu0 %2238 }
0x2858   :  { %v2241_v30 = vmul.f32 %v3076_v36, %v2239_v21 }
0x2859   :  { %2232 = vrot.lane.b32.xlu1 %v2230_v32, %s3099_s0  ;;  %v2381_v32 = vld [vmem:[#allocation3 + $0x8] sm:$0xff] }
0x285a   :  { %2243 = vrot.lane.b32.xlu0 %v2241_v30, %s3099_s0 }
0x28cb   :  { %v2233_v45 = vpop.permute.xlu1 %2232 }
0x28cc   :  { %v2235_v52 = vadd.f32 %v2233_v45, %v2225_v42  ;;  %v2244_v59 = vpop.permute.xlu0 %2243  ;;  %v2380_v42 = vld [vmem:[#allocation3] sm:$0xff]  ;;  %v2840_v45 = vld [vmem:[%s3875_s8 + $0x8] sm:$0xff]  }
0x28cd   :  { %v2246_v54 = vadd.f32 %v2244_v59, %v2236_v48  ;;  %v2388_v48 = vpack.c.bf16 %v2381_v32, %v2380_v42  ;;  %v2385_v59 = vld [vmem:[#allocation3 + $0x28] sm:$0xff] }
0x28ce   :  { %3077 = vtanh.f32 %v2235_v52 }
0x28cf   :  { %3079 = vtanh.f32 %v2246_v54 }
0x28d8   :  { %v3078_v1 = vpop.eup %3077 }
0x28d9   :  { %v3080_v28 = vpop.eup %3079  ;;  %2249 = vrot.lane.b32.xlu1 %v3078_v1, %s3099_s0 }
0x28da   :  { %2255 = vrot.lane.b32.xlu0 %v3080_v28, %s3099_s0  ;;  %v2384_v28 = vld [vmem:[#allocation3 + $0x20] sm:$0xff] }
0x294b   :  { %v2250_v43 = vpop.permute.xlu1 %2249 }
0x294c   :  { %v2252_v8 = vmul.f32 %v3074_v23, %v2250_v43  ;;  %v2256_v9 = vpop.permute.xlu0 %2255  ;;  %v2390_v43 = vpack.c.bf16 %v2385_v59, %v2384_v28 }
0x294d   :  { %v3770_v10 = vmul.f32 %v3076_v36, %v2256_v9 }
0x294e   :  { %2260 = vrot.lane.b32.xlu1 %v2252_v8, %s3100_s3 }
0x294f   :  { %2269 = vrot.lane.b32.xlu0 %v3770_v10, %s3101_s23 }
0x29c0   :  { %v2261_v11 = vpop.permute.xlu1 %2260 }
0x29c1   :  { %2263 = vst.msk [vmem:[#allocation3 + $0x30] sm:$0xff] %vm350_vm2, %v2261_v11  ;;  %v2270_v26 = vpop.permute.xlu0 %2269 }
0x29c2   :  { %v2272_v47 = vsel %vm350_vm2, %v2261_v11, %v2270_v26 }
0x29c3   :  { %v2273_v5 = vpack.c.bf16 %v2272_v47, %v2272_v47 }
0x29c5   :  { %2710 = vmatmul.mubr.msk.bf16.vlgmr.msra.gmra.mrb[52].mxu0 %vm243_vm3, %v2273_v5 }
0x29c6   :  { %2739 = vmatpush3.bf16.msra.mxu0 %v2837_v18 }
0x29c7   :  { %2740 = vmatprep.subr.bf16.mxu0 %v2838_v20 }
0x29c8   :  { %v2386_v11 = vld [vmem:[#allocation3 + $0x30] sm:$0xff] }
0x29ca   :  { %2741 = vmatpush3.bf16.msra.mxu0 %v2838_v20 }
0x2a98   :  { %v2311_v16 = vpop.f32.mrb[52].mxu0 }
0x2a99   :  { %v2319_v46 = vadd.f32 %v2311_v16, %v3624_v50  ;;  %v2313_v40 = vpop.f32.mrb[53].mxu0 }
0x2a9a   :  { %v2321_v57 = vadd.f32 %v2313_v40, %v3597_v41  ;;  %v2315_v3 = vpop.f32.mrb[54].mxu0 }
0x2a9b   :  { %3081 = vtanh.f32 %v2319_v46  ;;  %v2316_v60 = vpop.f32.mrb[55].mxu0  ;;  %v2711_v38 = vmul.f32 -1.442695, %v2319_v46 }
0x2a9c   :  { %3083 = vtanh.f32 %v2321_v57  ;;  %v2712_v62 = vmul.f32 -1.442695, %v2321_v57 }
0x2a9d   :  { %3085 = vpow2.f32 %v2711_v38 }
0x2a9e   :  { %3087 = vpow2.f32 %v2712_v62  ;;  %v2725_v62 = vld [vmem:[%s3876_s10] ss:$0 sm:$0xff] }
0x2aa5   :  { %v3082_v61 = vpop.eup %3081 }
0x2aa6   :  { %v3084_v27 = vpop.eup %3083  ;;  %2338 = vrot.lane.b32.xlu0 %v3082_v61, %s3099_s0 }
0x2aa7   :  { %2349 = vrot.lane.b32.xlu1 %v3084_v27, %s3099_s0  ;;  %v3086_v49 = vpop.eup %3085 }
0x2aa8   :  { %v3088_v0 = vpop.eup %3087  ;;  %v2325_v50 = vadd.f32 1.0, %v3086_v49 }
0x2aa9   :  { %v2332_v2 = vadd.f32 1.0, %v3088_v0 }
0x2aaa   :  { %3089 = vrcp.f32 %v2325_v50 }
0x2aab   :  { %3091 = vrcp.f32 %v2332_v2 }
0x2ab4   :  { %v3090_v41 = vpop.eup %3089 }
0x2ab5   :  { %v3092_v4 = vpop.eup %3091  ;;  %v2336_v12 = vmul.f32 %v3090_v41, %v2235_v52  ;;  %v2383_v52 = vld [vmem:[#allocation3 + $0x18] sm:$0xff] }
0x2ab6   :  { %v2347_v13 = vmul.f32 %v3092_v4, %v2246_v54  ;;  %v2382_v54 = vld [vmem:[#allocation3 + $0x10] sm:$0xff] }
0x2ab7   :  { %v2389_v1 = vpack.c.bf16 %v2383_v52, %v2382_v54 }
0x2b18   :  { %v2339_v33 = vpop.permute.xlu0 %2338 }
0x2b19   :  { %v2341_v6 = vmul.f32 %v3090_v41, %v2339_v33  ;;  %v2350_v51 = vpop.permute.xlu1 %2349 }
0x2b1a   :  { %v2352_v53 = vmul.f32 %v3092_v4, %v2350_v51 }
0x2b1b   :  { %2343 = vrot.lane.b32.xlu0 %v2341_v6, %s3099_s0 }
0x2b1c   :  { %2354 = vrot.lane.b32.xlu1 %v2352_v53, %s3099_s0 }
0x2b8d   :  { %v2344_v7 = vpop.permute.xlu0 %2343 }
0x2b8e   :  { %v2346_v56 = vadd.f32 %v2344_v7, %v2336_v12  ;;  %v2355_v17 = vpop.permute.xlu1 %2354 }
0x2b8f   :  { %v2357_v44 = vadd.f32 %v2355_v17, %v2347_v13 }
0x2b90   :  { %3093 = vtanh.f32 %v2346_v56 }
0x2b91   :  { %3095 = vtanh.f32 %v2357_v44 }
0x2b9a   :  { %v3094_v34 = vpop.eup %3093 }
0x2b9b   :  { %v3096_v25 = vpop.eup %3095  ;;  %2360 = vrot.lane.b32.xlu0 %v3094_v34, %s3099_s0 }
0x2b9c   :  { %2366 = vrot.lane.b32.xlu1 %v3096_v25, %s3099_s0 }
0x2b9f   :  { %1932 = vrot.lane.b32.xlu0 %v3706_v55, %s3100_s3 }
0x2ba0   :  { %1821 = vrot.lane.b32.xlu1 %v3681_v63, %s3100_s3 }
0x2ba3   :  { %1710 = vrot.lane.b32.xlu0 %v3656_v58, %s3100_s3 }
0x2ba4   :  { %1599 = vrot.lane.b32.xlu1 %v3632_v31, %s3100_s3 }
0x2ba8   :  { %2265 = vrot.lane.b32.xlu1 %v3770_v10, %s3100_s3 }
0x2bac   :  { %2043 = vrot.lane.b32.xlu1 %v3730_v39, %s3100_s3 }
0x2c0d   :  { %v2361_v55 = vpop.permute.xlu0 %2360 }
0x2c0e   :  { %v2363_v63 = vmul.f32 %v3090_v41, %v2361_v55  ;;  %v2367_v35 = vpop.permute.xlu1 %2366 }
0x2c0f   :  { %v2369_v19 = vmul.f32 %v3092_v4, %v2367_v35 }
0x2c10   :  { %2371 = vrot.lane.b32.xlu1 %v2363_v63, %s3100_s3 }
0x2c11   :  { %v1933_v24 = vpop.permute.xlu0 %1932  ;;  %2376 = vrot.lane.b32.xlu0 %v2369_v19, %s3100_s3 }
0x2c12   :  { %1935 = vst.msk [vmem:[#allocation4 + $0x20] sm:$0xff] %vm350_vm2, %v1933_v24  ;;  %v1822_v58 = vpop.permute.xlu1 %1821 }
0x2c13   :  { %1824 = vst.msk [vmem:[#allocation4 + $0x28] sm:$0xff] %vm350_vm2, %v1822_v58 }
0x2c15   :  { %v1711_v31 = vpop.permute.xlu0 %1710  ;;  %2154 = vrot.lane.b32.xlu0 %v3754_v29, %s3100_s3 }
0x2c16   :  { %1713 = vst.msk [vmem:[#allocation4 + $0x30] sm:$0xff] %vm350_vm2, %v1711_v31  ;;  %v1600_v39 = vpop.permute.xlu1 %1599 }
0x2c17   :  { %1602 = vst.msk [vmem:[#allocation4 + $0x38] sm:$0xff] %vm350_vm2, %v1600_v39 }
0x2c19   :  { %v2400_v37 = vld [vmem:[#allocation4 + $0x20] sm:$0xff] }
0x2c1a   :  { %v2266_v15 = vpop.permute.xlu1 %2265  ;;  %v2401_v23 = vld [vmem:[#allocation4 + $0x28] sm:$0xff] }
0x2c1b   :  { %2268 = vst.msk [vmem:[#allocation4 + $0x8] sm:$0xff] %vm350_vm2, %v2266_v15  ;;  %v2406_v14 = vpack.c.bf16 %v2401_v23, %v2400_v37 }
0x2c1d   :  { %2746 = vmatprep.mubr.msk.bf16.mxu1 %vm350_vm2, %v2406_v14  ;;  %v2402_v36 = vld [vmem:[#allocation4 + $0x30] sm:$0xff] }
0x2c1e   :  { %v2044_v21 = vpop.permute.xlu1 %2043  ;;  %v2403_v30 = vld [vmem:[#allocation4 + $0x38] sm:$0xff] }
0x2c1f   :  { %2046 = vst.msk [vmem:[#allocation4 + $0x18] sm:$0xff] %vm350_vm2, %v2044_v21  ;;  %v2407_v29 = vpack.c.bf16 %v2403_v30, %v2402_v36 }
0x2c21   :  { %2747 = vmatmul.mubr.msk.bf16.vlgmr.msra.gmra.mrb[40].mxu1 %vm350_vm2, %v2407_v29 }
0x2c22   :  { %2751 = vmatpush3.bf16.msra.mxu1 %v2839_v22  ;;  %2754 = vmatprep.mubr.msk.bf16.mxu1 %vm350_vm2, %v2388_v48  ;;  %v2397_v16 = vld [vmem:[#allocation4 + $0x8] sm:$0xff] }
0x2c23   :  { %2752 = vmatprep.subr.bf16.mxu1 %v2840_v45 }
0x2c26   :  { %2753 = vmatpush3.bf16.msra.mxu1 %v2840_v45  ;;  %v2399_v57 = vld [vmem:[#allocation4 + $0x18] sm:$0xff] }
0x2c29   :  { %2755 = vmatmul.mubr.msk.bf16.vlgmr.msra.gmra.mrb[44].mxu1 %vm350_vm2, %v2389_v1 }
0x2c2a   :  { %2758 = vmatprep.mubr.msk.bf16.mxu1 %vm350_vm2, %v2390_v43 }
0x2c82   :  { %v2372_v8 = vpop.permute.xlu1 %2371 }
0x2c83   :  { %2374 = vst.msk [vmem:[#allocation3 + $0x38] sm:$0xff] %vm350_vm2, %v2372_v8  ;;  %v2377_v9 = vpop.permute.xlu0 %2376 }
0x2c84   :  { %2379 = vst.msk [vmem:[#allocation4] sm:$0xff] %vm350_vm2, %v2377_v9 }
0x2c87   :  { %v2155_v10 = vpop.permute.xlu0 %2154 }
0x2c88   :  { %2157 = vst.msk [vmem:[#allocation4 + $0x10] sm:$0xff] %vm350_vm2, %v2155_v10 }
0x2c8a   :  { %v2387_v26 = vld [vmem:[#allocation3 + $0x38] sm:$0xff] }
0x2c8b   :  { %v2391_v47 = vpack.c.bf16 %v2387_v26, %v2386_v11  ;;  %v2396_v5 = vld [vmem:[#allocation4] sm:$0xff] }
0x2c8c   :  { %v2404_v46 = vpack.c.bf16 %v2397_v16, %v2396_v5 }
0x2c8d   :  { %2759 = vmatmul.mubr.msk.bf16.gmra.mrb[40].mxu1 %vm350_vm2, %v2391_v47 }
0x2c8e   :  { %2742 = vmatprep.mubr.msk.bf16.mxu0 %vm350_vm2, %v2404_v46 }
0x2c8f   :  { %v2398_v40 = vld [vmem:[#allocation4 + $0x10] sm:$0xff] }
0x2c90   :  { %v2405_v3 = vpack.c.bf16 %v2399_v57, %v2398_v40 }
0x2c92   :  { %2743 = vmatmul.mubr.msk.bf16.vlgmr.msra.gmra.mrb[56].mxu0 %vm350_vm2, %v2405_v3 }
0x2cfc   :  { %v2756_v60 = vpop.f32.mrb[44].mxu1 }
0x2cfd   :  { %v2559_v61 = vpop.f32.mrb[45].mxu1 }
0x2cfe   :  { %v2757_v27 = vpop.f32.mrb[46].mxu1 }
0x2cff   :  { %v2562_v38 = vpop.f32.mrb[47].mxu1 }
0x2d60   :  { %v2760_v49 = vpop.f32.mrb[40].mxu1 }
0x2d61   :  { %v2603_v0 = vadd.f32 %v2760_v49, %v2725_v62  ;;  %v2575_v50 = vpop.f32.mrb[41].mxu1 }
0x2d62   :  { %v2601_v2 = vadd.f32 %v2725_v62, %v2575_v50  ;;  %v2761_v41 = vpop.f32.mrb[42].mxu1 }
0x2d63   :  { %2611 = vst.msk [vmem:[%s3877_s11 + $0x30] sm:$0xff] %vm350_vm2, %v2603_v0  ;;  %v2604_v33 = vadd.f32 %v2761_v41, %v2725_v62  ;;  %v2578_v4 = vpop.f32.mrb[43].mxu1 }
0x2d64   :  { %2609 = vst.msk [vmem:[%s3877_s11 + $0x20] sm:$0xff] %vm350_vm2, %v2601_v2  ;;  %v2602_v6 = vadd.f32 %v2725_v62, %v2578_v4 }
0x2d65   :  { %2612 = vst.msk [vmem:[%s3877_s11 + $0x38] sm:$0xff] %vm350_vm2, %v2604_v33  ;;  %v2744_v51 = vpop.f32.mrb[56].mxu0 }
0x2d66   :  { %2610 = vst.msk [vmem:[%s3877_s11 + $0x28] sm:$0xff] %vm350_vm2, %v2602_v6  ;;  %v2568_v53 = vadd.f32 %v2756_v60, %v2744_v51  ;;  %v2470_v12 = vpop.f32.mrb[57].mxu0 }
0x2d67   :  { %v2560_v7 = vadd.f32 %v2559_v61, %v2470_v12  ;;  %v2745_v13 = vpop.f32.mrb[58].mxu0 }
0x2d68   :  { %v2599_v56 = vadd.f32 %v2725_v62, %v2568_v53  ;;  %v2571_v17 = vadd.f32 %v2757_v27, %v2745_v13  ;;  %v2473_v44 = vpop.f32.mrb[59].mxu0 }
0x2d69   :  { %v2597_v18 = vadd.f32 %v2725_v62, %v2560_v7  ;;  %v2563_v34 = vadd.f32 %v2562_v38, %v2473_v44 }
0x2d6a   :  { %2607 = vst.msk [vmem:[%s3877_s11 + $0x10] sm:$0xff] %vm350_vm2, %v2599_v56  ;;  %v2600_v25 = vadd.f32 %v2725_v62, %v2571_v17 }
0x2d6b   :  { %2605 = vst.msk [vmem:[%s3877_s11] sm:$0xff] %vm350_vm2, %v2597_v18  ;;  %v2598_v20 = vadd.f32 %v2725_v62, %v2563_v34 }
0x2d6c   :  { %2608 = vst.msk [vmem:[%s3877_s11 + $0x18] sm:$0xff] %vm350_vm2, %v2600_v25 }
0x2d6d   :  { %2606 = vst.msk [vmem:[%s3877_s11 + $0x8] sm:$0xff] %vm350_vm2, %v2598_v20 }

</bundles_post_ra>
